<compile_context>
chip_gen: v7x
topology: tpu7x:2x2x1
jax: 0.10.0
libtpu: 0.0.40
codegen_flags: <defaults>
</compile_context>

<pallas_src>
import jax
import jax.numpy as jnp
import numpy as np
from jax.experimental import pallas as pl
from jax.experimental.pallas import tpu as pltpu

HIDDEN = 128          # hidden_dim hard-coded in the PyTorch module
RNA_SEQ_LEN = 512     # implied by out_rna[:, 0:512]
RNA_GRAPH_LEN = 64    # padded RNA-graph length (left to rna_graph_model; chosen here)
MOL_SEQ_LEN = 128     # implied by out_mol[:, 0:128]
MOL_GRAPH_PAD = 128   # explicit pad-to-128 loop in forward()
BATCH = 2

HID4 = 4 * HIDDEN                                   # 512  (rna1 / mole1 output)
LINE1_OUT = 1024
LINE2_OUT = 512
STACK_LEN = RNA_SEQ_LEN + RNA_GRAPH_LEN             # 576  (rna row length)
MOL_STACK_LEN = MOL_SEQ_LEN + MOL_GRAPH_PAD + MOL_SEQ_LEN   # 384 (mol row length)


def deeprsma_head_kernel(act_ref, wmask_ref, extras_ref, biases_ref,
                         w_b1_ref, w_b2_ref, w_l1_ref, w_l2_ref, out_ref):
    f32, bf16 = jnp.float32, jnp.bfloat16
    relu = lambda v: jnp.maximum(v, 0.0)
    B2 = 2 * BATCH

    # ---- all masked-mean poolings (rna seq/graph, mol seq/graph, mole_seq_final)
    #      as ONE batched contraction against pre-scaled masks ------------------
    # act_ref:   [2B, 576, H] bf16   (rows 0:B rna, rows B:2B mol, zero padded)
    # wmask_ref: [2B,   1, 576] bf16 (mask * 0.25/len, exact powers of two)
    pooled = jnp.einsum('bml,blh->bmh', wmask_ref[...], act_ref[...],
                        preferred_element_type=f32).reshape(B2, HIDDEN)
    pooled = pooled + extras_ref[0:B2, :]       # + 0.25*(pooled "final" vectors)

    # ---- both branch MLPs as one stacked matmul pair ---------------------------
    h1 = jnp.dot(pooled.astype(bf16), w_b1_ref[...],
                 preferred_element_type=f32) + biases_ref[0:1, :]
    h1 = relu(h1)                               # [2B, 2*HID4]
    # rna rows (0:B) are only valid in cols 0:HID4, mol rows (B:2B) in cols HID4:
    row = jax.lax.broadcasted_iota(jnp.int32, h1.shape, 0)
    col = jax.lax.broadcasted_iota(jnp.int32, h1.shape, 1)
    is_rna_row = row < BATCH
    is_rna_col = col < HID4
    keep = (is_rna_row & is_rna_col) | ((~is_rna_row) & (~is_rna_col))
    h1 = jnp.where(keep, h1, 0.0)
    cross = jnp.dot(h1.astype(bf16), w_b2_ref[...],
                    preferred_element_type=f32) + extras_ref[B2:2 * B2, :]  # [2B, H]

    # ---- head: line1 without a lane-axis concat (two row-block matmuls) --------
    rna_cross = cross[0:BATCH, :].astype(bf16)
    mol_cross = cross[BATCH:B2, :].astype(bf16)
    l1 = (jnp.dot(rna_cross, w_l1_ref[0:HIDDEN, :], preferred_element_type=f32)
          + jnp.dot(mol_cross, w_l1_ref[HIDDEN:2 * HIDDEN, :],
                    preferred_element_type=f32)
          + biases_ref[1:2, :])
    l1 = relu(l1)                               # [B, 1024]
    l2 = relu(jnp.dot(l1.astype(bf16), w_l2_ref[...], preferred_element_type=f32)
              + biases_ref[2:3, 0:LINE2_OUT])   # [B, 512]

    # line3: elementwise mul + lane reduction (w_l3 travels packed inside biases)
    w_l3_row = biases_ref[2:3, LINE2_OUT:2 * LINE2_OUT]   # [1, 512] f32
    b_l3 = biases_ref[3:4, 0:1]                           # [1, 1]
    out_ref[...] = jnp.sum(l2 * w_l3_row, axis=1, keepdims=True) + b_l3


def deeprsma_head(inputs, params):
    (out_rna, rna_mask_seq, rna_mask_graph, rna_seq_final, rna_graph_final,
     out_mol, mole_seq_last, mole_mask_seq, mole_mask_graph, mole_graph_final) = inputs
    (w_rna1, b_rna1, w_rna2, b_rna2, w_mol1, b_mol1, w_mol2, b_mol2,
     w_l1, b_l1, w_l2, b_l2, w_l3, b_l3) = params
    B = out_rna.shape[0]
    assert B == BATCH
    f32, bf16 = jnp.float32, jnp.bfloat16

    # ---- activation stack [2B, 576, H]: rna rows, then zero-padded mol rows ----
    mol_cat = jnp.concatenate([out_mol, mole_seq_last], axis=1)          # [B, 384, H]
    mol_cat = jnp.pad(mol_cat, ((0, 0), (0, STACK_LEN - MOL_STACK_LEN), (0, 0)))
    act = jnp.concatenate([out_rna, mol_cat], axis=0).astype(bf16)       # [2B, 576, H]

    # ---- pre-scaled pooling masks [2B, 1, 576]; scales are exact powers of two,
    #      so the bf16 cast is exact ---------------------------------------------
    rna_wmask = jnp.concatenate(
        [rna_mask_seq * (0.25 / RNA_SEQ_LEN),
         rna_mask_graph * (0.25 / RNA_GRAPH_LEN)], axis=1)
    mol_wmask = jnp.concatenate(
        [mole_mask_seq * (0.25 / MOL_SEQ_LEN),
         mole_mask_graph * (0.25 / MOL_GRAPH_PAD),
         mole_mask_seq * (0.25 / MOL_SEQ_LEN),
         jnp.zeros((B, STACK_LEN - MOL_STACK_LEN), f32)], axis=1)
    wmask = jnp.concatenate([rna_wmask, mol_wmask], axis=0)
    wmask = wmask.reshape(2 * B, 1, STACK_LEN).astype(bf16)

    # ---- pooled "final" terms + per-branch second-layer biases, one f32 block --
    extras = jnp.concatenate(
        [0.25 * (rna_seq_final + rna_graph_final),       # rows 0:B   (rna final)
         0.25 * mole_graph_final,                        # rows B:2B  (mol final)
         jnp.broadcast_to(b_rna2, (B, HIDDEN)),          # rows 2B:3B (b_rna2)
         jnp.broadcast_to(b_mol2, (B, HIDDEN))],         # rows 3B:4B (b_mol2)
        axis=0).astype(f32)                              # [4B, H]

    # ---- remaining small vectors (biases + w_l3) packed into one [4, 1024] -----
    biases = jnp.stack(
        [jnp.concatenate([b_rna1[0], b_mol1[0]]),                        # row 0
         b_l1[0],                                                        # row 1
         jnp.concatenate([b_l2[0], w_l3[:, 0]]),                         # row 2
         jnp.concatenate([b_l3[0], jnp.zeros((LINE1_OUT - 1,), f32)])],  # row 3
    ).astype(f32)                                                        # [4, 1024]

    # ---- bf16 weight matrices ---------------------------------------------------
    w_b1 = jnp.concatenate([w_rna1, w_mol1], axis=1).astype(bf16)   # [H, 2*HID4]
    w_b2 = jnp.concatenate([w_rna2, w_mol2], axis=0).astype(bf16)   # [2*HID4, H]
    w_l1_b = w_l1.astype(bf16)                                      # [2H, 1024]
    w_l2_b = w_l2.astype(bf16)                                      # [1024, 512]

    args = (act, wmask, extras, biases, w_b1, w_b2, w_l1_b, w_l2_b)
    bytes_accessed = sum(int(np.prod(a.shape)) * a.dtype.itemsize for a in args)
    return pl.pallas_call(
        deeprsma_head_kernel,
        out_shape=jax.ShapeDtypeStruct((B, 1), f32),
        in_specs=[pl.BlockSpec(memory_space=pltpu.MemorySpace.VMEM)] * len(args),
        out_specs=pl.BlockSpec(memory_space=pltpu.MemorySpace.VMEM),
        compiler_params=pltpu.CompilerParams(vmem_limit_bytes=32 * 1024 * 1024),
        cost_estimate=pl.CostEstimate(flops=6_000_000, transcendentals=0,
                                      bytes_accessed=bytes_accessed),
    )(*args)


def linear_params(key, fan_in, fan_out):
    """Deterministic torch-style Linear init; W stored as [in, out]."""
    kw, kb = jax.random.split(key)
    bound = 1.0 / float(np.sqrt(fan_in))
    w = jax.random.uniform(kw, (fan_in, fan_out), jnp.float32, -bound, bound)
    b = jax.random.uniform(kb, (1, fan_out), jnp.float32, -bound, bound)
    return w, b


if __name__ == "__main__":
    key = jax.random.PRNGKey(0)
    keys = jax.random.split(key, 8)

    # TODO(synk): RNA_feature_extraction / GNN_molecule / mole_seq_model /
    # cross_attention are not defined in the reference file; their outputs are
    # modeled here as deterministic synthetic kernel inputs.
    rna_out = jax.random.normal(keys[0], (BATCH, RNA_SEQ_LEN + RNA_GRAPH_LEN, HIDDEN), jnp.float32)
    mol_out = jax.random.normal(keys[1], (BATCH, MOL_SEQ_LEN + MOL_GRAPH_PAD, HIDDEN), jnp.float32)
    mole_seq_last = jax.random.normal(keys[2], (BATCH, MOL_SEQ_LEN, HIDDEN), jnp.float32)
    rna_seq_final = jax.random.normal(keys[3], (BATCH, HIDDEN), jnp.float32)
    rna_graph_final = jax.random.normal(keys[4], (BATCH, HIDDEN), jnp.float32)
    mole_graph_final = jax.random.normal(keys[5], (BATCH, HIDDEN), jnp.float32)

    # masks built from lengths (mirrors the pad/mask loop over mol_batch.graph_len)
    rna_seq_lens = [300, 450]
    rna_graph_lens = [40, 64]
    mol_seq_lens = [60, 100]
    graph_len = [10, 25]   # mol_batch.graph_len -> padded to 128 with 1/0 mask

    def len_mask(lens, length):
        m = np.zeros((BATCH, length), np.float32)
        for b, l in enumerate(lens):
            m[b, :l] = 1.0
        return jnp.asarray(m)

    rna_mask_seq = len_mask(rna_seq_lens, RNA_SEQ_LEN)
    rna_mask_graph = len_mask(rna_graph_lens, RNA_GRAPH_LEN)
    mole_mask_seq = len_mask(mol_seq_lens, MOL_SEQ_LEN)
    mole_mask_graph = len_mask(graph_len, MOL_GRAPH_PAD)

    # parameters (shapes from DeepRSMA.__init__, hidden_dim = 128)
    pk = jax.random.split(jax.random.PRNGKey(1), 7)
    w_rna1, b_rna1 = linear_params(pk[0], HIDDEN, HID4)
    w_rna2, b_rna2 = linear_params(pk[1], HID4, HIDDEN)
    w_mol1, b_mol1 = linear_params(pk[2], HIDDEN, HID4)
    w_mol2, b_mol2 = linear_params(pk[3], HID4, HIDDEN)
    w_l1, b_l1 = linear_params(pk[4], HIDDEN * 2, LINE1_OUT)
    w_l2, b_l2 = linear_params(pk[5], LINE1_OUT, LINE2_OUT)
    w_l3, b_l3 = linear_params(pk[6], LINE2_OUT, 1)

    inputs = (rna_out, rna_mask_seq, rna_mask_graph, rna_seq_final, rna_graph_final,
              mol_out, mole_seq_last, mole_mask_seq, mole_mask_graph, mole_graph_final)
    params = (w_rna1, b_rna1, w_rna2, b_rna2,
              w_mol1, b_mol1, w_mol2, b_mol2,
              w_l1, b_l1, w_l2, b_l2, w_l3, b_l3)

    out = jax.block_until_ready(deeprsma_head(inputs, params))

    # ---- structurally faithful reference of the PyTorch forward (same bf16
    #      quantization of the big tensors / weights as the kernel path) ---------
    q = lambda a: a.astype(jnp.bfloat16).astype(jnp.float32)

    def mm(mask, x, length):
        return jnp.einsum("bl,blh->bh", mask, x) / float(length)

    qr, qm, qs = q(rna_out), q(mol_out), q(mole_seq_last)
    rs = (mm(rna_mask_seq, qr[:, :RNA_SEQ_LEN], RNA_SEQ_LEN) + rna_seq_final) / 2
    rg = (mm(rna_mask_graph, qr[:, RNA_SEQ_LEN:], RNA_GRAPH_LEN) + rna_graph_final) / 2
    rc = (rs + rg) / 2
    rc = jnp.maximum(rc @ q(w_rna1) + b_rna1, 0.0) @ q(w_rna2) + b_rna2
    msf = mm(mole_mask_seq, qs, MOL_SEQ_LEN)
    ms = (mm(mole_mask_seq, qm[:, :MOL_SEQ_LEN], MOL_SEQ_LEN) + msf) / 2
    mg = (mm(mole_mask_graph, qm[:, MOL_SEQ_LEN:], MOL_GRAPH_PAD) + mole_graph_final) / 2
    mc = (ms + mg) / 2
    mc = jnp.maximum(mc @ q(w_mol1) + b_mol1, 0.0) @ q(w_mol2) + b_mol2
    f = jnp.concatenate([rc, mc], axis=1)
    f = jnp.maximum(f @ q(w_l1) + b_l1, 0.0)
    f = jnp.maximum(f @ q(w_l2) + b_l2, 0.0)
    ref = f @ w_l3 + b_l3

    if not np.allclose(np.asarray(out), np.asarray(ref), rtol=2e-2, atol=2e-2):
        raise AssertionError(f"mismatch: kernel={np.asarray(out)} ref={np.asarray(ref)}")

    assert out.shape == (BATCH, 1)
    print("KERNEL_OK")
</pallas_src>

<mosaic_0001>
module attributes {stable_mosaic.version = 11 : i64} {
  func.func @deeprsma_head_kernel(%arg0: memref<4x576x128xbf16, #tpu.memory_space<vmem>>, %arg1: memref<4x1x576xbf16, #tpu.memory_space<vmem>>, %arg2: memref<8x128xf32, #tpu.memory_space<vmem>>, %arg3: memref<4x1024xf32, #tpu.memory_space<vmem>>, %arg4: memref<128x1024xbf16, #tpu.memory_space<vmem>>, %arg5: memref<1024x128xbf16, #tpu.memory_space<vmem>>, %arg6: memref<256x1024xbf16, #tpu.memory_space<vmem>>, %arg7: memref<1024x512xbf16, #tpu.memory_space<vmem>>, %arg8: memref<2x1xf32, #tpu.memory_space<vmem>>) attributes {dimension_semantics = [], scalar_prefetch = 0 : i64, scratch_operands = 0 : i64, tpu.core_type = #tpu.core_type<tc>} {
    %c0 = arith.constant 0 : index
    %c0_0 = arith.constant 0 : index
    %c0_1 = arith.constant 0 : index
    %0 = vector.load %arg1[%c0, %c0_0, %c0_1] : memref<4x1x576xbf16, #tpu.memory_space<vmem>>, vector<4x1x576xbf16>
    %c0_2 = arith.constant 0 : index
    %c0_3 = arith.constant 0 : index
    %c0_4 = arith.constant 0 : index
    %1 = vector.load %arg0[%c0_2, %c0_3, %c0_4] : memref<4x576x128xbf16, #tpu.memory_space<vmem>>, vector<4x576x128xbf16>
    "tpu.trace_start"() <{level = 10 : i32, message = "bml,blh->bmh"}> : () -> ()
    %cst = arith.constant dense<0.000000e+00> : vector<4x1x128xf32>
    %2 = tpu.matmul %0, %1, %cst {dimension_numbers = #tpu.dot_dimension_numbers<[2], [1], [1], [2], [0, 0, 0, 1, 1, 2], [0], [0]>} : vector<4x1x576xbf16>, vector<4x576x128xbf16>, vector<4x1x128xf32> -> vector<4x1x128xf32>
    "tpu.trace_stop"() : () -> ()
    %3 = vector.shape_cast %2 : vector<4x1x128xf32> to vector<4x128xf32>
    %c0_5 = arith.constant 0 : index
    %c0_6 = arith.constant 0 : index
    %4 = vector.load %arg2[%c0_5, %c0_6] : memref<8x128xf32, #tpu.memory_space<vmem>>, vector<4x128xf32>
    %5 = arith.addf %3, %4 : vector<4x128xf32>
    %6 = arith.truncf %5 : vector<4x128xf32> to vector<4x128xbf16>
    %c0_7 = arith.constant 0 : index
    %c0_8 = arith.constant 0 : index
    %7 = vector.load %arg4[%c0_7, %c0_8] : memref<128x1024xbf16, #tpu.memory_space<vmem>>, vector<128x1024xbf16>
    %cst_9 = arith.constant dense<0.000000e+00> : vector<4x1024xf32>
    %8 = tpu.matmul %6, %7, %cst_9 {dimension_numbers = #tpu.dot_dimension_numbers<[1], [0], [0], [1], [0, 0, 1, 1], [], []>} : vector<4x128xbf16>, vector<128x1024xbf16>, vector<4x1024xf32> -> vector<4x1024xf32>
    %c0_10 = arith.constant 0 : index
    %c0_11 = arith.constant 0 : index
    %9 = vector.load %arg3[%c0_10, %c0_11] : memref<4x1024xf32, #tpu.memory_space<vmem>>, vector<1x1024xf32>
    %10 = vector.broadcast %9 : vector<1x1024xf32> to vector<4x1024xf32>
    %11 = arith.addf %8, %10 : vector<4x1024xf32>
    %cst_12 = arith.constant 0.000000e+00 : f32
    %12 = vector.broadcast %cst_12 : f32 to vector<4x1024xf32>
    %13 = arith.maximumf %11, %12 : vector<4x1024xf32>
    %14 = tpu.iota {dimensions = array<i32: 0>} : vector<4x1024xi32>
    %15 = tpu.iota {dimensions = array<i32: 1>} : vector<4x1024xi32>
    %c2_i32 = arith.constant 2 : i32
    %16 = vector.broadcast %c2_i32 : i32 to vector<4x1024xi32>
    %17 = arith.cmpi slt, %14, %16 : vector<4x1024xi32>
    %c512_i32 = arith.constant 512 : i32
    %18 = vector.broadcast %c512_i32 : i32 to vector<4x1024xi32>
    %19 = arith.cmpi slt, %15, %18 : vector<4x1024xi32>
    %20 = arith.andi %17, %19 : vector<4x1024xi1>
    %cst_13 = arith.constant dense<true> : vector<4x1024xi1>
    %21 = arith.xori %17, %cst_13 : vector<4x1024xi1>
    %cst_14 = arith.constant dense<true> : vector<4x1024xi1>
    %22 = arith.xori %19, %cst_14 : vector<4x1024xi1>
    %23 = arith.andi %21, %22 : vector<4x1024xi1>
    %24 = arith.ori %20, %23 : vector<4x1024xi1>
    %cst_15 = arith.constant 0.000000e+00 : f32
    %25 = vector.broadcast %cst_15 : f32 to vector<4x1024xf32>
    %26 = arith.select %24, %13, %25 : vector<4x1024xi1>, vector<4x1024xf32>
    %27 = arith.truncf %26 : vector<4x1024xf32> to vector<4x1024xbf16>
    %c0_16 = arith.constant 0 : index
    %c0_17 = arith.constant 0 : index
    %28 = vector.load %arg5[%c0_16, %c0_17] : memref<1024x128xbf16, #tpu.memory_space<vmem>>, vector<1024x128xbf16>
    %cst_18 = arith.constant dense<0.000000e+00> : vector<4x128xf32>
    %29 = tpu.matmul %27, %28, %cst_18 {dimension_numbers = #tpu.dot_dimension_numbers<[1], [0], [0], [1], [0, 0, 1, 1], [], []>} : vector<4x1024xbf16>, vector<1024x128xbf16>, vector<4x128xf32> -> vector<4x128xf32>
    %c4 = arith.constant 4 : index
    %c0_19 = arith.constant 0 : index
    %30 = vector.load %arg2[%c4, %c0_19] : memref<8x128xf32, #tpu.memory_space<vmem>>, vector<4x128xf32>
    %31 = arith.addf %29, %30 : vector<4x128xf32>
    %32 = vector.extract_strided_slice %31 {offsets = [0, 0], sizes = [2, 128], strides = [1, 1]} : vector<4x128xf32> to vector<2x128xf32>
    %33 = arith.truncf %32 : vector<2x128xf32> to vector<2x128xbf16>
    %34 = vector.extract_strided_slice %31 {offsets = [2, 0], sizes = [2, 128], strides = [1, 1]} : vector<4x128xf32> to vector<2x128xf32>
    %35 = arith.truncf %34 : vector<2x128xf32> to vector<2x128xbf16>
    %c0_20 = arith.constant 0 : index
    %c0_21 = arith.constant 0 : index
    %36 = vector.load %arg6[%c0_20, %c0_21] : memref<256x1024xbf16, #tpu.memory_space<vmem>>, vector<128x1024xbf16>
    %cst_22 = arith.constant dense<0.000000e+00> : vector<2x1024xf32>
    %37 = tpu.matmul %33, %36, %cst_22 {dimension_numbers = #tpu.dot_dimension_numbers<[1], [0], [0], [1], [0, 0, 1, 1], [], []>} : vector<2x128xbf16>, vector<128x1024xbf16>, vector<2x1024xf32> -> vector<2x1024xf32>
    %c128 = arith.constant 128 : index
    %c0_23 = arith.constant 0 : index
    %38 = vector.load %arg6[%c128, %c0_23] : memref<256x1024xbf16, #tpu.memory_space<vmem>>, vector<128x1024xbf16>
    %cst_24 = arith.constant dense<0.000000e+00> : vector<2x1024xf32>
    %39 = tpu.matmul %35, %38, %cst_24 {dimension_numbers = #tpu.dot_dimension_numbers<[1], [0], [0], [1], [0, 0, 1, 1], [], []>} : vector<2x128xbf16>, vector<128x1024xbf16>, vector<2x1024xf32> -> vector<2x1024xf32>
    %40 = arith.addf %37, %39 : vector<2x1024xf32>
    %c1 = arith.constant 1 : index
    %c0_25 = arith.constant 0 : index
    %41 = vector.load %arg3[%c1, %c0_25] : memref<4x1024xf32, #tpu.memory_space<vmem>>, vector<1x1024xf32>
    %42 = vector.broadcast %41 : vector<1x1024xf32> to vector<2x1024xf32>
    %43 = arith.addf %40, %42 : vector<2x1024xf32>
    %cst_26 = arith.constant 0.000000e+00 : f32
    %44 = vector.broadcast %cst_26 : f32 to vector<2x1024xf32>
    %45 = arith.maximumf %43, %44 : vector<2x1024xf32>
    %46 = arith.truncf %45 : vector<2x1024xf32> to vector<2x1024xbf16>
    %c0_27 = arith.constant 0 : index
    %c0_28 = arith.constant 0 : index
    %47 = vector.load %arg7[%c0_27, %c0_28] : memref<1024x512xbf16, #tpu.memory_space<vmem>>, vector<1024x512xbf16>
    %cst_29 = arith.constant dense<0.000000e+00> : vector<2x512xf32>
    %48 = tpu.matmul %46, %47, %cst_29 {dimension_numbers = #tpu.dot_dimension_numbers<[1], [0], [0], [1], [0, 0, 1, 1], [], []>} : vector<2x1024xbf16>, vector<1024x512xbf16>, vector<2x512xf32> -> vector<2x512xf32>
    %c2 = arith.constant 2 : index
    %c0_30 = arith.constant 0 : index
    %49 = vector.load %arg3[%c2, %c0_30] : memref<4x1024xf32, #tpu.memory_space<vmem>>, vector<1x512xf32>
    %50 = vector.broadcast %49 : vector<1x512xf32> to vector<2x512xf32>
    %51 = arith.addf %48, %50 : vector<2x512xf32>
    %cst_31 = arith.constant 0.000000e+00 : f32
    %52 = vector.broadcast %cst_31 : f32 to vector<2x512xf32>
    %53 = arith.maximumf %51, %52 : vector<2x512xf32>
    %c2_32 = arith.constant 2 : index
    %c512 = arith.constant 512 : index
    %54 = vector.load %arg3[%c2_32, %c512] : memref<4x1024xf32, #tpu.memory_space<vmem>>, vector<1x512xf32>
    %c3 = arith.constant 3 : index
    %c0_33 = arith.constant 0 : index
    %55 = vector.load %arg3[%c3, %c0_33] : memref<4x1024xf32, #tpu.memory_space<vmem>>, vector<1x1xf32>
    %56 = vector.broadcast %54 : vector<1x512xf32> to vector<2x512xf32>
    %57 = arith.mulf %53, %56 : vector<2x512xf32>
    %cst_34 = arith.constant dense<0.000000e+00> : vector<2xf32>
    %58 = vector.multi_reduction <add>, %57, %cst_34 [1] : vector<2x512xf32> to vector<2xf32>
    %59 = vector.shape_cast %58 : vector<2xf32> to vector<2x1xf32>
    %60 = vector.broadcast %55 : vector<1x1xf32> to vector<2x1xf32>
    %61 = arith.addf %59, %60 : vector<2x1xf32>
    %c0_35 = arith.constant 0 : index
    %c0_36 = arith.constant 0 : index
    %62 = vector.load %arg8[%c0_35, %c0_36] : memref<2x1xf32, #tpu.memory_space<vmem>>, vector<2x1xf32>
    tpu.vector_store %arg8[%c0_35, %c0_36], %61 {strides = array<i32>} : memref<2x1xf32, #tpu.memory_space<vmem>>, vector<2x1xf32>,
    return
  }
}

</mosaic_0001>

<bundles_post_ra>
// kernel: tpu_custom_call.1
= control target key start
LH: loop header
LB: loop body
LE: loop exit
PB: predicated region body
PF: predicated region fallthrough
CT: control target
= control target key end

     0   :  { %13 = vsyncpa [#allocation3], 0  ;;  %s8549_s0 = inlined_call_operand.hbm [shape: bf16[4,576,128], index: 0, kind: input, shape index: {}]   ;;  %s8550_s1 = inlined_call_operand.vmem [shape: bf16[4,1,576], index: 1, kind: input, shape index: {}]   ;;  %s8551_s2 = inlined_call_operand.vmem [shape: f32[8,128], index: 2, kind: input, shape index: {}]   ;;  %s8552_s3 = inlined_call_operand.vmem [shape: f32[4,1024], index: 3, kind: input, shape index: {}]   ;;  %s8553_s4 = inlined_call_operand.hbm [shape: bf16[128,1024], index: 4, kind: input, shape index: {}]   ;;  %s8554_s5 = inlined_call_operand.hbm [shape: bf16[1024,128], index: 5, kind: input, shape index: {}]   ;;  %s8555_s6 = inlined_call_operand.hbm [shape: bf16[256,1024], index: 6, kind: input, shape index: {}]   ;;  %s8556_s7 = inlined_call_operand.hbm [shape: bf16[1024,512], index: 7, kind: input, shape index: {}]   ;;  %s8557_s8 = inlined_call_operand.vmem [shape: f32[2,1], index: 8, kind: output, shape index: {}]  }
   0x1   :  { %14 = vsyncpa [#allocation5], 0 }
   0x2   :  { %15 = vsyncpa [#allocation8], 0  ;;  %s8185_s27 = smov [#allocation4]   ;;  %s8069_s9 = scalar_lea.hbm %s8553_s4, 8192 }
   0x3   :  { %s39_s28 = sshll.u32 %s8185_s27, 4  ;;  %p8070_p0 = scmp.ne.s32.totalorder %s8553_s4, %s8069_s9  ;;  %s40_s28 = int_to_ptr.vmem [resolvable:$true] %s39_s28 }
   0x4   :  { %p8073_p1 = scmp.lt.u32.totalorder %s8069_s9, %s8553_s4 }
   0x6   :  { %p8075_p2 = pnand %p8073_p1, %p8070_p0 }
   0x8   :  { %8078 = shalt.err (!%p8075_p2)
}
   0x9   :  { %s8079_s14 = scalar_lea.vmem %s40_s28, 8192  ;;  %p8084_p4 = scmp.lt.s32.totalorder %s40_s28, %s40_s28 }
   0xa   :  { %p8080_p3 = scmp.ne.s32.totalorder %s40_s28, %s8079_s14  ;;  %p8085_p5 = scmp.lt.s32.totalorder %s8079_s14, %s8079_s14 }
   0xc   :  { %p8086_p6 = por %p8085_p5, %p8084_p4 }
   0xe   :  { %p8087_p7 = pnand %p8086_p6, %p8080_p3 }
  0x10   :  { %8090 = shalt.err (!%p8087_p7)
}
  0x11   :  { %s8186_s15 = smov 512   ;;  %s8187_s16 = smov 32  }
  0x12   :  { %45 = dma.hbm_to_vmem [thread:$0]  %s8553_s4, 8192, %s40_s28, [#allocation5], %s8186_s15, %s8186_s15, %s8187_s16  }
  0x13   :  { %s8188_s19 = smov [#allocation7]   ;;  %s8189_s21 = smov [#allocation2]  }
  0x14   :  { %s63_s20 = sshll.u32 %s8188_s19, 4  ;;  %s21_s22 = sshll.u32 %s8189_s21, 4  ;;  %s64_s20 = int_to_ptr.vmem [resolvable:$true] %s63_s20  ;;  %s22_s22 = int_to_ptr.vmem [resolvable:$true] %s21_s22 }
  0x15   :  { %s8091_s25 = scalar_lea.hbm %s8555_s6, 16384 }
  0x16   :  { %p8092_p8 = scmp.ne.s32.totalorder %s8555_s6, %s8091_s25  ;;  %p8095_p9 = scmp.lt.u32.totalorder %s8091_s25, %s8555_s6 }
  0x18   :  { %p8097_p10 = pnand %p8095_p9, %p8092_p8 }
  0x1a   :  { %8100 = shalt.err (!%p8097_p10)
}
  0x1b   :  { %s8101_s4 = scalar_lea.vmem %s64_s20, 16384  ;;  %p8106_p12 = scmp.lt.s32.totalorder %s64_s20, %s64_s20 }
  0x1c   :  { %p8102_p11 = scmp.ne.s32.totalorder %s64_s20, %s8101_s4  ;;  %p8107_p13 = scmp.lt.s32.totalorder %s8101_s4, %s8101_s4 }
  0x1e   :  { %p8108_p0 = por %p8107_p13, %p8106_p12 }
  0x20   :  { %p8109_p1 = pnand %p8108_p0, %p8102_p11 }
  0x22   :  { %8112 = shalt.err (!%p8109_p1)
}
  0x23   :  { %69 = dma.hbm_to_vmem [thread:$0]  %s8555_s6, 16384, %s64_s20, [#allocation8], %s8186_s15, %s8186_s15, %s8187_s16  }
  0x24   :  { %s8113_s12 = scalar_lea.hbm %s8549_s0, 18432 }
  0x25   :  { %p8114_p2 = scmp.ne.s32.totalorder %s8549_s0, %s8113_s12  ;;  %p8117_p3 = scmp.lt.u32.totalorder %s8113_s12, %s8549_s0 }
  0x27   :  { %p8119_p4 = pnand %p8117_p3, %p8114_p2 }
  0x29   :  { %8122 = shalt.err (!%p8119_p4)
}
  0x2a   :  { %s8123_s19 = scalar_lea.vmem %s22_s22, 18432  ;;  %p8128_p6 = scmp.lt.s32.totalorder %s22_s22, %s22_s22 }
  0x2b   :  { %p8124_p5 = scmp.ne.s32.totalorder %s22_s22, %s8123_s19  ;;  %p8129_p7 = scmp.lt.s32.totalorder %s8123_s19, %s8123_s19 }
  0x2d   :  { %p8130_p8 = por %p8129_p7, %p8128_p6 }
  0x2f   :  { %p8131_p9 = pnand %p8130_p8, %p8124_p5 }
  0x31   :  { %8134 = shalt.err (!%p8131_p9)
}
  0x32   :  { %s8190_s6 = smov 64   ;;  %s8191_s15 = smov 4  }
  0x33   :  { %27 = dma.hbm_to_vmem [thread:$0]  %s8549_s0, 18432, %s22_s22, [#allocation3], %s8190_s6, %s8190_s6, %s8191_s15  }
  0x34   :  { %s8192_s21 = smov [#allocation6]   ;;  %s8193_s24 = smov [#allocation9]  }
  0x35   :  { %s51_s23 = sshll.u32 %s8192_s21, 4  ;;  %s75_s25 = sshll.u32 %s8193_s24, 4  ;;  %s52_s23 = int_to_ptr.vmem [resolvable:$true] %s51_s23  ;;  %s76_s25 = int_to_ptr.vmem [resolvable:$true] %s75_s25 }
  0x36   :  { %s8135_s29 = scalar_lea.hbm %s8554_s5, 8192 }
  0x37   :  { %p8136_p10 = scmp.ne.s32.totalorder %s8554_s5, %s8135_s29  ;;  %p8139_p11 = scmp.lt.u32.totalorder %s8135_s29, %s8554_s5 }
  0x39   :  { %p8141_p12 = pnand %p8139_p11, %p8136_p10 }
  0x3b   :  { %8144 = shalt.err (!%p8141_p12)
}
  0x3c   :  { %s8145_s0 = scalar_lea.vmem %s52_s23, 8192  ;;  %p8150_p0 = scmp.lt.s32.totalorder %s52_s23, %s52_s23 }
  0x3d   :  { %p8146_p13 = scmp.ne.s32.totalorder %s52_s23, %s8145_s0  ;;  %p8151_p1 = scmp.lt.s32.totalorder %s8145_s0, %s8145_s0 }
  0x3f   :  { %p8152_p2 = por %p8151_p1, %p8150_p0 }
  0x41   :  { %p8153_p3 = pnand %p8152_p2, %p8146_p13 }
  0x43   :  { %8156 = shalt.err (!%p8153_p3)
}
  0x44   :  { %57 = dma.hbm_to_vmem [thread:$0]  %s8554_s5, 8192, %s52_s23, [#allocation5], %s8190_s6, %s8190_s6, %s8191_s15  }
  0x45   :  { %s8157_s13 = scalar_lea.hbm %s8556_s7, 32768 }
  0x46   :  { %p8158_p4 = scmp.ne.s32.totalorder %s8556_s7, %s8157_s13  ;;  %p8161_p5 = scmp.lt.u32.totalorder %s8157_s13, %s8556_s7 }
  0x48   :  { %p8163_p6 = pnand %p8161_p5, %p8158_p4 }
  0x4a   :  { %8166 = shalt.err (!%p8163_p6)
}
  0x4b   :  { %s8167_s16 = scalar_lea.vmem %s76_s25, 32768  ;;  %p8172_p8 = scmp.lt.s32.totalorder %s76_s25, %s76_s25 }
  0x4c   :  { %p8168_p7 = scmp.ne.s32.totalorder %s76_s25, %s8167_s16  ;;  %p8173_p9 = scmp.lt.s32.totalorder %s8167_s16, %s8167_s16 }
  0x4e   :  { %p8174_p10 = por %p8173_p9, %p8172_p8 }
  0x50   :  { %p8175_p11 = pnand %p8174_p10, %p8168_p7 }
  0x52   :  { %8178 = shalt.err (!%p8175_p11)
}
  0x53   :  { %s8194_s5 = smov 256   ;;  %s8195_s6 = smov 16  }
  0x54   :  { %81 = dma.hbm_to_vmem [thread:$0]  %s8556_s7, 32768, %s76_s25, [#allocation8], %s8194_s5, %s8194_s5, %s8195_s6  }
  0x55   :  { %8179 = dma.done.wait [#allocation3], 18432  }
  0x56   :  { %8180 = vsyncadd [#allocation3], 4294948864 }
  0x57   :  { %8181 = dma.done.wait [#allocation5], 16384  }
  0x58   :  { %8182 = vsyncadd [#allocation5], 4294950912 }
  0x59   :  { %8183 = dma.done.wait [#allocation8], 49152  }
  0x5a   :  { %8184 = vsyncadd [#allocation8], 4294918144  ;;  %v7473_v0 = vld [vmem:[#allocation2 + $0x40] sm:$0xff]   ;;  %v7477_v4 = vld [vmem:[#allocation2 + $0x48] sm:$0xff]   ;;  %v8196_v22 = vmov 1966171168   ;;  %v395_v24 = vlaneseq }
  0x5b   :  { %v7474_v1 = vld [vmem:[#allocation2 + $0xc0] sm:$0xff]   ;;  %7097 = vmatprep.subr.bf16.mxu0 %v7473_v0  ;;  %v7478_v5 = vld [vmem:[#allocation2 + $0xc8] sm:$0xff]   ;;  %v7481_v8 = vld [vmem:[#allocation2 + $0x50] sm:$0xff]   ;;  %v393_v23 = vunpack.c.l.s4 %v8196_v22  ;;  %v8197_v40 = vmov 0.0   ;;  %vm8198_vm0 = vmmov 0   ;;  %vm650_vm1 = vcmask 523264  }
  0x5c   :  { %v7475_v2 = vld [vmem:[#allocation2] sm:$0xff]   ;;  %7119 = vmatprep.subr.bf16.mxu1 %v7474_v1  ;;  %v7479_v6 = vld [vmem:[#allocation2 + $0x8] sm:$0xff]   ;;  %v7482_v9 = vld [vmem:[#allocation2 + $0xd0] sm:$0xff]   ;;  %v8306_v30 = vshrl.u32 %v395_v24, 7  ;;  %vm2055_vm2 = vcmask 1041409   ;;  %vm2058_vm3 = vcmask 1042434  }
  0x5d   :  { %v7476_v3 = vld [vmem:[#allocation2 + $0x80] sm:$0xff]   ;;  %7098 = vmatpush3.bf16.msra.mxu0 %v7475_v2  ;;  %v7480_v7 = vld [vmem:[#allocation2 + $0x88] sm:$0xff]   ;;  %v7483_v10 = vld [vmem:[#allocation2 + $0x10] sm:$0xff]   ;;  %v394_v29 = vunpack.c.0.s8 %v393_v23  ;;  %vm2061_vm4 = vcmask 1043459   ;;  %vm8200_vm7 = vmmov 1   ;;  %vm6385_vm10 = vcmask 1041408  }
  0x5e   :  { %7120 = vmatpush3.bf16.msra.mxu1 %v7476_v3  ;;  %7099 = vmatprep.subr.bf16.mxu0 %v7477_v4  ;;  %v7484_v11 = vld [vmem:[#allocation2 + $0x90] sm:$0xff]   ;;  %v7485_v12 = vld [vmem:[#allocation2 + $0x58] sm:$0xff]   ;;  %v7489_v16 = vld [vmem:[#allocation2 + $0x60] sm:$0xff]   ;;  %vm2568_vm5 = vcmp.lt.s32.totalorder %v8306_v30, 2  ;;  %vm6400_vm11 = vcmask 1024  }
  0x5f   :  { %7121 = vmatprep.subr.bf16.mxu1 %v7478_v5  ;;  %v7486_v13 = vld [vmem:[#allocation2 + $0xd8] sm:$0xff]   ;;  %v7490_v17 = vld [vmem:[#allocation2 + $0xe0] sm:$0xff]   ;;  %v7493_v20 = vld [vmem:[#allocation2 + $0x68] sm:$0xff]   ;;  %v8309_v35 = vsub.s32 %v394_v29, %v8306_v30 }
  0x60   :  { %v7487_v14 = vld [vmem:[#allocation2 + $0x18] sm:$0xff]   ;;  %v7491_v18 = vld [vmem:[#allocation2 + $0x20] sm:$0xff]   ;;  %v7494_v21 = vld [vmem:[#allocation2 + $0xe8] sm:$0xff]  }
  0x61   :  { %7100 = vmatpush3.bf16.msra.mxu0 %v7479_v6  ;;  %v7488_v15 = vld [vmem:[#allocation2 + $0x98] sm:$0xff]   ;;  %v7492_v19 = vld [vmem:[#allocation2 + $0xa0] sm:$0xff]   ;;  %v7495_v25 = vld [vmem:[#allocation2 + $0x28] sm:$0xff]  }
  0x62   :  { %7122 = vmatpush3.bf16.msra.mxu1 %v7480_v7  ;;  %7101 = vmatprep.subr.bf16.mxu0 %v7481_v8  ;;  %v7496_v26 = vld [vmem:[#allocation2 + $0xa8] sm:$0xff]   ;;  %v7497_v27 = vld [vmem:[#allocation2 + $0x70] sm:$0xff]   ;;  %v7501_v33 = vld [vmem:[#allocation2 + $0x78] sm:$0xff]  }
  0x63   :  { %7123 = vmatprep.subr.bf16.mxu1 %v7482_v9  ;;  %v7498_v28 = vld [vmem:[#allocation2 + $0xf0] sm:$0xff]   ;;  %v7502_v34 = vld [vmem:[#allocation2 + $0xf8] sm:$0xff]   ;;  %v98_v38 = vld [vmem:[%s8550_s1] sm:$0x1f] }
  0x64   :  { %v7499_v31 = vld [vmem:[#allocation2 + $0x30] sm:$0xff]   ;;  %v7503_v36 = vld [vmem:[#allocation2 + $0x38] sm:$0xff]   ;;  %v398_v39 = vrot.slane %v98_v38, %v8309_v35  ;;  %v7506_v41 = vld [vmem:[#allocation2 + $0x160] sm:$0xff]   ;;  %v391_v52 = vcombine.high %v98_v38, %v98_v38 }
  0x65   :  { %7102 = vmatpush3.bf16.msra.mxu0 %v7483_v10  ;;  %v7500_v32 = vld [vmem:[#allocation2 + $0xb0] sm:$0xff]   ;;  %v7504_v37 = vld [vmem:[#allocation2 + $0xb8] sm:$0xff]   ;;  %v7507_v45 = vld [vmem:[#allocation2 + $0x100] sm:$0xff]  }
  0x66   :  { %7124 = vmatpush3.bf16.msra.mxu1 %v7484_v11  ;;  %7103 = vmatprep.subr.bf16.mxu0 %v7485_v12  ;;  %v406_v42 = vcombine.high %v398_v39, %v398_v39  ;;  %v413_v43 = vrot.slane %v398_v39, %v8309_v35  ;;  %v7508_v48 = vld [vmem:[#allocation2 + $0x120] sm:$0xff]   ;;  %v7509_v49 = vld [vmem:[#allocation2 + $0x168] sm:$0xff]   ;;  %v7512_v53 = vld [vmem:[#allocation2 + $0x170] sm:$0xff]   ;;  %v405_v56 = vrot.slane %v391_v52, %v8309_v35 }
  0x67   :  { %7125 = vmatprep.subr.bf16.mxu1 %v7486_v13  ;;  %v7510_v50 = vld [vmem:[#allocation2 + $0x108] sm:$0xff]   ;;  %v7513_v54 = vld [vmem:[#allocation2 + $0x110] sm:$0xff]   ;;  %v7515_v57 = vld [vmem:[#allocation2 + $0x178] sm:$0xff]  }
  0x68   :  { %v427_v44 = vrot.slane %v406_v42, %v8309_v35  ;;  %v428_v46 = vcombine.high %v413_v43, %v413_v43  ;;  %v7511_v51 = vld [vmem:[#allocation2 + $0x128] sm:$0xff]   ;;  %v7514_v55 = vld [vmem:[#allocation2 + $0x130] sm:$0xff]   ;;  %v7516_v58 = vld [vmem:[#allocation2 + $0x118] sm:$0xff]   ;;  %v420_v61 = vrot.slane %v405_v56, %v8309_v35 }
  0x69   :  { %7104 = vmatpush3.bf16.msra.mxu0 %v7487_v14  ;;  %v7519_v59 = vld [vmem:[#allocation2 + $0x1e0] sm:$0xff]   ;;  %v7517_v60 = vld [vmem:[#allocation2 + $0x138] sm:$0xff]   ;;  %v7523_v0 = vld [vmem:[#allocation2 + $0x1e8] sm:$0xff]  }
  0x6a   :  { %7126 = vmatpush3.bf16.msra.mxu1 %v7488_v15  ;;  %7105 = vmatprep.subr.bf16.mxu0 %v7489_v16  ;;  %v429_v47 = vcombine.high %v427_v44, %v427_v44  ;;  %v7518_v62 = vld [vmem:[#allocation2 + $0x180] sm:$0xff]   ;;  %v7522_v2 = vld [vmem:[#allocation2 + $0x188] sm:$0xff]   ;;  %v7527_v4 = vld [vmem:[#allocation2 + $0x1f0] sm:$0xff]  }
  0x6b   :  { %7127 = vmatprep.subr.bf16.mxu1 %v7490_v17  ;;  %686 = vmatprep.mubr.bf16.mxu0 %v427_v44  ;;  %v7521_v63 = vld [vmem:[#allocation2 + $0x1a0] sm:$0xff]   ;;  %v7525_v3 = vld [vmem:[#allocation2 + $0x1a8] sm:$0xff]   ;;  %v7526_v6 = vld [vmem:[#allocation2 + $0x190] sm:$0xff]  }
  0x6c   :  { %726 = vmatprep.mubr.bf16.mxu1 %v429_v47  ;;  %v7520_v1 = vld [vmem:[#allocation2 + $0x140] sm:$0xff]   ;;  %v7524_v5 = vld [vmem:[#allocation2 + $0x148] sm:$0xff]   ;;  %v7529_v8 = vld [vmem:[#allocation2 + $0x1b0] sm:$0xff]  }
  0x6d   :  { %7106 = vmatpush3.bf16.msra.mxu0 %v7491_v18  ;;  %v99_v7 = vld [vmem:[%s8550_s1 + $0x5] sm:$0x1f]  ;;  %v7531_v10 = vld [vmem:[#allocation2 + $0x1f8] sm:$0xff]   ;;  %v7528_v11 = vld [vmem:[#allocation2 + $0x150] sm:$0xff]  }
  0x6e   :  { %7128 = vmatpush3.bf16.msra.mxu1 %v7492_v19  ;;  %7107 = vmatprep.subr.bf16.mxu0 %v7493_v20  ;;  %v782_v9 = vrot.slane %v99_v7, %v8309_v35  ;;  %v7530_v13 = vld [vmem:[#allocation2 + $0x198] sm:$0xff]   ;;  %v7535_v16 = vld [vmem:[#allocation2 + $0x200] sm:$0xff]   ;;  %v7539_v23 = vld [vmem:[#allocation2 + $0x1c8] sm:$0xff]  }
  0x6f   :  { %7129 = vmatprep.subr.bf16.mxu1 %v7494_v21  ;;  %v7533_v14 = vld [vmem:[#allocation2 + $0x1b8] sm:$0xff]   ;;  %v7536_v19 = vld [vmem:[#allocation2 + $0x1c0] sm:$0xff]   ;;  %v7538_v21 = vld [vmem:[#allocation2 + $0x208] sm:$0xff]  }
  0x70   :  { %v790_v12 = vcombine.high %v782_v9, %v782_v9  ;;  %v7532_v17 = vld [vmem:[#allocation2 + $0x158] sm:$0xff]   ;;  %v797_v20 = vrot.slane %v782_v9, %v8309_v35  ;;  %v7537_v22 = vld [vmem:[#allocation2 + $0x220] sm:$0xff]   ;;  %v7541_v24 = vld [vmem:[#allocation2 + $0x210] sm:$0xff]  }
  0x71   :  { %7108 = vmatpush3.bf16.msra.mxu0 %v7495_v25  ;;  %v7540_v25 = vld [vmem:[#allocation2 + $0x228] sm:$0xff]   ;;  %v7543_v29 = vld [vmem:[#allocation2 + $0x230] sm:$0xff]   ;;  %v7549_v38 = vld [vmem:[#allocation2 + $0x240] sm:$0xff]  }
  0x72   :  { %7130 = vmatpush3.bf16.msra.mxu1 %v7496_v26  ;;  %7109 = vmatprep.subr.bf16.mxu0 %v7497_v27  ;;  %v811_v15 = vrot.slane %v790_v12, %v8309_v35  ;;  %v7542_v26 = vld [vmem:[#allocation2 + $0x1d0] sm:$0xff]   ;;  %v775_v27 = vcombine.high %v99_v7, %v99_v7  ;;  %v7550_v42 = vld [vmem:[#allocation2 + $0x2c0] sm:$0xff]   ;;  %v7553_v44 = vld [vmem:[#allocation2 + $0x248] sm:$0xff]  }
  0x73   :  { %7131 = vmatprep.subr.bf16.mxu1 %v7498_v28  ;;  %v7544_v28 = vld [vmem:[#allocation2 + $0x218] sm:$0xff]   ;;  %v7556_v47 = vld [vmem:[#allocation2 + $0x310] sm:$0xff]   ;;  %v7565_v56 = vld [vmem:[#allocation2 + $0x260] sm:$0xff]  }
  0x74   :  { %v813_v18 = vcombine.high %v811_v15, %v811_v15  ;;  %v7561_v52 = vld [vmem:[#allocation2 + $0x258] sm:$0xff]   ;;  %v7581_v12 = vld [vmem:[#allocation2 + $0x3a0] sm:$0xff]   ;;  %vm6685_vm6 = vmpackc.low %vm2568_vm5, %vm2568_vm5 }
  0x75   :  { %7110 = vmatpush3.bf16.msra.mxu0 %v7499_v31  ;;  %v7545_v31 = vld [vmem:[#allocation2 + $0x1d8] sm:$0xff]   ;;  %vm2585_vm8 = vmxor %vm2568_vm5, %vm8200_vm7 }
  0x76   :  { %7132 = vmatpush3.bf16.msra.mxu1 %v7500_v32  ;;  %7111 = vmatprep.subr.bf16.mxu0 %v7501_v33  ;;  %v789_v32 = vrot.slane %v775_v27, %v8309_v35  ;;  %v7547_v33 = vld [vmem:[#allocation2 + $0x280] sm:$0xff]   ;;  %v7577_v9 = vld [vmem:[#allocation2 + $0x278] sm:$0xff]   ;;  %vm6697_vm9 = vmpackc.low %vm2585_vm8, %vm2585_vm8 }
  0x77   :  { %7133 = vmatprep.subr.bf16.mxu1 %v7502_v34  ;;  %v7546_v34 = vld [vmem:[#allocation2 + $0x238] sm:$0xff]   ;;  %v7592_v27 = vld [vmem:[#allocation2 + $0x420] sm:$0xff]  }
  0x78   :  { %v804_v39 = vrot.slane %v789_v32, %v8309_v35  ;;  %v7595_v32 = vld [vmem:[#allocation2 + $0x380] sm:$0xff]  }
  0x79   :  { %7112 = vmatpush3.bf16.msra.mxu0 %v7503_v36  ;;  %v812_v36 = vcombine.high %v797_v20, %v797_v20 }
  0x7a   :  { %7134 = vmatpush3.bf16.msra.mxu1 %v7504_v37  ;;  %7381 = vmatprep.subr.bf16.mxu0 %v8197_v40  ;;  %v7548_v37 = vld [vmem:[#allocation2 + $0x300] sm:$0xff]  }
  0x7b   :  { %7146 = vmatprep.subr.bf16.mxu1 %v7506_v41  ;;  %v7551_v41 = vld [vmem:[#allocation2 + $0x288] sm:$0xff]  }
  0x7c   :  { %687 = vmatmul.mubr.bf16.vlgmr.msra.gmra.mrb[0].mxu0 %v413_v43  ;;  %v7552_v43 = vld [vmem:[#allocation2 + $0x308] sm:$0xff]  }
  0x7d   :  { %7382 = vmatpush3.bf16.msra.mxu0 %v7507_v45  ;;  %727 = vmatmul.mubr.bf16.vlgmr.msra.gmra.mrb[0].mxu1 %v428_v46  ;;  %v7555_v45 = vld [vmem:[#allocation2 + $0x290] sm:$0xff]   ;;  %v7554_v46 = vld [vmem:[#allocation2 + $0x2c8] sm:$0xff]  }
  0x7e   :  { %7383 = vmatprep.subr.bf16.mxu0 %v8197_v40  ;;  %7147 = vmatpush3.bf16.msra.mxu1 %v7508_v48  ;;  %v7557_v48 = vld [vmem:[#allocation2 + $0x250] sm:$0xff]  }
  0x7f   :  { %7389 = vmatprep.mubr.msk.bf16.mxu0 %vm8198_vm0, %v8197_v40  ;;  %7148 = vmatprep.subr.bf16.mxu1 %v7509_v49  ;;  %v7559_v49 = vld [vmem:[#allocation2 + $0x298] sm:$0xff]  }
  0x80   :  { %1069 = vmatprep.mubr.bf16.mxu1 %v811_v15  ;;  %v7582_v15 = vld [vmem:[#allocation2 + $0x360] sm:$0xff]  }
  0x81   :  { %7384 = vmatpush3.bf16.msra.mxu0 %v7510_v50  ;;  %v7558_v50 = vld [vmem:[#allocation2 + $0x2d0] sm:$0xff]  }
  0x82   :  { %7385 = vmatprep.subr.bf16.mxu0 %v8197_v40  ;;  %7149 = vmatpush3.bf16.msra.mxu1 %v7511_v51  ;;  %v7560_v51 = vld [vmem:[#allocation2 + $0x318] sm:$0xff]  }
  0x83   :  { %7150 = vmatprep.subr.bf16.mxu1 %v7512_v53  ;;  %v7563_v53 = vld [vmem:[#allocation2 + $0x2a0] sm:$0xff]  }
  0x85   :  { %7386 = vmatpush3.bf16.msra.mxu0 %v7513_v54  ;;  %v7562_v54 = vld [vmem:[#allocation2 + $0x2d8] sm:$0xff]  }
  0x86   :  { %7387 = vmatprep.subr.bf16.mxu0 %v8197_v40  ;;  %7151 = vmatpush3.bf16.msra.mxu1 %v7514_v55  ;;  %v7564_v55 = vld [vmem:[#allocation2 + $0x320] sm:$0xff]  }
  0x87   :  { %7152 = vmatprep.subr.bf16.mxu1 %v7515_v57  ;;  %v7567_v57 = vld [vmem:[#allocation2 + $0x2a8] sm:$0xff]  }
  0x89   :  { %7388 = vmatpush3.bf16.msra.mxu0 %v7516_v58  ;;  %v7566_v58 = vld [vmem:[#allocation2 + $0x2e0] sm:$0xff]  }
  0x8a   :  { %7168 = vmatprep.subr.bf16.mxu0 %v7519_v59  ;;  %7153 = vmatpush3.bf16.msra.mxu1 %v7517_v60  ;;  %v7568_v59 = vld [vmem:[#allocation2 + $0x328] sm:$0xff]  }
  0x8b   :  { %7154 = vmatprep.subr.bf16.mxu1 %v7518_v62  ;;  %v100_v60 = vld [vmem:[%s8550_s1 + $0xa] sm:$0x1f] }
  0x8c   :  { %7390 = vmatmul.mubr.msk.bf16.vlgmr.msra.gmra.mrb[4].mxu0 %vm650_vm1, %v420_v61  ;;  %v7569_v61 = vld [vmem:[#allocation2 + $0x268] sm:$0xff]   ;;  %v1165_v62 = vrot.slane %v100_v60, %v8309_v35 }
  0x8d   :  { %7169 = vmatpush3.bf16.msra.mxu0 %v7521_v63  ;;  %1109 = vmatprep.mubr.bf16.mxu0 %v813_v18  ;;  %v7571_v63 = vld [vmem:[#allocation2 + $0x2b0] sm:$0xff]   ;;  %v7585_v18 = vld [vmem:[#allocation2 + $0x368] sm:$0xff]  }
  0x8e   :  { %7170 = vmatprep.subr.bf16.mxu0 %v7523_v0  ;;  %7155 = vmatpush3.bf16.msra.mxu1 %v7520_v1  ;;  %v7570_v0 = vld [vmem:[#allocation2 + $0x2e8] sm:$0xff]   ;;  %v1173_v1 = vcombine.high %v1165_v62, %v1165_v62 }
  0x8f   :  { %7156 = vmatprep.subr.bf16.mxu1 %v7522_v2  ;;  %v7572_v2 = vld [vmem:[#allocation2 + $0x330] sm:$0xff]  }
  0x91   :  { %7171 = vmatpush3.bf16.msra.mxu0 %v7525_v3  ;;  %v7573_v3 = vld [vmem:[#allocation2 + $0x270] sm:$0xff]  }
  0x92   :  { %7172 = vmatprep.subr.bf16.mxu0 %v7527_v4  ;;  %7157 = vmatpush3.bf16.msra.mxu1 %v7524_v5  ;;  %v1194_v4 = vrot.slane %v1173_v1, %v8309_v35  ;;  %v7575_v5 = vld [vmem:[#allocation2 + $0x2b8] sm:$0xff]  }
  0x93   :  { %7158 = vmatprep.subr.bf16.mxu1 %v7526_v6  ;;  %v7574_v6 = vld [vmem:[#allocation2 + $0x2f0] sm:$0xff]   ;;  %v7620_v1 = vld [vmem:[#allocation2 + $0x478] sm:$0xff]  }
  0x94   :  { %v1196_v7 = vcombine.high %v1194_v4, %v1194_v4 }
  0x95   :  { %7173 = vmatpush3.bf16.msra.mxu0 %v7529_v8  ;;  %v7576_v8 = vld [vmem:[#allocation2 + $0x338] sm:$0xff]  }
  0x96   :  { %7174 = vmatprep.subr.bf16.mxu0 %v7531_v10  ;;  %7159 = vmatpush3.bf16.msra.mxu1 %v7528_v11  ;;  %v1180_v10 = vrot.slane %v1165_v62, %v8309_v35  ;;  %v7578_v11 = vld [vmem:[#allocation2 + $0x2f8] sm:$0xff]   ;;  %v7617_v62 = vld [vmem:[#allocation2 + $0x470] sm:$0xff]  }
  0x97   :  { %7160 = vmatprep.subr.bf16.mxu1 %v7530_v13  ;;  %v7580_v13 = vld [vmem:[#allocation2 + $0x340] sm:$0xff]  }
  0x99   :  { %7175 = vmatpush3.bf16.msra.mxu0 %v7533_v14  ;;  %v1195_v14 = vcombine.high %v1180_v10, %v1180_v10 }
  0x9a   :  { %7176 = vmatprep.subr.bf16.mxu0 %v7535_v16  ;;  %7161 = vmatpush3.bf16.msra.mxu1 %v7532_v17  ;;  %v7584_v16 = vld [vmem:[#allocation2 + $0x3a8] sm:$0xff]  }
  0x9b   :  { %7393 = vmatprep.subr.bf16.mxu1 %v8197_v40  ;;  %v7583_v17 = vld [vmem:[#allocation2 + $0x348] sm:$0xff]  }
  0x9d   :  { %7177 = vmatpush3.bf16.msra.mxu0 %v7536_v19  ;;  %1070 = vmatmul.mubr.bf16.vlgmr.msra.gmra.mrb[4].mxu1 %v797_v20  ;;  %v1158_v19 = vcombine.high %v100_v60, %v100_v60  ;;  %v7587_v20 = vld [vmem:[#allocation2 + $0x3b0] sm:$0xff]  }
  0x9e   :  { %7178 = vmatprep.subr.bf16.mxu0 %v7538_v21  ;;  %7394 = vmatpush3.bf16.msra.mxu1 %v7537_v22  ;;  %v7586_v21 = vld [vmem:[#allocation2 + $0x350] sm:$0xff]  }
  0x9f   :  { %7401 = vmatprep.mubr.msk.bf16.mxu1 %vm8198_vm0, %v8197_v40  ;;  %7395 = vmatprep.subr.bf16.mxu1 %v8197_v40  ;;  %v7588_v22 = vld [vmem:[#allocation2 + $0x370] sm:$0xff]  }
  0xa0   :  { %v7616_v60 = vld [vmem:[#allocation2 + $0x410] sm:$0xff]  }
  0xa1   :  { %7179 = vmatpush3.bf16.msra.mxu0 %v7539_v23  ;;  %v7589_v23 = vld [vmem:[#allocation2 + $0x358] sm:$0xff]  }
  0xa2   :  { %7180 = vmatprep.subr.bf16.mxu0 %v7541_v24  ;;  %7396 = vmatpush3.bf16.msra.mxu1 %v7540_v25  ;;  %v1172_v24 = vrot.slane %v1158_v19, %v8309_v35  ;;  %v7590_v25 = vld [vmem:[#allocation2 + $0x3b8] sm:$0xff]  }
  0xa3   :  { %7397 = vmatprep.subr.bf16.mxu1 %v8197_v40 }
  0xa5   :  { %7181 = vmatpush3.bf16.msra.mxu0 %v7542_v26  ;;  %v7591_v26 = vld [vmem:[#allocation2 + $0x378] sm:$0xff]  }
  0xa6   :  { %7182 = vmatprep.subr.bf16.mxu0 %v7544_v28  ;;  %7398 = vmatpush3.bf16.msra.mxu1 %v7543_v29  ;;  %v7593_v28 = vld [vmem:[#allocation2 + $0x3e0] sm:$0xff]   ;;  %v1187_v29 = vrot.slane %v1172_v24, %v8309_v35 }
  0xa7   :  { %7399 = vmatprep.subr.bf16.mxu1 %v8197_v40  ;;  %v1964_v24 = vld [vmem:[#allocation4 + $0xc0] sm:$0xff] }
  0xa9   :  { %7183 = vmatpush3.bf16.msra.mxu0 %v7545_v31  ;;  %v7594_v31 = vld [vmem:[#allocation2 + $0x3c0] sm:$0xff]  }
  0xaa   :  { %7195 = vmatprep.subr.bf16.mxu0 %v7547_v33  ;;  %7400 = vmatpush3.bf16.msra.mxu1 %v7546_v34  ;;  %v7596_v33 = vld [vmem:[#allocation2 + $0x428] sm:$0xff]  }
  0xab   :  { %7217 = vmatprep.subr.bf16.mxu1 %v7548_v37  ;;  %v7597_v34 = vld [vmem:[#allocation2 + $0x3e8] sm:$0xff]  }
  0xac   :  { %1110 = vmatmul.mubr.bf16.vlgmr.msra.gmra.mrb[8].mxu0 %v812_v36  ;;  %v101_v36 = vld [vmem:[%s8550_s1 + $0xf] sm:$0x1f] }
  0xad   :  { %7196 = vmatpush3.bf16.msra.mxu0 %v7549_v38  ;;  %7402 = vmatmul.mubr.msk.bf16.vlgmr.msra.gmra.mrb[8].mxu1 %vm650_vm1, %v804_v39  ;;  %v7598_v37 = vld [vmem:[#allocation2 + $0x3c8] sm:$0xff]   ;;  %v1548_v38 = vrot.slane %v101_v36, %v8309_v35 }
  0xae   :  { %7197 = vmatprep.subr.bf16.mxu0 %v7551_v41  ;;  %7218 = vmatpush3.bf16.msra.mxu1 %v7550_v42  ;;  %v7599_v39 = vld [vmem:[#allocation2 + $0x388] sm:$0xff]   ;;  %v7600_v41 = vld [vmem:[#allocation2 + $0x430] sm:$0xff]  }
  0xaf   :  { %7219 = vmatprep.subr.bf16.mxu1 %v7552_v43  ;;  %1452 = vmatprep.mubr.bf16.mxu0 %v1194_v4  ;;  %v1556_v42 = vcombine.high %v1548_v38, %v1548_v38  ;;  %v7601_v43 = vld [vmem:[#allocation2 + $0x3f0] sm:$0xff]  }
  0xb0   :  { %1492 = vmatprep.mubr.bf16.mxu1 %v1196_v7  ;;  %v1941_v7 = vld [vmem:[#allocation4 + $0x8] sm:$0xff] }
  0xb1   :  { %7198 = vmatpush3.bf16.msra.mxu0 %v7553_v44  ;;  %v7602_v44 = vld [vmem:[#allocation2 + $0x3d0] sm:$0xff]  }
  0xb2   :  { %7199 = vmatprep.subr.bf16.mxu0 %v7555_v45  ;;  %7220 = vmatpush3.bf16.msra.mxu1 %v7554_v46  ;;  %v1577_v45 = vrot.slane %v1556_v42, %v8309_v35  ;;  %v7603_v46 = vld [vmem:[#allocation2 + $0x390] sm:$0xff]   ;;  %v1973_v42 = vld [vmem:[#allocation4 + $0x108] sm:$0xff] }
  0xb3   :  { %7221 = vmatprep.subr.bf16.mxu1 %v7556_v47  ;;  %v7604_v47 = vld [vmem:[#allocation2 + $0x438] sm:$0xff]  }
  0xb5   :  { %7200 = vmatpush3.bf16.msra.mxu0 %v7557_v48  ;;  %v1579_v48 = vcombine.high %v1577_v45, %v1577_v45 }
  0xb6   :  { %7201 = vmatprep.subr.bf16.mxu0 %v7559_v49  ;;  %7222 = vmatpush3.bf16.msra.mxu1 %v7558_v50  ;;  %v7605_v49 = vld [vmem:[#allocation2 + $0x3f8] sm:$0xff]  }
  0xb7   :  { %7223 = vmatprep.subr.bf16.mxu1 %v7560_v51  ;;  %v7606_v50 = vld [vmem:[#allocation2 + $0x3d8] sm:$0xff]  }
  0xb8   :  { %v7607_v51 = vld [vmem:[#allocation2 + $0x398] sm:$0xff]  }
  0xb9   :  { %7202 = vmatpush3.bf16.msra.mxu0 %v7561_v52  ;;  %v7608_v52 = vld [vmem:[#allocation2 + $0x440] sm:$0xff]  }
  0xba   :  { %7203 = vmatprep.subr.bf16.mxu0 %v7563_v53  ;;  %7224 = vmatpush3.bf16.msra.mxu1 %v7562_v54  ;;  %v7609_v53 = vld [vmem:[#allocation2 + $0x400] sm:$0xff]   ;;  %v7612_v54 = vld [vmem:[#allocation2 + $0x448] sm:$0xff]  }
  0xbb   :  { %7225 = vmatprep.subr.bf16.mxu1 %v7564_v55  ;;  %v7611_v55 = vld [vmem:[#allocation2 + $0x460] sm:$0xff]  }
  0xbd   :  { %7204 = vmatpush3.bf16.msra.mxu0 %v7565_v56  ;;  %v1563_v56 = vrot.slane %v1548_v38, %v8309_v35 }
  0xbe   :  { %7205 = vmatprep.subr.bf16.mxu0 %v7567_v57  ;;  %7226 = vmatpush3.bf16.msra.mxu1 %v7566_v58  ;;  %v7613_v57 = vld [vmem:[#allocation2 + $0x408] sm:$0xff]   ;;  %v7615_v58 = vld [vmem:[#allocation2 + $0x450] sm:$0xff]  }
  0xbf   :  { %7227 = vmatprep.subr.bf16.mxu1 %v7568_v59  ;;  %v7614_v59 = vld [vmem:[#allocation2 + $0x468] sm:$0xff]  }
  0xc1   :  { %7206 = vmatpush3.bf16.msra.mxu0 %v7569_v61  ;;  %v7618_v61 = vld [vmem:[#allocation2 + $0x458] sm:$0xff]  }
  0xc2   :  { %7207 = vmatprep.subr.bf16.mxu0 %v7571_v63  ;;  %7228 = vmatpush3.bf16.msra.mxu1 %v7570_v0  ;;  %v1541_v63 = vcombine.high %v101_v36, %v101_v36  ;;  %v7619_v0 = vld [vmem:[#allocation2 + $0x418] sm:$0xff]  }
  0xc3   :  { %7229 = vmatprep.subr.bf16.mxu1 %v7572_v2 }
  0xc4   :  { %v1555_v2 = vrot.slane %v1541_v63, %v8309_v35 }
  0xc5   :  { %7208 = vmatpush3.bf16.msra.mxu0 %v7573_v3  ;;  %v1578_v3 = vcombine.high %v1563_v56, %v1563_v56 }
  0xc6   :  { %7209 = vmatprep.subr.bf16.mxu0 %v7575_v5  ;;  %7230 = vmatpush3.bf16.msra.mxu1 %v7574_v6  ;;  %v1570_v4 = vrot.slane %v1555_v2, %v8309_v35  ;;  %v1940_v5 = vld [vmem:[#allocation4] sm:$0xff] }
  0xc7   :  { %7231 = vmatprep.subr.bf16.mxu1 %v7576_v8  ;;  %v1944_v6 = vld [vmem:[#allocation4 + $0x20] sm:$0xff] }
  0xc8   :  { %v6557_v8 = vcombine.low %v1940_v5, %v1944_v6  ;;  %v1992_v2 = vld [vmem:[#allocation4 + $0x1a0] sm:$0xff] }
  0xc9   :  { %7210 = vmatpush3.bf16.msra.mxu0 %v7577_v9  ;;  %v6558_v9 = vcombine.high %v1940_v5, %v1944_v6  ;;  %v1993_v5 = vld [vmem:[#allocation4 + $0x1a8] sm:$0xff] }
  0xca   :  { %7405 = vmatprep.subr.bf16.mxu0 %v8197_v40  ;;  %7232 = vmatpush3.bf16.msra.mxu1 %v7578_v11 }
  0xcb   :  { %7244 = vmatprep.subr.bf16.mxu1 %v7581_v12 }
  0xcc   :  { %1453 = vmatmul.mubr.bf16.vlgmr.msra.gmra.mrb[12].mxu0 %v1180_v10  ;;  %v1945_v10 = vld [vmem:[#allocation4 + $0x28] sm:$0xff] }
  0xcd   :  { %7406 = vmatpush3.bf16.msra.mxu0 %v7580_v13  ;;  %7413 = vmatprep.mubr.msk.bf16.mxu0 %vm8198_vm0, %v8197_v40  ;;  %v6559_v11 = vcombine.low %v1941_v7, %v1945_v10  ;;  %v6560_v12 = vcombine.high %v1941_v7, %v1945_v10  ;;  %v1952_v13 = vld [vmem:[#allocation4 + $0x60] sm:$0xff] }
  0xce   :  { %1493 = vmatmul.mubr.bf16.vlgmr.msra.gmra.mrb[12].mxu1 %v1195_v14  ;;  %7407 = vmatprep.subr.bf16.mxu0 %v8197_v40  ;;  %v1949_v14 = vld [vmem:[#allocation4 + $0x48] sm:$0xff]  ;;  %v2000_v10 = vld [vmem:[#allocation4 + $0x1e0] sm:$0xff] }
  0xcf   :  { %7245 = vmatpush3.bf16.msra.mxu1 %v7582_v15  ;;  %1835 = vmatprep.mubr.bf16.mxu1 %v1577_v45 }
  0xd0   :  { %7246 = vmatprep.subr.bf16.mxu1 %v7584_v16  ;;  %v1953_v16 = vld [vmem:[#allocation4 + $0x68] sm:$0xff] }
  0xd1   :  { %7408 = vmatpush3.bf16.msra.mxu0 %v7583_v17  ;;  %v1956_v17 = vld [vmem:[#allocation4 + $0x80] sm:$0xff]  ;;  %v6567_v19 = vcombine.low %v1949_v14, %v1953_v16 }
  0xd2   :  { %7409 = vmatprep.subr.bf16.mxu0 %v8197_v40 }
  0xd3   :  { %7247 = vmatpush3.bf16.msra.mxu1 %v7585_v18  ;;  %v1960_v18 = vld [vmem:[#allocation4 + $0xa0] sm:$0xff] }
  0xd4   :  { %7248 = vmatprep.subr.bf16.mxu1 %v7587_v20  ;;  %v6568_v20 = vcombine.high %v1949_v14, %v1953_v16  ;;  %v8371_v14 = vld [vmem:[#allocation4 + $0x10] sm:$0xff] }
  0xd5   :  { %7410 = vmatpush3.bf16.msra.mxu0 %v7586_v21  ;;  %v6574_v21 = vcombine.high %v1956_v17, %v1960_v18 }
  0xd6   :  { %7411 = vmatprep.subr.bf16.mxu0 %v8197_v40 }
  0xd7   :  { %7249 = vmatpush3.bf16.msra.mxu1 %v7588_v22  ;;  %v1957_v22 = vld [vmem:[#allocation4 + $0x88] sm:$0xff] }
  0xd8   :  { %7250 = vmatprep.subr.bf16.mxu1 %v7590_v25 }
  0xd9   :  { %7412 = vmatpush3.bf16.msra.mxu0 %v7589_v23  ;;  %v1961_v23 = vld [vmem:[#allocation4 + $0xa8] sm:$0xff] }
  0xda   :  { %7266 = vmatprep.subr.bf16.mxu0 %v7592_v27  ;;  %v6576_v25 = vcombine.high %v1957_v22, %v1961_v23  ;;  %v1965_v27 = vld [vmem:[#allocation4 + $0xc8] sm:$0xff] }
  0xdb   :  { %7251 = vmatpush3.bf16.msra.mxu1 %v7591_v26  ;;  %v1968_v26 = vld [vmem:[#allocation4 + $0xe0] sm:$0xff] }
  0xdc   :  { %7414 = vmatmul.mubr.msk.bf16.vlgmr.msra.gmra.mrb[16].mxu0 %vm650_vm1, %v1187_v29  ;;  %7252 = vmatprep.subr.bf16.mxu1 %v7594_v31  ;;  %v6573_v29 = vcombine.low %v1956_v17, %v1960_v18  ;;  %v6575_v31 = vcombine.low %v1957_v22, %v1961_v23  ;;  %v8199_v17 = vmov 0  }
  0xdd   :  { %7267 = vmatpush3.bf16.msra.mxu0 %v7593_v28  ;;  %1875 = vmatprep.mubr.bf16.mxu0 %v1579_v48  ;;  %v1969_v28 = vld [vmem:[#allocation4 + $0xe8] sm:$0xff] }
  0xde   :  { %7268 = vmatprep.subr.bf16.mxu0 %v7596_v33  ;;  %v6584_v33 = vcombine.high %v1965_v27, %v1969_v28  ;;  %v6583_v36 = vcombine.low %v1965_v27, %v1969_v28 }
  0xdf   :  { %7253 = vmatpush3.bf16.msra.mxu1 %v7595_v32  ;;  %v6582_v32 = vcombine.high %v1964_v24, %v1968_v26 }
  0xe0   :  { %7254 = vmatprep.subr.bf16.mxu1 %v7598_v37 }
  0xe1   :  { %7269 = vmatpush3.bf16.msra.mxu0 %v7597_v34  ;;  %v6581_v34 = vcombine.low %v1964_v24, %v1968_v26 }
  0xe2   :  { %7270 = vmatprep.subr.bf16.mxu0 %v7600_v41  ;;  %v1976_v41 = vld [vmem:[#allocation4 + $0x120] sm:$0xff] }
  0xe3   :  { %7255 = vmatpush3.bf16.msra.mxu1 %v7599_v39  ;;  %v1972_v39 = vld [vmem:[#allocation4 + $0x100] sm:$0xff] }
  0xe4   :  { %7256 = vmatprep.subr.bf16.mxu1 %v7602_v44 }
  0xe5   :  { %7271 = vmatpush3.bf16.msra.mxu0 %v7601_v43 }
  0xe6   :  { %7272 = vmatprep.subr.bf16.mxu0 %v7604_v47  ;;  %v1977_v47 = vld [vmem:[#allocation4 + $0x128] sm:$0xff] }
  0xe7   :  { %7257 = vmatpush3.bf16.msra.mxu1 %v7603_v46  ;;  %v6590_v46 = vcombine.high %v1972_v39, %v1976_v41 }
  0xe8   :  { %7258 = vmatprep.subr.bf16.mxu1 %v7606_v50  ;;  %v6589_v50 = vcombine.low %v1972_v39, %v1976_v41 }
  0xe9   :  { %7273 = vmatpush3.bf16.msra.mxu0 %v7605_v49 }
  0xea   :  { %7274 = vmatprep.subr.bf16.mxu0 %v7608_v52  ;;  %v6592_v52 = vcombine.high %v1973_v42, %v1977_v47 }
  0xeb   :  { %7259 = vmatpush3.bf16.msra.mxu1 %v7607_v51  ;;  %v6591_v51 = vcombine.low %v1973_v42, %v1977_v47  ;;  %v1923_v42 = vld [vmem:[%s8551_s2] sm:$0xf] }
  0xec   :  { %7417 = vmatprep.subr.bf16.mxu1 %v8197_v40 }
  0xed   :  { %7275 = vmatpush3.bf16.msra.mxu0 %v7609_v53 }
  0xee   :  { %1836 = vmatmul.mubr.bf16.vlgmr.msra.gmra.mrb[16].mxu1 %v1563_v56  ;;  %7276 = vmatprep.subr.bf16.mxu0 %v7612_v54  ;;  %v1980_v56 = vld [vmem:[#allocation4 + $0x140] sm:$0xff] }
  0xef   :  { %7418 = vmatpush3.bf16.msra.mxu1 %v7611_v55  ;;  %7425 = vmatprep.mubr.msk.bf16.mxu1 %vm8198_vm0, %v8197_v40 }
  0xf0   :  { %7419 = vmatprep.subr.bf16.mxu1 %v8197_v40 }
  0xf1   :  { %7277 = vmatpush3.bf16.msra.mxu0 %v7613_v57  ;;  %v1984_v57 = vld [vmem:[#allocation4 + $0x160] sm:$0xff] }
  0xf2   :  { %7278 = vmatprep.subr.bf16.mxu0 %v7615_v58  ;;  %v1981_v58 = vld [vmem:[#allocation4 + $0x148] sm:$0xff] }
  0xf3   :  { %7420 = vmatpush3.bf16.msra.mxu1 %v7614_v59 }
  0xf4   :  { %7421 = vmatprep.subr.bf16.mxu1 %v8197_v40 }
  0xf5   :  { %7279 = vmatpush3.bf16.msra.mxu0 %v7616_v60  ;;  %v6598_v60 = vcombine.high %v1980_v56, %v1984_v57 }
  0xf6   :  { %7280 = vmatprep.subr.bf16.mxu0 %v7618_v61  ;;  %v1985_v61 = vld [vmem:[#allocation4 + $0x168] sm:$0xff] }
  0xf7   :  { %7422 = vmatpush3.bf16.msra.mxu1 %v7617_v62  ;;  %v6597_v62 = vcombine.low %v1980_v56, %v1984_v57  ;;  %v6599_v63 = vcombine.low %v1981_v58, %v1985_v61 }
  0xf8   :  { %7423 = vmatprep.subr.bf16.mxu1 %v8197_v40  ;;  %v1948_v40 = vld [vmem:[#allocation4 + $0x40] sm:$0xff] }
  0xf9   :  { %7281 = vmatpush3.bf16.msra.mxu0 %v7619_v0  ;;  %v6565_v35 = vcombine.low %v1948_v40, %v1952_v13  ;;  %v6566_v15 = vcombine.high %v1948_v40, %v1952_v13  ;;  %v6600_v0 = vcombine.high %v1981_v58, %v1985_v61  ;;  %v2001_v13 = vld [vmem:[#allocation4 + $0x1e8] sm:$0xff] }
  0xfa   :  { %2385 = vmatprep.subr.bf16.mxu0 %v6558_v9  ;;  %v1996_v9 = vld [vmem:[#allocation4 + $0x1c0] sm:$0xff] }
  0xfb   :  { %7424 = vmatpush3.bf16.msra.mxu1 %v7620_v1  ;;  %v1988_v1 = vld [vmem:[#allocation4 + $0x180] sm:$0xff]  ;;  %v6614_v40 = vcombine.high %v1996_v9, %v2000_v10 }
  0xfc   :  { %1876 = vmatmul.mubr.bf16.vlgmr.msra.gmra.mrb[20].mxu0 %v1578_v3  ;;  %2426 = vmatprep.subr.bf16.mxu1 %v6560_v12  ;;  %v1989_v3 = vld [vmem:[#allocation4 + $0x188] sm:$0xff]  ;;  %v6605_v6 = vcombine.low %v1988_v1, %v1992_v2  ;;  %v6613_v12 = vcombine.low %v1996_v9, %v2000_v10 }
  0xfd   :  { %2386 = vmatpush1.bf16.msra.mxu0 %v6557_v8  ;;  %v6607_v7 = vcombine.low %v1989_v3, %v1993_v5  ;;  %v6608_v8 = vcombine.high %v1989_v3, %v1993_v5  ;;  %2417 = vmatprep.mubr.bf16.mxu0 %v8199_v17  ;;  %v1926_v5 = vrot.slane %v1923_v42, 2 }
  0xfe   :  { %7426 = vmatmul.mubr.msk.bf16.vlgmr.msra.gmra.mrb[20].mxu1 %vm650_vm1, %v1570_v4  ;;  %2387 = vmatprep.subr.bf16.mxu0 %v6566_v15  ;;  %v6606_v4 = vcombine.high %v1988_v1, %v1992_v2 }
  0xff   :  { %2427 = vmatpush1.bf16.msra.mxu1 %v6559_v11  ;;  %v1997_v11 = vld [vmem:[#allocation4 + $0x1c8] sm:$0xff]  ;;  %2458 = vmatprep.mubr.bf16.mxu1 %v8199_v17 }
 0x100   :  { %2428 = vmatprep.subr.bf16.mxu1 %v6568_v20  ;;  %v6615_v15 = vcombine.low %v1997_v11, %v2001_v13  ;;  %v6616_v16 = vcombine.high %v1997_v11, %v2001_v13  ;;  %v8381_v20 = vld [vmem:[#allocation4 + $0x38] sm:$0xff] }
 0x101   :  { %2388 = vmatpush1.bf16.msra.mxu0 %v6565_v35  ;;  %v8373_v35 = vld [vmem:[#allocation4 + $0x30] sm:$0xff] }
 0x102   :  { %2389 = vmatprep.subr.bf16.mxu0 %v6574_v21  ;;  %v6561_v18 = vcombine.low %v8371_v14, %v8373_v35  ;;  %v6562_v22 = vcombine.high %v8371_v14, %v8373_v35 }
 0x103   :  { %2429 = vmatpush1.bf16.msra.mxu1 %v6567_v19  ;;  %v8379_v19 = vld [vmem:[#allocation4 + $0x18] sm:$0xff] }
 0x104   :  { %2430 = vmatprep.subr.bf16.mxu1 %v6576_v25  ;;  %v6563_v23 = vcombine.low %v8379_v19, %v8381_v20  ;;  %v6564_v24 = vcombine.high %v8379_v19, %v8381_v20  ;;  %v1974_v20 = vld [vmem:[#allocation4 + $0x110] sm:$0xff] }
 0x105   :  { %2390 = vmatpush1.bf16.msra.mxu0 %v6573_v29 }
 0x106   :  { %2391 = vmatprep.subr.bf16.mxu0 %v6582_v32 }
 0x107   :  { %2431 = vmatpush1.bf16.msra.mxu1 %v6575_v31 }
 0x108   :  { %2432 = vmatprep.subr.bf16.mxu1 %v6584_v33 }
 0x109   :  { %2392 = vmatpush1.bf16.msra.mxu0 %v6581_v34 }
 0x10a   :  { %2393 = vmatprep.subr.bf16.mxu0 %v6590_v46  ;;  %v1925_v46 = vrot.slane %v1923_v42, 1 }
 0x10b   :  { %2433 = vmatpush1.bf16.msra.mxu1 %v6583_v36 }
 0x10c   :  { %2434 = vmatprep.subr.bf16.mxu1 %v6592_v52 }
 0x10d   :  { %2394 = vmatpush1.bf16.msra.mxu0 %v6589_v50 }
 0x10e   :  { %2395 = vmatprep.subr.bf16.mxu0 %v6598_v60 }
 0x10f   :  { %2435 = vmatpush1.bf16.msra.mxu1 %v6591_v51 }
 0x110   :  { %2436 = vmatprep.subr.bf16.mxu1 %v6600_v0 }
 0x111   :  { %2396 = vmatpush1.bf16.msra.mxu0 %v6597_v62 }
 0x112   :  { %2397 = vmatprep.subr.bf16.mxu0 %v6606_v4 }
 0x113   :  { %2437 = vmatpush1.bf16.msra.mxu1 %v6599_v63 }
 0x114   :  { %2438 = vmatprep.subr.bf16.mxu1 %v6608_v8 }
 0x115   :  { %2398 = vmatpush1.bf16.msra.mxu0 %v6605_v6 }
 0x116   :  { %2399 = vmatprep.subr.bf16.mxu0 %v6614_v40 }
 0x117   :  { %2439 = vmatpush1.bf16.msra.mxu1 %v6607_v7 }
 0x118   :  { %2440 = vmatprep.subr.bf16.mxu1 %v6616_v16 }
 0x119   :  { %2400 = vmatpush1.bf16.msra.mxu0 %v6613_v12 }
 0x11a   :  { %2467 = vmatprep.subr.bf16.mxu0 %v6562_v22 }
 0x11b   :  { %2441 = vmatpush1.bf16.msra.mxu1 %v6615_v15 }
 0x11c   :  { %2508 = vmatprep.subr.bf16.mxu1 %v6564_v24 }
 0x14f   :  { %v7113_v37 = vpop.f32.mrb[0].mxu0 }
 0x150   :  { %v7114_v38 = vpop.f32.mrb[1].mxu0  ;;  %v7135_v43 = vpop.f32.mrb[0].mxu1 }
 0x151   :  { %v7115_v44 = vadd.f32 %v7114_v38, %v7113_v37  ;;  %v7116_v45 = vpop.f32.mrb[2].mxu0  ;;  %v7136_v48 = vpop.f32.mrb[1].mxu1 }
 0x152   :  { %v7117_v49 = vpop.f32.mrb[3].mxu0  ;;  %v7137_v53 = vadd.f32 %v7136_v48, %v7135_v43  ;;  %v7138_v54 = vpop.f32.mrb[2].mxu1 }
 0x153   :  { %v7139_v55 = vpop.f32.mrb[3].mxu1 }
 0x154   :  { %v729_v59 = vadd.f32 %v7137_v53, %v7115_v44 }
 0x15f   :  { %v768_v21 = vpop.f32.mrb[4].mxu0 }
 0x160   :  { %v769_v25 = vadd.f32 %v768_v21, %v729_v59  ;;  %v7391_v26 = vpop.f32.mrb[5].mxu0 }
 0x161   :  { %v771_v27 = vpop.f32.mrb[6].mxu0 }
 0x162   :  { %v7392_v28 = vpop.f32.mrb[7].mxu0  ;;  %v1932_v49 = vadd.f32 %v1923_v42, %v769_v25 }
 0x164   :  { %v1936_v52 = vpack.c.bf16 %v1932_v49, %v1932_v49  ;;  %v1955_v49 = vld [vmem:[#allocation4 + $0x78] sm:$0xff] }
 0x166   :  { %v2050_v55 = vunpack.c.l.b16 %v1936_v52 }
 0x170   :  { %v7162_v29 = vpop.f32.mrb[4].mxu1 }
 0x171   :  { %v7163_v31 = vpop.f32.mrb[5].mxu1 }
 0x172   :  { %v7164_v32 = vadd.f32 %v7163_v31, %v7162_v29  ;;  %v7165_v33 = vpop.f32.mrb[6].mxu1 }
 0x173   :  { %v7166_v34 = vpop.f32.mrb[7].mxu1 }
 0x17f   :  { %v7184_v36 = vpop.f32.mrb[8].mxu0 }
 0x180   :  { %v7185_v37 = vpop.f32.mrb[9].mxu0  ;;  %v1151_v41 = vpop.f32.mrb[8].mxu1 }
 0x181   :  { %v7186_v38 = vadd.f32 %v7185_v37, %v7184_v36  ;;  %v7187_v39 = vpop.f32.mrb[10].mxu0  ;;  %v7403_v44 = vpop.f32.mrb[9].mxu1  ;;  %v1927_v36 = vrot.slane %v1923_v42, 3  ;;  %v1959_v42 = vld [vmem:[#allocation4 + $0x98] sm:$0xff] }
 0x182   :  { %v7188_v43 = vpop.f32.mrb[11].mxu0  ;;  %v1154_v47 = vpop.f32.mrb[10].mxu1 }
 0x183   :  { %v1112_v45 = vadd.f32 %v7186_v38, %v7164_v32  ;;  %v7404_v48 = vpop.f32.mrb[11].mxu1  ;;  %v1954_v47 = vld [vmem:[#allocation4 + $0x70] sm:$0xff] }
 0x184   :  { %v1951_v48 = vld [vmem:[#allocation4 + $0x58] sm:$0xff] }
 0x185   :  { %v1152_v50 = vadd.f32 %v1151_v41, %v1112_v45  ;;  %v1950_v45 = vld [vmem:[#allocation4 + $0x50] sm:$0xff] }
 0x186   :  { %v6570_v52 = vcombine.high %v1950_v45, %v1954_v47 }
 0x187   :  { %v1933_v51 = vadd.f32 %v1925_v46, %v1152_v50 }
 0x189   :  { %v1937_v53 = vpack.c.bf16 %v1933_v51, %v1933_v51 }
 0x18b   :  { %v2051_v54 = vunpack.c.l.b16 %v1937_v53  ;;  %v6572_v53 = vcombine.high %v1951_v48, %v1955_v49 }
 0x18d   :  { %v2054_v56 = vrot.slane %v2051_v54, 7  ;;  %v1958_v54 = vld [vmem:[#allocation4 + $0x90] sm:$0xff] }
 0x18f   :  { %v2056_v57 = vsel %vm2055_vm2, %v2054_v56, %v2050_v55  ;;  %v1962_v55 = vld [vmem:[#allocation4 + $0xb0] sm:$0xff]  ;;  %v1963_v56 = vld [vmem:[#allocation4 + $0xb8] sm:$0xff] }
 0x190   :  { %v6577_v14 = vcombine.low %v1958_v54, %v1962_v55  ;;  %v6579_v35 = vcombine.low %v1959_v42, %v1963_v56 }
 0x19f   :  { %v7211_v58 = vpop.f32.mrb[12].mxu0 }
 0x1a0   :  { %v7212_v59 = vpop.f32.mrb[13].mxu0 }
 0x1a1   :  { %v7233_v60 = vpop.f32.mrb[12].mxu1  ;;  %v7213_v61 = vadd.f32 %v7212_v59, %v7211_v58  ;;  %v7214_v62 = vpop.f32.mrb[14].mxu0  ;;  %v6571_v58 = vcombine.low %v1951_v48, %v1955_v49  ;;  %v6578_v59 = vcombine.high %v1958_v54, %v1962_v55  ;;  %v7627_v48 = vld [vmem:[#allocation6 + $0x8] sm:$0xff]   ;;  %v7632_v54 = vld [vmem:[#allocation6 + $0x90] sm:$0xff]   ;;  %v7633_v55 = vld [vmem:[#allocation6 + $0x58] sm:$0xff]  }
 0x1a2   :  { %v7234_v63 = vpop.f32.mrb[13].mxu1  ;;  %v7215_v0 = vpop.f32.mrb[15].mxu0  ;;  %v1970_v62 = vld [vmem:[#allocation4 + $0xf0] sm:$0xff]  ;;  %v7628_v49 = vld [vmem:[#allocation6 + $0x88] sm:$0xff]  }
 0x1a3   :  { %v7235_v1 = vadd.f32 %v7234_v63, %v7233_v60  ;;  %v7236_v2 = vpop.f32.mrb[14].mxu1  ;;  %v6580_v60 = vcombine.high %v1959_v42, %v1963_v56  ;;  %v1967_v63 = vld [vmem:[#allocation4 + $0xd8] sm:$0xff] }
 0x1a4   :  { %v7237_v3 = vpop.f32.mrb[15].mxu1  ;;  %v1971_v0 = vld [vmem:[#allocation4 + $0xf8] sm:$0xff] }
 0x1a5   :  { %v1495_v4 = vadd.f32 %v7235_v1, %v7213_v61  ;;  %v1966_v61 = vld [vmem:[#allocation4 + $0xd0] sm:$0xff]  ;;  %v6588_v19 = vcombine.high %v1967_v63, %v1971_v0  ;;  %v1975_v1 = vld [vmem:[#allocation4 + $0x118] sm:$0xff] }
 0x1a6   :  { %v1979_v2 = vld [vmem:[#allocation4 + $0x138] sm:$0xff]  ;;  %v6585_v3 = vcombine.low %v1966_v61, %v1970_v62 }
 0x1a7   :  { %v7634_v42 = vld [vmem:[#allocation6 + $0xd8] sm:$0xff]  }
 0x1a8   :  { %v7635_v56 = vld [vmem:[#allocation6 + $0x18] sm:$0xff]  }
 0x1af   :  { %v1534_v6 = vpop.f32.mrb[16].mxu0 }
 0x1b0   :  { %v1535_v7 = vadd.f32 %v1534_v6, %v1495_v4  ;;  %v7415_v8 = vpop.f32.mrb[17].mxu0  ;;  %v6587_v4 = vcombine.low %v1967_v63, %v1971_v0  ;;  %v6596_v6 = vcombine.high %v1975_v1, %v1979_v2  ;;  %v7643_v63 = vld [vmem:[#allocation6 + $0x28] sm:$0xff]  }
 0x1b1   :  { %v1537_v9 = vpop.f32.mrb[18].mxu0  ;;  %v1986_v8 = vld [vmem:[#allocation4 + $0x170] sm:$0xff]  ;;  %v7644_v0 = vld [vmem:[#allocation6 + $0xa8] sm:$0xff]  }
 0x1b2   :  { %v1934_v10 = vadd.f32 %v1926_v5, %v1535_v7  ;;  %v7416_v11 = vpop.f32.mrb[19].mxu0  ;;  %v1982_v7 = vld [vmem:[#allocation4 + $0x150] sm:$0xff]  ;;  %v1983_v9 = vld [vmem:[#allocation4 + $0x158] sm:$0xff] }
 0x1b4   :  { %v1938_v12 = vpack.c.bf16 %v1934_v10, %v1934_v10  ;;  %v1987_v10 = vld [vmem:[#allocation4 + $0x178] sm:$0xff] }
 0x1b6   :  { %v2052_v40 = vunpack.c.l.b16 %v1938_v12  ;;  %v6595_v12 = vcombine.low %v1975_v1, %v1979_v2  ;;  %v7651_v1 = vld [vmem:[#allocation6 + $0x38] sm:$0xff]  }
 0x1b7   :  { %v7652_v2 = vld [vmem:[#allocation6 + $0xb8] sm:$0xff]  }
 0x1b8   :  { %v2057_v13 = vrot.slane %v2052_v40, 6  ;;  %v6602_v40 = vcombine.high %v1982_v7, %v1986_v8 }
 0x1ba   :  { %v2059_v15 = vsel %vm2058_vm3, %v2057_v13, %v2056_v57  ;;  %v6569_v57 = vcombine.low %v1950_v45, %v1954_v47  ;;  %v6604_v13 = vcombine.high %v1983_v9, %v1987_v10  ;;  %v7624_v45 = vld [vmem:[#allocation6 + $0x80] sm:$0xff]   ;;  %v7626_v47 = vld [vmem:[#allocation6 + $0xc8] sm:$0xff]  }
 0x1c1   :  { %v7260_v16 = vpop.f32.mrb[16].mxu1 }
 0x1c2   :  { %v7261_v21 = vpop.f32.mrb[17].mxu1 }
 0x1c3   :  { %v7262_v22 = vadd.f32 %v7261_v21, %v7260_v16  ;;  %v7263_v24 = vpop.f32.mrb[18].mxu1  ;;  %v1994_v16 = vld [vmem:[#allocation4 + $0x1b0] sm:$0xff]  ;;  %v1991_v21 = vld [vmem:[#allocation4 + $0x198] sm:$0xff] }
 0x1c4   :  { %v7264_v25 = vpop.f32.mrb[19].mxu1  ;;  %v6601_v24 = vcombine.low %v1982_v7, %v1986_v8  ;;  %v8415_v7 = vld [vmem:[%s8552_s3] ss:$4 sm:$0xff]  ;;  %v8418_v8 = vsub.s32 1, %v8306_v30 }
 0x1c5   :  { %v6603_v25 = vcombine.low %v1983_v9, %v1987_v10  ;;  %v8421_v9 = vsub.s32 3, %v8306_v30 }
 0x1cf   :  { %v7282_v26 = vpop.f32.mrb[20].mxu0 }
 0x1d0   :  { %v7283_v27 = vpop.f32.mrb[21].mxu0 }
 0x1d1   :  { %v7284_v28 = vadd.f32 %v7283_v27, %v7282_v26  ;;  %v7285_v29 = vpop.f32.mrb[22].mxu0  ;;  %v1917_v31 = vpop.f32.mrb[20].mxu1 }
 0x1d2   :  { %v7286_v32 = vpop.f32.mrb[23].mxu0  ;;  %v7427_v33 = vpop.f32.mrb[21].mxu1  ;;  %v2002_v29 = vld [vmem:[#allocation4 + $0x1f0] sm:$0xff] }
 0x1d3   :  { %v1878_v34 = vadd.f32 %v7284_v28, %v7262_v22  ;;  %v1920_v37 = vpop.f32.mrb[22].mxu1  ;;  %v1995_v22 = vld [vmem:[#allocation4 + $0x1b8] sm:$0xff]  ;;  %v1998_v28 = vld [vmem:[#allocation4 + $0x1d0] sm:$0xff] }
 0x1d4   :  { %v7428_v38 = vpop.f32.mrb[23].mxu1  ;;  %v6612_v27 = vcombine.high %v1991_v21, %v1995_v22  ;;  %v2003_v32 = vld [vmem:[#allocation4 + $0x1f8] sm:$0xff] }
 0x1d5   :  { %v1918_v39 = vadd.f32 %v1917_v31, %v1878_v34  ;;  %v1999_v31 = vld [vmem:[#allocation4 + $0x1d8] sm:$0xff]  ;;  %v6611_v34 = vcombine.low %v1991_v21, %v1995_v22  ;;  %v6617_v38 = vcombine.low %v1998_v28, %v2002_v29 }
 0x1d6   :  { %v6620_v37 = vcombine.high %v1999_v31, %v2003_v32 }
 0x1d7   :  { %v1935_v41 = vadd.f32 %v1927_v36, %v1918_v39  ;;  %v6618_v36 = vcombine.high %v1998_v28, %v2002_v29  ;;  %v6619_v39 = vcombine.low %v1999_v31, %v2003_v32 }
 0x1d9   :  { %v1939_v43 = vpack.c.bf16 %v1935_v41, %v1935_v41  ;;  %v7621_v41 = vld [vmem:[#allocation6 + $0x40] sm:$0xff]  }
 0x1db   :  { %v2053_v44 = vunpack.c.l.b16 %v1939_v43  ;;  %v7622_v43 = vld [vmem:[#allocation6 + $0xc0] sm:$0xff]  }
 0x1dd   :  { %v2060_v46 = vrot.slane %v2053_v44, 5  ;;  %v7623_v44 = vld [vmem:[#allocation6] sm:$0xff]  }
 0x1df   :  { %v2062_v50 = vsel %vm2061_vm4, %v2060_v46, %v2059_v15  ;;  %v1990_v15 = vld [vmem:[#allocation4 + $0x190] sm:$0xff]  ;;  %v7625_v46 = vld [vmem:[#allocation6 + $0x48] sm:$0xff]  }
 0x1e0   :  { %v8392_v51 = vpack.c.b16 %v2062_v50, %v2062_v50  ;;  %v6610_v26 = vcombine.high %v1990_v15, %v1994_v16  ;;  %v6609_v33 = vcombine.low %v1990_v15, %v1994_v16  ;;  %v7629_v50 = vld [vmem:[#allocation6 + $0x50] sm:$0xff]  }
 0x1e2   :  { %2418 = vmatmul.mubr.bf16.vlgmr.msra.gmra.mrb[24].mxu0 %v8392_v51  ;;  %2459 = vmatmul.mubr.bf16.vlgmr.msra.gmra.mrb[24].mxu1 %v8392_v51 }
 0x1e3   :  { %2468 = vmatpush1.bf16.msra.mxu0 %v6561_v18  ;;  %2509 = vmatpush1.bf16.msra.mxu1 %v6563_v23  ;;  %v6586_v18 = vcombine.high %v1966_v61, %v1970_v62  ;;  %v1978_v23 = vld [vmem:[#allocation4 + $0x130] sm:$0xff]  ;;  %v7641_v61 = vld [vmem:[#allocation6 + $0x68] sm:$0xff]  }
 0x1e4   :  { %2469 = vmatprep.subr.bf16.mxu0 %v6570_v52  ;;  %2510 = vmatprep.subr.bf16.mxu1 %v6572_v53  ;;  %v6594_v5 = vcombine.high %v1974_v20, %v1978_v23  ;;  %v6593_v11 = vcombine.low %v1974_v20, %v1978_v23  ;;  %v7630_v52 = vld [vmem:[#allocation6 + $0xd0] sm:$0xff]   ;;  %v7642_v62 = vld [vmem:[#allocation6 + $0xe8] sm:$0xff]   ;;  %v7649_v20 = vld [vmem:[#allocation6 + $0x78] sm:$0xff]  }
 0x1e5   :  { %2499 = vmatprep.mubr.bf16.mxu0 %v8199_v17  ;;  %2540 = vmatprep.mubr.bf16.mxu1 %v8199_v17  ;;  %v7631_v53 = vld [vmem:[#allocation6 + $0x10] sm:$0xff]   ;;  %v7650_v23 = vld [vmem:[#allocation6 + $0xf8] sm:$0xff]  }
 0x1e7   :  { %2470 = vmatpush1.bf16.msra.mxu0 %v6569_v57  ;;  %2511 = vmatpush1.bf16.msra.mxu1 %v6571_v58  ;;  %v7637_v57 = vld [vmem:[#allocation6 + $0x60] sm:$0xff]  }
 0x1e8   :  { %2471 = vmatprep.subr.bf16.mxu0 %v6578_v59  ;;  %2512 = vmatprep.subr.bf16.mxu1 %v6580_v60  ;;  %v7638_v58 = vld [vmem:[#allocation6 + $0xe0] sm:$0xff]  }
 0x1e9   :  { %v7639_v59 = vld [vmem:[#allocation6 + $0x20] sm:$0xff]  }
 0x1ea   :  { %v7640_v60 = vld [vmem:[#allocation6 + $0xa0] sm:$0xff]  }
 0x1eb   :  { %2472 = vmatpush1.bf16.msra.mxu0 %v6577_v14  ;;  %2513 = vmatpush1.bf16.msra.mxu1 %v6579_v35  ;;  %v7645_v14 = vld [vmem:[#allocation6 + $0x70] sm:$0xff]  }
 0x1ec   :  { %2473 = vmatprep.subr.bf16.mxu0 %v6586_v18  ;;  %2514 = vmatprep.subr.bf16.mxu1 %v6588_v19  ;;  %v7646_v35 = vld [vmem:[#allocation6 + $0xf0] sm:$0xff]  }
 0x1ed   :  { %v7647_v18 = vld [vmem:[#allocation6 + $0x30] sm:$0xff]  }
 0x1ee   :  { %v7648_v19 = vld [vmem:[#allocation6 + $0xb0] sm:$0xff]  }
 0x1ef   :  { %2474 = vmatpush1.bf16.msra.mxu0 %v6585_v3  ;;  %2515 = vmatpush1.bf16.msra.mxu1 %v6587_v4  ;;  %v7653_v3 = vld [vmem:[#allocation6 + $0x140] sm:$0xff]  }
 0x1f0   :  { %2475 = vmatprep.subr.bf16.mxu0 %v6594_v5  ;;  %2516 = vmatprep.subr.bf16.mxu1 %v6596_v6  ;;  %v7654_v4 = vld [vmem:[#allocation6 + $0x1c0] sm:$0xff]   ;;  %v8407_v5 = vsub.s32 0, %v8306_v30  ;;  %v8410_v6 = vsub.s32 2, %v8306_v30 }
 0x1f2   :  { %v2009_v10 = vrot.slane %v8415_v7, %v8407_v5 }
 0x1f3   :  { %2476 = vmatpush1.bf16.msra.mxu0 %v6593_v11  ;;  %2517 = vmatpush1.bf16.msra.mxu1 %v6595_v12  ;;  %v2017_v11 = vrot.slane %v8415_v7, %v8410_v6  ;;  %v2013_v12 = vrot.slane %v8415_v7, %v8418_v8 }
 0x1f4   :  { %2477 = vmatprep.subr.bf16.mxu0 %v6602_v40  ;;  %2518 = vmatprep.subr.bf16.mxu1 %v6604_v13  ;;  %v2021_v40 = vrot.slane %v8415_v7, %v8421_v9 }
 0x1f7   :  { %2478 = vmatpush1.bf16.msra.mxu0 %v6601_v24  ;;  %2519 = vmatpush1.bf16.msra.mxu1 %v6603_v25 }
 0x1f8   :  { %2479 = vmatprep.subr.bf16.mxu0 %v6610_v26  ;;  %2520 = vmatprep.subr.bf16.mxu1 %v6612_v27 }
 0x1fb   :  { %2480 = vmatpush1.bf16.msra.mxu0 %v6609_v33  ;;  %2521 = vmatpush1.bf16.msra.mxu1 %v6611_v34 }
 0x1fc   :  { %2481 = vmatprep.subr.bf16.mxu0 %v6618_v36  ;;  %2522 = vmatprep.subr.bf16.mxu1 %v6620_v37 }
 0x1ff   :  { %2482 = vmatpush1.bf16.msra.mxu0 %v6617_v38  ;;  %2523 = vmatpush1.bf16.msra.mxu1 %v6619_v39  ;;  %v7655_v39 = vld [vmem:[#allocation6 + $0x100] sm:$0xff]  }
 0x200   :  { %7293 = vmatprep.subr.bf16.mxu0 %v7621_v41  ;;  %7315 = vmatprep.subr.bf16.mxu1 %v7622_v43  ;;  %v7656_v41 = vld [vmem:[#allocation6 + $0x180] sm:$0xff]  }
 0x202   :  { %2500 = vmatmul.mubr.bf16.vlgmr.msra.gmra.mrb[28].mxu0 %v8392_v51  ;;  %2541 = vmatmul.mubr.bf16.vlgmr.msra.gmra.mrb[28].mxu1 %v8392_v51  ;;  %v7636_v51 = vld [vmem:[#allocation6 + $0x98] sm:$0xff]  }
 0x203   :  { %7294 = vmatpush3.bf16.msra.mxu0 %v7623_v44  ;;  %7316 = vmatpush3.bf16.msra.mxu1 %v7624_v45  ;;  %v7657_v45 = vld [vmem:[#allocation6 + $0x148] sm:$0xff]  }
 0x204   :  { %7295 = vmatprep.subr.bf16.mxu0 %v7625_v46  ;;  %7317 = vmatprep.subr.bf16.mxu1 %v7626_v47  ;;  %v7658_v46 = vld [vmem:[#allocation6 + $0x1c8] sm:$0xff]  }
 0x205   :  { %v7659_v47 = vld [vmem:[#allocation6 + $0x108] sm:$0xff]  }
 0x207   :  { %7296 = vmatpush3.bf16.msra.mxu0 %v7627_v48  ;;  %7318 = vmatpush3.bf16.msra.mxu1 %v7628_v49  ;;  %v7660_v48 = vld [vmem:[#allocation6 + $0x188] sm:$0xff]   ;;  %v7661_v49 = vld [vmem:[#allocation6 + $0x150] sm:$0xff]  }
 0x208   :  { %7297 = vmatprep.subr.bf16.mxu0 %v7629_v50  ;;  %7319 = vmatprep.subr.bf16.mxu1 %v7630_v52  ;;  %v7662_v50 = vld [vmem:[#allocation6 + $0x1d0] sm:$0xff]  }
 0x209   :  { %v7663_v52 = vld [vmem:[#allocation6 + $0x110] sm:$0xff]  }
 0x20b   :  { %7298 = vmatpush3.bf16.msra.mxu0 %v7631_v53  ;;  %7320 = vmatpush3.bf16.msra.mxu1 %v7632_v54  ;;  %v7664_v53 = vld [vmem:[#allocation6 + $0x190] sm:$0xff]   ;;  %v7665_v54 = vld [vmem:[#allocation6 + $0x158] sm:$0xff]  }
 0x20c   :  { %7299 = vmatprep.subr.bf16.mxu0 %v7633_v55  ;;  %7321 = vmatprep.subr.bf16.mxu1 %v7634_v42  ;;  %v7666_v55 = vld [vmem:[#allocation6 + $0x1d8] sm:$0xff]  }
 0x20d   :  { %v7667_v42 = vld [vmem:[#allocation6 + $0x118] sm:$0xff]  }
 0x20f   :  { %7300 = vmatpush3.bf16.msra.mxu0 %v7635_v56  ;;  %7322 = vmatpush3.bf16.msra.mxu1 %v7636_v51  ;;  %v7668_v56 = vld [vmem:[#allocation6 + $0x198] sm:$0xff]   ;;  %v7669_v51 = vld [vmem:[#allocation6 + $0x160] sm:$0xff]  }
 0x210   :  { %7301 = vmatprep.subr.bf16.mxu0 %v7637_v57  ;;  %7323 = vmatprep.subr.bf16.mxu1 %v7638_v58  ;;  %v7670_v57 = vld [vmem:[#allocation6 + $0x1e0] sm:$0xff]  }
 0x211   :  { %v7671_v58 = vld [vmem:[#allocation6 + $0x120] sm:$0xff]  }
 0x213   :  { %7302 = vmatpush3.bf16.msra.mxu0 %v7639_v59  ;;  %7324 = vmatpush3.bf16.msra.mxu1 %v7640_v60  ;;  %v7672_v59 = vld [vmem:[#allocation6 + $0x1a0] sm:$0xff]   ;;  %v7673_v60 = vld [vmem:[#allocation6 + $0x168] sm:$0xff]  }
 0x214   :  { %7303 = vmatprep.subr.bf16.mxu0 %v7641_v61  ;;  %7325 = vmatprep.subr.bf16.mxu1 %v7642_v62  ;;  %v7674_v61 = vld [vmem:[#allocation6 + $0x1e8] sm:$0xff]   ;;  %v2024_v62 = vsub.s32 4, %v8306_v30 }
 0x217   :  { %7304 = vmatpush3.bf16.msra.mxu0 %v7643_v63  ;;  %7326 = vmatpush3.bf16.msra.mxu1 %v7644_v0  ;;  %v2032_v63 = vsub.s32 6, %v8306_v30  ;;  %v7675_v0 = vld [vmem:[#allocation6 + $0x128] sm:$0xff]  }
 0x218   :  { %7305 = vmatprep.subr.bf16.mxu0 %v7645_v14  ;;  %7327 = vmatprep.subr.bf16.mxu1 %v7646_v35  ;;  %v7676_v14 = vld [vmem:[#allocation6 + $0x1a8] sm:$0xff]   ;;  %v2028_v35 = vsub.s32 5, %v8306_v30 }
 0x21b   :  { %7306 = vmatpush3.bf16.msra.mxu0 %v7647_v18  ;;  %7328 = vmatpush3.bf16.msra.mxu1 %v7648_v19  ;;  %v2036_v18 = vsub.s32 7, %v8306_v30  ;;  %v7677_v19 = vld [vmem:[#allocation6 + $0x170] sm:$0xff]  }
 0x21c   :  { %7307 = vmatprep.subr.bf16.mxu0 %v7649_v20  ;;  %7329 = vmatprep.subr.bf16.mxu1 %v7650_v23  ;;  %v7678_v20 = vld [vmem:[#allocation6 + $0x1f0] sm:$0xff]   ;;  %v2025_v23 = vrot.slane %v8415_v7, %v2024_v62 }
 0x21f   :  { %7308 = vmatpush3.bf16.msra.mxu0 %v7651_v1  ;;  %7330 = vmatpush3.bf16.msra.mxu1 %v7652_v2  ;;  %v2033_v1 = vrot.slane %v8415_v7, %v2032_v63  ;;  %v2029_v2 = vrot.slane %v8415_v7, %v2028_v35 }
 0x220   :  { %7337 = vmatprep.subr.bf16.mxu0 %v7653_v3  ;;  %7359 = vmatprep.subr.bf16.mxu1 %v7654_v4  ;;  %v2037_v3 = vrot.slane %v8415_v7, %v2036_v18  ;;  %v7679_v4 = vld [vmem:[#allocation6 + $0x130] sm:$0xff]   ;;  %v7684_v7 = vld [vmem:[#allocation6 + $0x1b8] sm:$0xff]  }
 0x2b5   :  { %v2419_v13 = vpop.f32.mrb[24].mxu0  ;;  %v2460_v15 = vpop.f32.mrb[24].mxu1 }
 0x2b6   :  { %v2420_v16 = vadd.f32 %v2419_v13, %v2009_v10  ;;  %v2461_v21 = vadd.f32 %v2460_v15, %v2017_v11  ;;  %v2421_v22 = vpop.f32.mrb[25].mxu0  ;;  %v2462_v24 = vpop.f32.mrb[25].mxu1  ;;  %v7680_v10 = vld [vmem:[#allocation6 + $0x1b0] sm:$0xff]   ;;  %v7681_v11 = vld [vmem:[#allocation6 + $0x178] sm:$0xff]  }
 0x2b7   :  { %v2422_v25 = vadd.f32 %v2421_v22, %v2013_v12  ;;  %v2463_v26 = vadd.f32 %v2462_v24, %v2021_v40  ;;  %v2423_v27 = vpop.f32.mrb[26].mxu0  ;;  %v2464_v28 = vpop.f32.mrb[26].mxu1  ;;  %v7682_v12 = vld [vmem:[#allocation6 + $0x1f8] sm:$0xff]  }
 0x2b8   :  { %v2549_v29 = vmax.f32 %v2420_v16, 0.0  ;;  %v2551_v31 = vmax.f32 %v2461_v21, 0.0  ;;  %v2424_v32 = vpop.f32.mrb[27].mxu0  ;;  %v2465_v33 = vpop.f32.mrb[27].mxu1  ;;  %v7683_v28 = vld [vmem:[#allocation6 + $0x138] sm:$0xff]  }
 0x2b9   :  { %v2550_v34 = vmax.f32 %v2422_v25, 0.0  ;;  %v2552_v36 = vmax.f32 %v2463_v26, 0.0 }
 0x2ba   :  { %v6689_v43 = vpack.c.bf16 %v2549_v29, %v2549_v29  ;;  %v6695_v44 = vpack.c.bf16 %v2551_v31, %v2551_v31 }
 0x2bb   :  { %v6686_v37 = vpack.c.bf16 %v2550_v34, %v2550_v34  ;;  %v6692_v38 = vpack.c.bf16 %v2552_v36, %v2552_v36 }
 0x2bd   :  { %6687 = vmatprep.mubr.msk.bf16.mxu0 %vm6685_vm6, %v6686_v37  ;;  %6693 = vmatprep.mubr.msk.bf16.mxu1 %vm6685_vm6, %v6692_v38 }
 0x2be   :  { %6690 = vmatmul.mubr.msk.bf16.vlgmr.msra.gmra.mrb[32].mxu0 %vm6685_vm6, %v6689_v43  ;;  %6696 = vmatmul.mubr.msk.bf16.vlgmr.msra.gmra.mrb[32].mxu1 %vm6685_vm6, %v6695_v44  ;;  %v3364_v43 = vld [vmem:[#allocation7 + $0x200] sm:$0xff] }
 0x2bf   :  { %7338 = vmatpush3.bf16.msra.mxu0 %v7655_v39  ;;  %7360 = vmatpush3.bf16.msra.mxu1 %v7656_v41  ;;  %v3368_v44 = vld [vmem:[#allocation7 + $0x220] sm:$0xff] }
 0x2c0   :  { %7339 = vmatprep.subr.bf16.mxu0 %v7657_v45  ;;  %7361 = vmatprep.subr.bf16.mxu1 %v7658_v46  ;;  %v3365_v45 = vld [vmem:[#allocation7 + $0x208] sm:$0xff]  ;;  %v6709_v46 = vcombine.low %v3364_v43, %v3368_v44 }
 0x2c3   :  { %7340 = vmatpush3.bf16.msra.mxu0 %v7659_v47  ;;  %7362 = vmatpush3.bf16.msra.mxu1 %v7660_v48  ;;  %v6710_v47 = vcombine.high %v3364_v43, %v3368_v44  ;;  %v3369_v48 = vld [vmem:[#allocation7 + $0x228] sm:$0xff] }
 0x2c4   :  { %7341 = vmatprep.subr.bf16.mxu0 %v7661_v49  ;;  %7363 = vmatprep.subr.bf16.mxu1 %v7662_v50  ;;  %v3372_v49 = vld [vmem:[#allocation7 + $0x240] sm:$0xff] }
 0x2c5   :  { %v3376_v50 = vld [vmem:[#allocation7 + $0x260] sm:$0xff] }
 0x2c7   :  { %7342 = vmatpush3.bf16.msra.mxu0 %v7663_v52  ;;  %7364 = vmatpush3.bf16.msra.mxu1 %v7664_v53  ;;  %v6711_v52 = vcombine.low %v3365_v45, %v3369_v48  ;;  %v6712_v53 = vcombine.high %v3365_v45, %v3369_v48  ;;  %v3420_v45 = vld [vmem:[#allocation7 + $0x3c0] sm:$0xff] }
 0x2c8   :  { %7343 = vmatprep.subr.bf16.mxu0 %v7665_v54  ;;  %7365 = vmatprep.subr.bf16.mxu1 %v7666_v55  ;;  %v6718_v54 = vcombine.high %v3372_v49, %v3376_v50  ;;  %v3373_v55 = vld [vmem:[#allocation7 + $0x248] sm:$0xff] }
 0x2cb   :  { %7344 = vmatpush3.bf16.msra.mxu0 %v7667_v42  ;;  %7366 = vmatpush3.bf16.msra.mxu1 %v7668_v56  ;;  %v3377_v42 = vld [vmem:[#allocation7 + $0x268] sm:$0xff]  ;;  %v3380_v56 = vld [vmem:[#allocation7 + $0x280] sm:$0xff] }
 0x2cc   :  { %7345 = vmatprep.subr.bf16.mxu0 %v7669_v51  ;;  %7367 = vmatprep.subr.bf16.mxu1 %v7670_v57  ;;  %v6720_v51 = vcombine.high %v3373_v55, %v3377_v42  ;;  %v3384_v57 = vld [vmem:[#allocation7 + $0x2a0] sm:$0xff] }
 0x2cf   :  { %7346 = vmatpush3.bf16.msra.mxu0 %v7671_v58  ;;  %7368 = vmatpush3.bf16.msra.mxu1 %v7672_v59  ;;  %v3381_v58 = vld [vmem:[#allocation7 + $0x288] sm:$0xff] }
 0x2d0   :  { %7347 = vmatprep.subr.bf16.mxu0 %v7673_v60  ;;  %7369 = vmatprep.subr.bf16.mxu1 %v7674_v61  ;;  %v3385_v59 = vld [vmem:[#allocation7 + $0x2a8] sm:$0xff]  ;;  %v6717_v60 = vcombine.low %v3372_v49, %v3376_v50  ;;  %v6719_v61 = vcombine.low %v3373_v55, %v3377_v42  ;;  %v3370_v55 = vld [vmem:[#allocation7 + $0x230] sm:$0xff]  ;;  %v3367_v42 = vld [vmem:[#allocation7 + $0x218] sm:$0xff] }
 0x2d1   :  { %v3425_v49 = vld [vmem:[#allocation7 + $0x3e8] sm:$0xff] }
 0x2d3   :  { %7348 = vmatpush3.bf16.msra.mxu0 %v7675_v0  ;;  %7370 = vmatpush3.bf16.msra.mxu1 %v7676_v14  ;;  %v6726_v0 = vcombine.high %v3380_v56, %v3384_v57  ;;  %v6728_v14 = vcombine.high %v3381_v58, %v3385_v59 }
 0x2d4   :  { %7349 = vmatprep.subr.bf16.mxu0 %v7677_v19  ;;  %7371 = vmatprep.subr.bf16.mxu1 %v7678_v20  ;;  %v3388_v19 = vld [vmem:[#allocation7 + $0x2c0] sm:$0xff] }
 0x2d5   :  { %v2501_v40 = vpop.f32.mrb[28].mxu0  ;;  %v2542_v13 = vpop.f32.mrb[28].mxu1  ;;  %v3392_v20 = vld [vmem:[#allocation7 + $0x2e0] sm:$0xff] }
 0x2d6   :  { %v2502_v15 = vadd.f32 %v2501_v40, %v2025_v23  ;;  %v2543_v16 = vadd.f32 %v2542_v13, %v2033_v1  ;;  %v2503_v21 = vpop.f32.mrb[29].mxu0  ;;  %v2544_v22 = vpop.f32.mrb[29].mxu1  ;;  %v3389_v23 = vld [vmem:[#allocation7 + $0x2c8] sm:$0xff] }
 0x2d7   :  { %v2504_v24 = vadd.f32 %v2503_v21, %v2029_v2  ;;  %v2545_v25 = vadd.f32 %v2544_v22, %v2037_v3  ;;  %v2505_v26 = vpop.f32.mrb[30].mxu0  ;;  %v2546_v27 = vpop.f32.mrb[30].mxu1  ;;  %7350 = vmatpush3.bf16.msra.mxu0 %v7679_v4  ;;  %7372 = vmatpush3.bf16.msra.mxu1 %v7680_v10  ;;  %v3393_v1 = vld [vmem:[#allocation7 + $0x2e8] sm:$0xff]  ;;  %v6725_v2 = vcombine.low %v3380_v56, %v3384_v57  ;;  %v3371_v57 = vld [vmem:[#allocation7 + $0x238] sm:$0xff] }
 0x2d8   :  { %v2553_v29 = vmax.f32 %v2502_v15, 0.0  ;;  %v2555_v31 = vmax.f32 %v2543_v16, 0.0  ;;  %v2506_v32 = vpop.f32.mrb[31].mxu0  ;;  %v2547_v33 = vpop.f32.mrb[31].mxu1  ;;  %7351 = vmatprep.subr.bf16.mxu0 %v7681_v11  ;;  %7373 = vmatprep.subr.bf16.mxu1 %v7682_v12  ;;  %v6727_v3 = vcombine.low %v3381_v58, %v3385_v59  ;;  %v6734_v4 = vcombine.high %v3388_v19, %v3392_v20  ;;  %v3396_v11 = vld [vmem:[#allocation7 + $0x300] sm:$0xff]  ;;  %v3397_v40 = vld [vmem:[#allocation7 + $0x308] sm:$0xff] }
 0x2d9   :  { %v2554_v34 = vmax.f32 %v2504_v24, 0.0  ;;  %v2556_v36 = vmax.f32 %v2545_v25, 0.0  ;;  %v6736_v10 = vcombine.high %v3389_v23, %v3393_v1  ;;  %v3400_v12 = vld [vmem:[#allocation7 + $0x320] sm:$0xff]  ;;  %v3401_v13 = vld [vmem:[#allocation7 + $0x328] sm:$0xff]  ;;  %v6733_v15 = vcombine.low %v3388_v19, %v3392_v20 }
 0x2da   :  { %v6701_v39 = vpack.c.bf16 %v2553_v29, %v2553_v29  ;;  %v6707_v41 = vpack.c.bf16 %v2555_v31, %v2555_v31  ;;  %v6735_v16 = vcombine.low %v3389_v23, %v3393_v1  ;;  %v6742_v21 = vcombine.high %v3396_v11, %v3400_v12  ;;  %v3404_v24 = vld [vmem:[#allocation7 + $0x340] sm:$0xff]  ;;  %v3405_v26 = vld [vmem:[#allocation7 + $0x348] sm:$0xff] }
 0x2db   :  { %v6698_v37 = vpack.c.bf16 %v2554_v34, %v2554_v34  ;;  %v6704_v38 = vpack.c.bf16 %v2556_v36, %v2556_v36  ;;  %7352 = vmatpush3.bf16.msra.mxu0 %v7683_v28  ;;  %7374 = vmatpush3.bf16.msra.mxu1 %v7684_v7  ;;  %v6744_v22 = vcombine.high %v3397_v40, %v3401_v13  ;;  %v3408_v25 = vld [vmem:[#allocation7 + $0x360] sm:$0xff]  ;;  %v3409_v27 = vld [vmem:[#allocation7 + $0x368] sm:$0xff] }
 0x2dc   :  { %3751 = vmatprep.subr.bf16.mxu0 %v6710_v47  ;;  %3792 = vmatprep.subr.bf16.mxu1 %v6712_v53  ;;  %v6741_v28 = vcombine.low %v3396_v11, %v3400_v12  ;;  %v6743_v7 = vcombine.low %v3397_v40, %v3401_v13  ;;  %v6750_v29 = vcombine.high %v3404_v24, %v3408_v25  ;;  %v3412_v34 = vld [vmem:[#allocation7 + $0x380] sm:$0xff]  ;;  %v3421_v47 = vld [vmem:[#allocation7 + $0x3c8] sm:$0xff] }
 0x2dd   :  { %6699 = vmatprep.mubr.msk.bf16.mxu0 %vm6697_vm9, %v6698_v37  ;;  %6705 = vmatprep.mubr.msk.bf16.mxu1 %vm6697_vm9, %v6704_v38  ;;  %v6752_v31 = vcombine.high %v3405_v26, %v3409_v27  ;;  %v6749_v32 = vcombine.low %v3404_v24, %v3408_v25  ;;  %v6751_v33 = vcombine.low %v3405_v26, %v3409_v27  ;;  %v3416_v36 = vld [vmem:[#allocation7 + $0x3a0] sm:$0xff]  ;;  %v3413_v37 = vld [vmem:[#allocation7 + $0x388] sm:$0xff] }
 0x2de   :  { %6702 = vmatmul.mubr.msk.bf16.vlgmr.msra.gmra.mrb[36].mxu0 %vm6697_vm9, %v6701_v39  ;;  %6708 = vmatmul.mubr.msk.bf16.vlgmr.msra.gmra.mrb[36].mxu1 %vm6697_vm9, %v6707_v41  ;;  %v6758_v38 = vcombine.high %v3412_v34, %v3416_v36  ;;  %v3417_v39 = vld [vmem:[#allocation7 + $0x3a8] sm:$0xff]  ;;  %v6757_v41 = vcombine.low %v3412_v34, %v3416_v36  ;;  %v6768_v53 = vcombine.high %v3421_v47, %v3425_v49 }
 0x2df   :  { %3783 = vmatprep.mubr.bf16.mxu0 %v8199_v17  ;;  %3824 = vmatprep.mubr.bf16.mxu1 %v8199_v17  ;;  %v6759_v43 = vcombine.low %v3413_v37, %v3417_v39  ;;  %v6760_v44 = vcombine.high %v3413_v37, %v3417_v39  ;;  %v6715_v58 = vcombine.low %v3367_v42, %v3371_v57  ;;  %v3386_v39 = vld [vmem:[#allocation7 + $0x2b0] sm:$0xff] }
 0x2e0   :  { %3752 = vmatpush1.bf16.msra.mxu0 %v6709_v46  ;;  %3793 = vmatpush1.bf16.msra.mxu1 %v6711_v52  ;;  %v3424_v46 = vld [vmem:[#allocation7 + $0x3e0] sm:$0xff]  ;;  %v6767_v52 = vcombine.low %v3421_v47, %v3425_v49  ;;  %v6716_v59 = vcombine.high %v3367_v42, %v3371_v57  ;;  %v3394_v49 = vld [vmem:[#allocation7 + $0x2f0] sm:$0xff]  ;;  %v3399_v57 = vld [vmem:[#allocation7 + $0x318] sm:$0xff] }
 0x2e1   :  { %3753 = vmatprep.subr.bf16.mxu0 %v6718_v54  ;;  %3794 = vmatprep.subr.bf16.mxu1 %v6720_v51  ;;  %v6766_v48 = vcombine.high %v3420_v45, %v3424_v46  ;;  %v6765_v50 = vcombine.low %v3420_v45, %v3424_v46  ;;  %v3366_v54 = vld [vmem:[#allocation7 + $0x210] sm:$0xff] }
 0x2e2   :  { %v6713_v56 = vcombine.low %v3366_v54, %v3370_v55  ;;  %v6714_v51 = vcombine.high %v3366_v54, %v3370_v55 }
 0x2e4   :  { %3754 = vmatpush1.bf16.msra.mxu0 %v6717_v60  ;;  %3795 = vmatpush1.bf16.msra.mxu1 %v6719_v61 }
 0x2e5   :  { %3755 = vmatprep.subr.bf16.mxu0 %v6726_v0  ;;  %3796 = vmatprep.subr.bf16.mxu1 %v6728_v14  ;;  %v2754_v0 = vld [vmem:[%s8551_s2 + $0x4] sm:$0xf] }
 0x2e8   :  { %3756 = vmatpush1.bf16.msra.mxu0 %v6725_v2  ;;  %3797 = vmatpush1.bf16.msra.mxu1 %v6727_v3 }
 0x2e9   :  { %3757 = vmatprep.subr.bf16.mxu0 %v6734_v4  ;;  %3798 = vmatprep.subr.bf16.mxu1 %v6736_v10 }
 0x2ec   :  { %3758 = vmatpush1.bf16.msra.mxu0 %v6733_v15  ;;  %3799 = vmatpush1.bf16.msra.mxu1 %v6735_v16 }
 0x2ed   :  { %3759 = vmatprep.subr.bf16.mxu0 %v6742_v21  ;;  %3800 = vmatprep.subr.bf16.mxu1 %v6744_v22 }
 0x2f0   :  { %3760 = vmatpush1.bf16.msra.mxu0 %v6741_v28  ;;  %3801 = vmatpush1.bf16.msra.mxu1 %v6743_v7  ;;  %v3374_v7 = vld [vmem:[#allocation7 + $0x250] sm:$0xff] }
 0x2f1   :  { %3761 = vmatprep.subr.bf16.mxu0 %v6750_v29  ;;  %3802 = vmatprep.subr.bf16.mxu1 %v6752_v31  ;;  %v3378_v29 = vld [vmem:[#allocation7 + $0x270] sm:$0xff]  ;;  %v3375_v31 = vld [vmem:[#allocation7 + $0x258] sm:$0xff] }
 0x2f2   :  { %v6722_v36 = vcombine.high %v3374_v7, %v3378_v29 }
 0x2f4   :  { %3762 = vmatpush1.bf16.msra.mxu0 %v6749_v32  ;;  %3803 = vmatpush1.bf16.msra.mxu1 %v6751_v33  ;;  %v3379_v32 = vld [vmem:[#allocation7 + $0x278] sm:$0xff] }
 0x2f5   :  { %3763 = vmatprep.subr.bf16.mxu0 %v6758_v38  ;;  %3804 = vmatprep.subr.bf16.mxu1 %v6760_v44  ;;  %v6724_v37 = vcombine.high %v3375_v31, %v3379_v32  ;;  %v3382_v38 = vld [vmem:[#allocation7 + $0x290] sm:$0xff]  ;;  %v6721_v44 = vcombine.low %v3374_v7, %v3378_v29  ;;  %v6723_v45 = vcombine.low %v3375_v31, %v3379_v32  ;;  %v3300_v31 = vld [vmem:[#allocation7] sm:$0xff] }
 0x2f6   :  { %v6730_v46 = vcombine.high %v3382_v38, %v3386_v39  ;;  %v3304_v32 = vld [vmem:[#allocation7 + $0x20] sm:$0xff] }
 0x2f8   :  { %3764 = vmatpush1.bf16.msra.mxu0 %v6757_v41  ;;  %3805 = vmatpush1.bf16.msra.mxu1 %v6759_v43  ;;  %v3383_v41 = vld [vmem:[#allocation7 + $0x298] sm:$0xff] }
 0x2f9   :  { %3765 = vmatprep.subr.bf16.mxu0 %v6766_v48  ;;  %3806 = vmatprep.subr.bf16.mxu1 %v6768_v53  ;;  %v3387_v43 = vld [vmem:[#allocation7 + $0x2b8] sm:$0xff]  ;;  %v3390_v48 = vld [vmem:[#allocation7 + $0x2d0] sm:$0xff]  ;;  %v6729_v53 = vcombine.low %v3382_v38, %v3386_v39 }
 0x2fa   :  { %v6732_v47 = vcombine.high %v3383_v41, %v3387_v43  ;;  %v6731_v54 = vcombine.low %v3383_v41, %v3387_v43  ;;  %v6738_v55 = vcombine.high %v3390_v48, %v3394_v49  ;;  %v6774_v41 = vcombine.high %v3300_v31, %v3304_v32 }
 0x2fc   :  { %3766 = vmatpush1.bf16.msra.mxu0 %v6765_v50  ;;  %3807 = vmatpush1.bf16.msra.mxu1 %v6767_v52  ;;  %v3391_v50 = vld [vmem:[#allocation7 + $0x2d8] sm:$0xff] }
 0x2fd   :  { %3833 = vmatprep.subr.bf16.mxu0 %v6714_v51  ;;  %3874 = vmatprep.subr.bf16.mxu1 %v6716_v59  ;;  %v3395_v52 = vld [vmem:[#allocation7 + $0x2f8] sm:$0xff]  ;;  %v3402_v51 = vld [vmem:[#allocation7 + $0x330] sm:$0xff]  ;;  %v6737_v59 = vcombine.low %v3390_v48, %v3394_v49  ;;  %v6773_v48 = vcombine.low %v3300_v31, %v3304_v32 }
 0x2fe   :  { %v6740_v42 = vcombine.high %v3391_v50, %v3395_v52 }
 0x391   :  { %v7309_v60 = vpop.f32.mrb[32].mxu0  ;;  %v7331_v61 = vpop.f32.mrb[32].mxu1 }
 0x392   :  { %v7310_v14 = vpop.f32.mrb[33].mxu0  ;;  %v7332_v19 = vpop.f32.mrb[33].mxu1 }
 0x393   :  { %v7311_v20 = vadd.f32 %v7310_v14, %v7309_v60  ;;  %v7333_v23 = vadd.f32 %v7332_v19, %v7331_v61  ;;  %v7312_v1 = vpop.f32.mrb[34].mxu0  ;;  %v7334_v2 = vpop.f32.mrb[34].mxu1  ;;  %v6739_v60 = vcombine.low %v3391_v50, %v3395_v52  ;;  %v3406_v14 = vld [vmem:[#allocation7 + $0x350] sm:$0xff] }
 0x394   :  { %v7313_v3 = vpop.f32.mrb[35].mxu0  ;;  %v7335_v4 = vpop.f32.mrb[35].mxu1  ;;  %v3410_v19 = vld [vmem:[#allocation7 + $0x370] sm:$0xff] }
 0x395   :  { %v3174_v10 = vadd.f32 %v7311_v20, %v2754_v0  ;;  %v3407_v20 = vld [vmem:[#allocation7 + $0x358] sm:$0xff]  ;;  %v6754_v3 = vcombine.high %v3406_v14, %v3410_v19 }
 0x397   :  { %v3214_v11 = vadd.f32 %v7333_v23, %v3174_v10  ;;  %v3411_v23 = vld [vmem:[#allocation7 + $0x378] sm:$0xff]  ;;  %v3414_v10 = vld [vmem:[#allocation7 + $0x390] sm:$0xff] }
 0x398   :  { %v6756_v4 = vcombine.high %v3407_v20, %v3411_v23 }
 0x3b1   :  { %v7353_v12 = vpop.f32.mrb[36].mxu0  ;;  %v7375_v40 = vpop.f32.mrb[36].mxu1 }
 0x3b2   :  { %v7354_v13 = vpop.f32.mrb[37].mxu0  ;;  %v7376_v15 = vpop.f32.mrb[37].mxu1 }
 0x3b3   :  { %v7355_v16 = vadd.f32 %v7354_v13, %v7353_v12  ;;  %v7377_v21 = vadd.f32 %v7376_v15, %v7375_v40  ;;  %v7356_v22 = vpop.f32.mrb[38].mxu0  ;;  %v7378_v24 = vpop.f32.mrb[38].mxu1  ;;  %v3415_v12 = vld [vmem:[#allocation7 + $0x398] sm:$0xff]  ;;  %v6753_v13 = vcombine.low %v3406_v14, %v3410_v19  ;;  %v6755_v15 = vcombine.low %v3407_v20, %v3411_v23  ;;  %v3332_v23 = vld [vmem:[#allocation7 + $0x100] sm:$0xff] }
 0x3b4   :  { %v7357_v25 = vpop.f32.mrb[39].mxu0  ;;  %v7379_v26 = vpop.f32.mrb[39].mxu1  ;;  %v3419_v40 = vld [vmem:[#allocation7 + $0x3b8] sm:$0xff]  ;;  %v3422_v22 = vld [vmem:[#allocation7 + $0x3d0] sm:$0xff] }
 0x3b5   :  { %v3254_v27 = vadd.f32 %v7355_v16, %v3214_v11  ;;  %v3418_v11 = vld [vmem:[#allocation7 + $0x3b0] sm:$0xff]  ;;  %v3423_v25 = vld [vmem:[#allocation7 + $0x3d8] sm:$0xff] }
 0x3b6   :  { %v6762_v16 = vcombine.high %v3414_v10, %v3418_v11  ;;  %v3426_v24 = vld [vmem:[#allocation7 + $0x3f0] sm:$0xff]  ;;  %v3427_v26 = vld [vmem:[#allocation7 + $0x3f8] sm:$0xff] }
 0x3b7   :  { %v3294_v28 = vadd.f32 %v7377_v21, %v3254_v27  ;;  %v6764_v21 = vcombine.high %v3415_v12, %v3419_v40  ;;  %v6761_v27 = vcombine.low %v3414_v10, %v3418_v11  ;;  %v6770_v7 = vcombine.high %v3422_v22, %v3426_v24 }
 0x3b8   :  { %v6772_v29 = vcombine.high %v3423_v25, %v3427_v26  ;;  %v6769_v38 = vcombine.low %v3422_v22, %v3426_v24  ;;  %v6771_v39 = vcombine.low %v3423_v25, %v3427_v26  ;;  %v3348_v26 = vld [vmem:[#allocation7 + $0x180] sm:$0xff] }
 0x3b9   :  { %v8458_v33 = vpack.c.bf16 %v3294_v28, %v3294_v28  ;;  %v6763_v28 = vcombine.low %v3415_v12, %v3419_v40  ;;  %v3340_v40 = vld [vmem:[#allocation7 + $0x140] sm:$0xff] }
 0x3bb   :  { %v8461_v34 = vrot.slane %v8458_v33, 1 }
 0x3bd   :  { %3784 = vmatmul.mubr.bf16.vlgmr.msra.gmra.mrb[40].mxu0 %v8461_v34  ;;  %3825 = vmatmul.mubr.bf16.vlgmr.msra.gmra.mrb[40].mxu1 %v8461_v34 }
 0x3be   :  { %3834 = vmatpush1.bf16.msra.mxu0 %v6713_v56  ;;  %3875 = vmatpush1.bf16.msra.mxu1 %v6715_v58  ;;  %v3398_v56 = vld [vmem:[#allocation7 + $0x310] sm:$0xff]  ;;  %v3403_v58 = vld [vmem:[#allocation7 + $0x338] sm:$0xff] }
 0x3bf   :  { %3835 = vmatprep.subr.bf16.mxu0 %v6722_v36  ;;  %3876 = vmatprep.subr.bf16.mxu1 %v6724_v37  ;;  %v6746_v61 = vcombine.high %v3398_v56, %v3402_v51  ;;  %v6748_v0 = vcombine.high %v3399_v57, %v3403_v58  ;;  %v6745_v1 = vcombine.low %v3398_v56, %v3402_v51  ;;  %v3301_v36 = vld [vmem:[#allocation7 + $0x8] sm:$0xff] }
 0x3c0   :  { %3865 = vmatprep.mubr.bf16.mxu0 %v8199_v17  ;;  %3906 = vmatprep.mubr.bf16.mxu1 %v8199_v17  ;;  %v6747_v2 = vcombine.low %v3399_v57, %v3403_v58  ;;  %v3305_v37 = vld [vmem:[#allocation7 + $0x28] sm:$0xff] }
 0x3c1   :  { %v6776_v43 = vcombine.high %v3301_v36, %v3305_v37  ;;  %v6775_v49 = vcombine.low %v3301_v36, %v3305_v37  ;;  %v3356_v37 = vld [vmem:[#allocation7 + $0x1c0] sm:$0xff] }
 0x3c2   :  { %3836 = vmatpush1.bf16.msra.mxu0 %v6721_v44  ;;  %3877 = vmatpush1.bf16.msra.mxu1 %v6723_v45  ;;  %v3308_v44 = vld [vmem:[#allocation7 + $0x40] sm:$0xff] }
 0x3c3   :  { %3837 = vmatprep.subr.bf16.mxu0 %v6730_v46  ;;  %3878 = vmatprep.subr.bf16.mxu1 %v6732_v47  ;;  %v3312_v45 = vld [vmem:[#allocation7 + $0x60] sm:$0xff]  ;;  %v3309_v46 = vld [vmem:[#allocation7 + $0x48] sm:$0xff] }
 0x3c4   :  { %v3313_v47 = vld [vmem:[#allocation7 + $0x68] sm:$0xff]  ;;  %v6782_v50 = vcombine.high %v3308_v44, %v3312_v45  ;;  %v6781_v56 = vcombine.low %v3308_v44, %v3312_v45 }
 0x3c5   :  { %v6784_v52 = vcombine.high %v3309_v46, %v3313_v47  ;;  %v6783_v51 = vcombine.low %v3309_v46, %v3313_v47  ;;  %v3302_v47 = vld [vmem:[#allocation7 + $0x10] sm:$0xff] }
 0x3c6   :  { %3838 = vmatpush1.bf16.msra.mxu0 %v6729_v53  ;;  %3879 = vmatpush1.bf16.msra.mxu1 %v6731_v54  ;;  %v3316_v53 = vld [vmem:[#allocation7 + $0x80] sm:$0xff] }
 0x3c7   :  { %3839 = vmatprep.subr.bf16.mxu0 %v6738_v55  ;;  %3880 = vmatprep.subr.bf16.mxu1 %v6740_v42  ;;  %v3320_v54 = vld [vmem:[#allocation7 + $0xa0] sm:$0xff]  ;;  %v3317_v55 = vld [vmem:[#allocation7 + $0x88] sm:$0xff] }
 0x3c8   :  { %v3321_v42 = vld [vmem:[#allocation7 + $0xa8] sm:$0xff]  ;;  %v6790_v57 = vcombine.high %v3316_v53, %v3320_v54  ;;  %v6789_v14 = vcombine.low %v3316_v53, %v3320_v54 }
 0x3c9   :  { %v6792_v58 = vcombine.high %v3317_v55, %v3321_v42 }
 0x3ca   :  { %3840 = vmatpush1.bf16.msra.mxu0 %v6737_v59  ;;  %3881 = vmatpush1.bf16.msra.mxu1 %v6739_v60  ;;  %v3324_v59 = vld [vmem:[#allocation7 + $0xc0] sm:$0xff] }
 0x3cb   :  { %3841 = vmatprep.subr.bf16.mxu0 %v6746_v61  ;;  %3882 = vmatprep.subr.bf16.mxu1 %v6748_v0  ;;  %v3328_v60 = vld [vmem:[#allocation7 + $0xe0] sm:$0xff]  ;;  %v3325_v61 = vld [vmem:[#allocation7 + $0xc8] sm:$0xff] }
 0x3cc   :  { %v3329_v0 = vld [vmem:[#allocation7 + $0xe8] sm:$0xff]  ;;  %v6798_v19 = vcombine.high %v3324_v59, %v3328_v60 }
 0x3cd   :  { %v6800_v20 = vcombine.high %v3325_v61, %v3329_v0  ;;  %v6799_v10 = vcombine.low %v3325_v61, %v3329_v0  ;;  %v3318_v0 = vld [vmem:[#allocation7 + $0x90] sm:$0xff] }
 0x3ce   :  { %3842 = vmatpush1.bf16.msra.mxu0 %v6745_v1  ;;  %3883 = vmatpush1.bf16.msra.mxu1 %v6747_v2  ;;  %v3336_v1 = vld [vmem:[#allocation7 + $0x120] sm:$0xff]  ;;  %v3333_v2 = vld [vmem:[#allocation7 + $0x108] sm:$0xff] }
 0x3cf   :  { %3843 = vmatprep.subr.bf16.mxu0 %v6754_v3  ;;  %3884 = vmatprep.subr.bf16.mxu1 %v6756_v4  ;;  %v3337_v3 = vld [vmem:[#allocation7 + $0x128] sm:$0xff]  ;;  %v6797_v4 = vcombine.low %v3324_v59, %v3328_v60  ;;  %v6806_v11 = vcombine.high %v3332_v23, %v3336_v1 }
 0x3d0   :  { %v6808_v12 = vcombine.high %v3333_v2, %v3337_v3  ;;  %v6807_v22 = vcombine.low %v3333_v2, %v3337_v3  ;;  %v3326_v3 = vld [vmem:[#allocation7 + $0xd0] sm:$0xff] }
 0x3d2   :  { %3844 = vmatpush1.bf16.msra.mxu0 %v6753_v13  ;;  %3885 = vmatpush1.bf16.msra.mxu1 %v6755_v15  ;;  %v3344_v13 = vld [vmem:[#allocation7 + $0x160] sm:$0xff]  ;;  %v3341_v15 = vld [vmem:[#allocation7 + $0x148] sm:$0xff] }
 0x3d3   :  { %3845 = vmatprep.subr.bf16.mxu0 %v6762_v16  ;;  %3886 = vmatprep.subr.bf16.mxu1 %v6764_v21  ;;  %v3345_v16 = vld [vmem:[#allocation7 + $0x168] sm:$0xff]  ;;  %v6805_v21 = vcombine.low %v3332_v23, %v3336_v1  ;;  %v6814_v24 = vcombine.high %v3340_v40, %v3344_v13 }
 0x3d4   :  { %v6816_v25 = vcombine.high %v3341_v15, %v3345_v16  ;;  %v6815_v31 = vcombine.low %v3341_v15, %v3345_v16  ;;  %v3334_v16 = vld [vmem:[#allocation7 + $0x110] sm:$0xff] }
 0x3d6   :  { %3846 = vmatpush1.bf16.msra.mxu0 %v6761_v27  ;;  %3887 = vmatpush1.bf16.msra.mxu1 %v6763_v28  ;;  %v3352_v27 = vld [vmem:[#allocation7 + $0x1a0] sm:$0xff]  ;;  %v3349_v28 = vld [vmem:[#allocation7 + $0x188] sm:$0xff] }
 0x3d7   :  { %3847 = vmatprep.subr.bf16.mxu0 %v6770_v7  ;;  %3888 = vmatprep.subr.bf16.mxu1 %v6772_v29  ;;  %v3353_v7 = vld [vmem:[#allocation7 + $0x1a8] sm:$0xff]  ;;  %v6813_v29 = vcombine.low %v3340_v40, %v3344_v13  ;;  %v6822_v32 = vcombine.high %v3348_v26, %v3352_v27 }
 0x3d8   :  { %v6824_v36 = vcombine.high %v3349_v28, %v3353_v7  ;;  %v6823_v44 = vcombine.low %v3349_v28, %v3353_v7  ;;  %v3342_v28 = vld [vmem:[#allocation7 + $0x150] sm:$0xff] }
 0x3d9   :  { %v3346_v7 = vld [vmem:[#allocation7 + $0x170] sm:$0xff] }
 0x3da   :  { %3848 = vmatpush1.bf16.msra.mxu0 %v6769_v38  ;;  %3889 = vmatpush1.bf16.msra.mxu1 %v6771_v39  ;;  %v3360_v38 = vld [vmem:[#allocation7 + $0x1e0] sm:$0xff]  ;;  %v3357_v39 = vld [vmem:[#allocation7 + $0x1c8] sm:$0xff] }
 0x3db   :  { %4235 = vmatprep.subr.bf16.mxu0 %v6774_v41  ;;  %4276 = vmatprep.subr.bf16.mxu1 %v6776_v43  ;;  %v3361_v41 = vld [vmem:[#allocation7 + $0x1e8] sm:$0xff]  ;;  %v6821_v43 = vcombine.low %v3348_v26, %v3352_v27  ;;  %v6830_v45 = vcombine.high %v3356_v37, %v3360_v38 }
 0x3dc   :  { %v6832_v46 = vcombine.high %v3357_v39, %v3361_v41  ;;  %v6831_v53 = vcombine.low %v3357_v39, %v3361_v41  ;;  %v3350_v39 = vld [vmem:[#allocation7 + $0x190] sm:$0xff] }
 0x3dd   :  { %3866 = vmatmul.mubr.bf16.vlgmr.msra.gmra.mrb[44].mxu0 %v8461_v34  ;;  %3907 = vmatmul.mubr.bf16.vlgmr.msra.gmra.mrb[44].mxu1 %v8461_v34  ;;  %v6791_v34 = vcombine.low %v3317_v55, %v3321_v42  ;;  %v3310_v42 = vld [vmem:[#allocation7 + $0x50] sm:$0xff] }
 0x3de   :  { %4236 = vmatpush1.bf16.msra.mxu0 %v6773_v48  ;;  %4277 = vmatpush1.bf16.msra.mxu1 %v6775_v49  ;;  %v3306_v48 = vld [vmem:[#allocation7 + $0x30] sm:$0xff]  ;;  %v3303_v49 = vld [vmem:[#allocation7 + $0x18] sm:$0xff] }
 0x3df   :  { %4237 = vmatprep.subr.bf16.mxu0 %v6782_v50  ;;  %4278 = vmatprep.subr.bf16.mxu1 %v6784_v52  ;;  %v3307_v50 = vld [vmem:[#allocation7 + $0x38] sm:$0xff]  ;;  %v6829_v52 = vcombine.low %v3356_v37, %v3360_v38  ;;  %v6778_v54 = vcombine.high %v3302_v47, %v3306_v48  ;;  %v6818_v37 = vcombine.high %v3342_v28, %v3346_v7  ;;  %v3354_v41 = vld [vmem:[#allocation7 + $0x1b0] sm:$0xff] }
 0x3e0   :  { %4267 = vmatprep.mubr.bf16.mxu0 %v8199_v17  ;;  %4308 = vmatprep.mubr.bf16.mxu1 %v8199_v17  ;;  %v6780_v55 = vcombine.high %v3303_v49, %v3307_v50  ;;  %v6779_v59 = vcombine.low %v3303_v49, %v3307_v50  ;;  %v3358_v49 = vld [vmem:[#allocation7 + $0x1d0] sm:$0xff] }
 0x3e1   :  { %v3362_v50 = vld [vmem:[#allocation7 + $0x1f0] sm:$0xff] }
 0x3e2   :  { %4238 = vmatpush1.bf16.msra.mxu0 %v6781_v56  ;;  %4279 = vmatpush1.bf16.msra.mxu1 %v6783_v51  ;;  %v3314_v56 = vld [vmem:[#allocation7 + $0x70] sm:$0xff]  ;;  %v3311_v51 = vld [vmem:[#allocation7 + $0x58] sm:$0xff] }
 0x3e3   :  { %4239 = vmatprep.subr.bf16.mxu0 %v6790_v57  ;;  %4280 = vmatprep.subr.bf16.mxu1 %v6792_v58  ;;  %v3315_v57 = vld [vmem:[#allocation7 + $0x78] sm:$0xff]  ;;  %v6777_v58 = vcombine.low %v3302_v47, %v3306_v48  ;;  %v6786_v60 = vcombine.high %v3310_v42, %v3314_v56  ;;  %v6826_v47 = vcombine.high %v3350_v39, %v3354_v41 }
 0x3e4   :  { %v6788_v61 = vcombine.high %v3311_v51, %v3315_v57  ;;  %v6787_v23 = vcombine.low %v3311_v51, %v3315_v57  ;;  %v6833_v51 = vcombine.low %v3358_v49, %v3362_v50 }
 0x3e6   :  { %4240 = vmatpush1.bf16.msra.mxu0 %v6789_v14  ;;  %4281 = vmatpush1.bf16.msra.mxu1 %v6791_v34  ;;  %v3322_v14 = vld [vmem:[#allocation7 + $0xb0] sm:$0xff]  ;;  %v3319_v34 = vld [vmem:[#allocation7 + $0x98] sm:$0xff] }
 0x3e7   :  { %4241 = vmatprep.subr.bf16.mxu0 %v6798_v19  ;;  %4282 = vmatprep.subr.bf16.mxu1 %v6800_v20  ;;  %v3323_v19 = vld [vmem:[#allocation7 + $0xb8] sm:$0xff]  ;;  %v6785_v20 = vcombine.low %v3310_v42, %v3314_v56  ;;  %v6794_v1 = vcombine.high %v3318_v0, %v3322_v14  ;;  %v6834_v42 = vcombine.high %v3358_v49, %v3362_v50  ;;  %v7751_v50 = vld [vmem:[#allocation9 + $0x160] ss:$16 sps:$4 sm:$0xff]  }
 0x3e8   :  { %v6796_v2 = vcombine.high %v3319_v34, %v3323_v19  ;;  %v6795_v40 = vcombine.low %v3319_v34, %v3323_v19  ;;  %v7691_v34 = vld [vmem:[#allocation9 + $0x20] ss:$16 sps:$4 sm:$0xff]   ;;  %v7694_v19 = vld [vmem:[#allocation9 + $0x28] ss:$16 sps:$4 sm:$0xff]   ;;  %v7756_v49 = vld [vmem:[#allocation9 + $0x16c] ss:$16 sps:$4 sm:$0xff]  }
 0x3ea   :  { %4242 = vmatpush1.bf16.msra.mxu0 %v6797_v4  ;;  %4283 = vmatpush1.bf16.msra.mxu1 %v6799_v10  ;;  %v3330_v4 = vld [vmem:[#allocation7 + $0xf0] sm:$0xff]  ;;  %v3327_v10 = vld [vmem:[#allocation7 + $0xd8] sm:$0xff] }
 0x3eb   :  { %4243 = vmatprep.subr.bf16.mxu0 %v6806_v11  ;;  %4284 = vmatprep.subr.bf16.mxu1 %v6808_v12  ;;  %v3331_v11 = vld [vmem:[#allocation7 + $0xf8] sm:$0xff]  ;;  %v6793_v12 = vcombine.low %v3318_v0, %v3322_v14  ;;  %v6802_v13 = vcombine.high %v3326_v3, %v3330_v4  ;;  %v7693_v0 = vld [vmem:[#allocation9 + $0x24] ss:$16 sps:$4 sm:$0xff]  }
 0x3ec   :  { %v6804_v15 = vcombine.high %v3327_v10, %v3331_v11  ;;  %v6803_v26 = vcombine.low %v3327_v10, %v3331_v11  ;;  %v7696_v14 = vld [vmem:[#allocation9 + $0x2c] ss:$16 sps:$4 sm:$0xff]   ;;  %v7703_v10 = vld [vmem:[#allocation9 + $0x60] ss:$16 sps:$4 sm:$0xff]   ;;  %v7711_v11 = vld [vmem:[#allocation9 + $0x84] ss:$16 sps:$4 sm:$0xff]  }
 0x3ee   :  { %4244 = vmatpush1.bf16.msra.mxu0 %v6805_v21  ;;  %4285 = vmatpush1.bf16.msra.mxu1 %v6807_v22  ;;  %v3338_v21 = vld [vmem:[#allocation7 + $0x130] sm:$0xff]  ;;  %v3335_v22 = vld [vmem:[#allocation7 + $0x118] sm:$0xff] }
 0x3ef   :  { %4245 = vmatprep.subr.bf16.mxu0 %v6814_v24  ;;  %4286 = vmatprep.subr.bf16.mxu1 %v6816_v25  ;;  %v3339_v24 = vld [vmem:[#allocation7 + $0x138] sm:$0xff]  ;;  %v6801_v25 = vcombine.low %v3326_v3, %v3330_v4  ;;  %v6810_v27 = vcombine.high %v3334_v16, %v3338_v21  ;;  %v7705_v3 = vld [vmem:[#allocation9 + $0x64] ss:$16 sps:$4 sm:$0xff]  }
 0x3f0   :  { %v7708_v4 = vld [vmem:[#allocation9 + $0x6c] ss:$16 sps:$4 sm:$0xff]  }
 0x3f2   :  { %4246 = vmatpush1.bf16.msra.mxu0 %v6813_v29  ;;  %4287 = vmatpush1.bf16.msra.mxu1 %v6815_v31  ;;  %v3343_v29 = vld [vmem:[#allocation7 + $0x158] sm:$0xff] }
 0x3f3   :  { %4247 = vmatprep.subr.bf16.mxu0 %v6822_v32  ;;  %4288 = vmatprep.subr.bf16.mxu1 %v6824_v36  ;;  %v3347_v31 = vld [vmem:[#allocation7 + $0x178] sm:$0xff]  ;;  %v6809_v32 = vcombine.low %v3334_v16, %v3338_v21  ;;  %v6811_v36 = vcombine.low %v3335_v22, %v3339_v24  ;;  %v7715_v21 = vld [vmem:[#allocation9 + $0xa0] ss:$16 sps:$4 sm:$0xff]  }
 0x3f4   :  { %v6820_v38 = vcombine.high %v3343_v29, %v3347_v31  ;;  %v7720_v16 = vld [vmem:[#allocation9 + $0xac] ss:$16 sps:$4 sm:$0xff]  }
 0x3f6   :  { %4248 = vmatpush1.bf16.msra.mxu0 %v6821_v43  ;;  %4289 = vmatpush1.bf16.msra.mxu1 %v6823_v44  ;;  %v3351_v43 = vld [vmem:[#allocation7 + $0x198] sm:$0xff] }
 0x3f7   :  { %4249 = vmatprep.subr.bf16.mxu0 %v6830_v45  ;;  %4290 = vmatprep.subr.bf16.mxu1 %v6832_v46  ;;  %v3355_v44 = vld [vmem:[#allocation7 + $0x1b8] sm:$0xff]  ;;  %v6817_v45 = vcombine.low %v3342_v28, %v3346_v7  ;;  %v6819_v46 = vcombine.low %v3343_v29, %v3347_v31  ;;  %v7727_v7 = vld [vmem:[#allocation9 + $0xe0] ss:$16 sps:$4 sm:$0xff]   ;;  %v7735_v31 = vld [vmem:[#allocation9 + $0x104] ss:$16 sps:$4 sm:$0xff]  }
 0x3f8   :  { %v6828_v48 = vcombine.high %v3351_v43, %v3355_v44  ;;  %v7732_v28 = vld [vmem:[#allocation9 + $0xec] ss:$16 sps:$4 sm:$0xff]   ;;  %v7730_v29 = vld [vmem:[#allocation9 + $0xe8] ss:$16 sps:$4 sm:$0xff]  }
 0x3fa   :  { %4250 = vmatpush1.bf16.msra.mxu0 %v6829_v52  ;;  %4291 = vmatpush1.bf16.msra.mxu1 %v6831_v53  ;;  %v3359_v52 = vld [vmem:[#allocation7 + $0x1d8] sm:$0xff] }
 0x3fb   :  { %4317 = vmatprep.subr.bf16.mxu0 %v6778_v54  ;;  %4358 = vmatprep.subr.bf16.mxu1 %v6780_v55  ;;  %v3363_v53 = vld [vmem:[#allocation7 + $0x1f8] sm:$0xff]  ;;  %v6825_v54 = vcombine.low %v3350_v39, %v3354_v41  ;;  %v6827_v55 = vcombine.low %v3351_v43, %v3355_v44  ;;  %v7739_v41 = vld [vmem:[#allocation9 + $0x120] ss:$16 sps:$4 sm:$0xff]   ;;  %v7747_v44 = vld [vmem:[#allocation9 + $0x144] ss:$16 sps:$4 sm:$0xff]  }
 0x3fc   :  { %v6836_v56 = vcombine.high %v3359_v52, %v3363_v53  ;;  %v6835_v57 = vcombine.low %v3359_v52, %v3363_v53  ;;  %v7744_v39 = vld [vmem:[#allocation9 + $0x12c] ss:$16 sps:$4 sm:$0xff]   ;;  %v7742_v43 = vld [vmem:[#allocation9 + $0x128] ss:$16 sps:$4 sm:$0xff]   ;;  %v7759_v53 = vld [vmem:[#allocation9 + $0x184] ss:$16 sps:$4 sm:$0xff]  }
 0x3fd   :  { %4268 = vmatmul.mubr.bf16.vlgmr.msra.gmra.mrb[48].mxu0 %v8458_v33  ;;  %4309 = vmatmul.mubr.bf16.vlgmr.msra.gmra.mrb[48].mxu1 %v8458_v33  ;;  %v7754_v52 = vld [vmem:[#allocation9 + $0x168] ss:$16 sps:$4 sm:$0xff]  }
 0x3fe   :  { %4318 = vmatpush1.bf16.msra.mxu0 %v6777_v58  ;;  %4359 = vmatpush1.bf16.msra.mxu1 %v6779_v59  ;;  %v7687_v58 = vld [vmem:[#allocation9 + $0x4] ss:$16 sps:$4 sm:$0xff]   ;;  %v7690_v59 = vld [vmem:[#allocation9 + $0xc] ss:$16 sps:$4 sm:$0xff]  }
 0x3ff   :  { %4319 = vmatprep.subr.bf16.mxu0 %v6786_v60  ;;  %4360 = vmatprep.subr.bf16.mxu1 %v6788_v61  ;;  %v7685_v60 = vld [vmem:[#allocation9] ss:$16 sps:$4 sm:$0xff]   ;;  %v7688_v61 = vld [vmem:[#allocation9 + $0x8] ss:$16 sps:$4 sm:$0xff]  }
 0x400   :  { %4349 = vmatprep.mubr.bf16.mxu0 %v8199_v17  ;;  %4390 = vmatprep.mubr.bf16.mxu1 %v8199_v17  ;;  %v6812_v17 = vcombine.high %v3335_v22, %v3339_v24  ;;  %v7718_v22 = vld [vmem:[#allocation9 + $0xa8] ss:$16 sps:$4 sm:$0xff]   ;;  %v7723_v24 = vld [vmem:[#allocation9 + $0xc4] ss:$16 sps:$4 sm:$0xff]  }
 0x402   :  { %4320 = vmatpush1.bf16.msra.mxu0 %v6785_v20  ;;  %4361 = vmatpush1.bf16.msra.mxu1 %v6787_v23  ;;  %v7699_v20 = vld [vmem:[#allocation9 + $0x44] ss:$16 sps:$4 sm:$0xff]   ;;  %v7702_v23 = vld [vmem:[#allocation9 + $0x4c] ss:$16 sps:$4 sm:$0xff]  }
 0x403   :  { %4321 = vmatprep.subr.bf16.mxu0 %v6794_v1  ;;  %4362 = vmatprep.subr.bf16.mxu1 %v6796_v2  ;;  %v7697_v1 = vld [vmem:[#allocation9 + $0x40] ss:$16 sps:$4 sm:$0xff]   ;;  %v7700_v2 = vld [vmem:[#allocation9 + $0x48] ss:$16 sps:$4 sm:$0xff]  }
 0x406   :  { %4322 = vmatpush1.bf16.msra.mxu0 %v6793_v12  ;;  %4363 = vmatpush1.bf16.msra.mxu1 %v6795_v40  ;;  %v7714_v12 = vld [vmem:[#allocation9 + $0x8c] ss:$16 sps:$4 sm:$0xff]   ;;  %v7709_v40 = vld [vmem:[#allocation9 + $0x80] ss:$16 sps:$4 sm:$0xff]  }
 0x407   :  { %4323 = vmatprep.subr.bf16.mxu0 %v6802_v13  ;;  %4364 = vmatprep.subr.bf16.mxu1 %v6804_v15  ;;  %v7712_v13 = vld [vmem:[#allocation9 + $0x88] ss:$16 sps:$4 sm:$0xff]   ;;  %v7717_v15 = vld [vmem:[#allocation9 + $0xa4] ss:$16 sps:$4 sm:$0xff]  }
 0x40a   :  { %4324 = vmatpush1.bf16.msra.mxu0 %v6801_v25  ;;  %4365 = vmatpush1.bf16.msra.mxu1 %v6803_v26  ;;  %v7726_v25 = vld [vmem:[#allocation9 + $0xcc] ss:$16 sps:$4 sm:$0xff]   ;;  %v7721_v26 = vld [vmem:[#allocation9 + $0xc0] ss:$16 sps:$4 sm:$0xff]  }
 0x40b   :  { %4325 = vmatprep.subr.bf16.mxu0 %v6810_v27  ;;  %4366 = vmatprep.subr.bf16.mxu1 %v6812_v17  ;;  %v7724_v27 = vld [vmem:[#allocation9 + $0xc8] ss:$16 sps:$4 sm:$0xff]   ;;  %v7729_v17 = vld [vmem:[#allocation9 + $0xe4] ss:$16 sps:$4 sm:$0xff]  }
 0x40e   :  { %4326 = vmatpush1.bf16.msra.mxu0 %v6809_v32  ;;  %4367 = vmatpush1.bf16.msra.mxu1 %v6811_v36  ;;  %v7738_v32 = vld [vmem:[#allocation9 + $0x10c] ss:$16 sps:$4 sm:$0xff]   ;;  %v7733_v36 = vld [vmem:[#allocation9 + $0x100] ss:$16 sps:$4 sm:$0xff]  }
 0x40f   :  { %4327 = vmatprep.subr.bf16.mxu0 %v6818_v37  ;;  %4368 = vmatprep.subr.bf16.mxu1 %v6820_v38  ;;  %v7736_v37 = vld [vmem:[#allocation9 + $0x108] ss:$16 sps:$4 sm:$0xff]   ;;  %v7741_v38 = vld [vmem:[#allocation9 + $0x124] ss:$16 sps:$4 sm:$0xff]  }
 0x412   :  { %4328 = vmatpush1.bf16.msra.mxu0 %v6817_v45  ;;  %4369 = vmatpush1.bf16.msra.mxu1 %v6819_v46  ;;  %v7750_v45 = vld [vmem:[#allocation9 + $0x14c] ss:$16 sps:$4 sm:$0xff]   ;;  %v7745_v46 = vld [vmem:[#allocation9 + $0x140] ss:$16 sps:$4 sm:$0xff]  }
 0x413   :  { %4329 = vmatprep.subr.bf16.mxu0 %v6826_v47  ;;  %4370 = vmatprep.subr.bf16.mxu1 %v6828_v48  ;;  %v7748_v47 = vld [vmem:[#allocation9 + $0x148] ss:$16 sps:$4 sm:$0xff]   ;;  %v7753_v48 = vld [vmem:[#allocation9 + $0x164] ss:$16 sps:$4 sm:$0xff]  }
 0x416   :  { %4330 = vmatpush1.bf16.msra.mxu0 %v6825_v54  ;;  %4371 = vmatpush1.bf16.msra.mxu1 %v6827_v55  ;;  %v7762_v54 = vld [vmem:[#allocation9 + $0x18c] ss:$16 sps:$4 sm:$0xff]   ;;  %v7757_v55 = vld [vmem:[#allocation9 + $0x180] ss:$16 sps:$4 sm:$0xff]  }
 0x417   :  { %4331 = vmatprep.subr.bf16.mxu0 %v6834_v42  ;;  %4372 = vmatprep.subr.bf16.mxu1 %v6836_v56  ;;  %v7760_v42 = vld [vmem:[#allocation9 + $0x188] ss:$16 sps:$4 sm:$0xff]   ;;  %v7765_v56 = vld [vmem:[#allocation9 + $0x1a4] ss:$16 sps:$4 sm:$0xff]  }
 0x41a   :  { %4332 = vmatpush1.bf16.msra.mxu0 %v6833_v51  ;;  %4373 = vmatpush1.bf16.msra.mxu1 %v6835_v57  ;;  %v7768_v51 = vld [vmem:[#allocation9 + $0x1ac] ss:$16 sps:$4 sm:$0xff]   ;;  %v7763_v57 = vld [vmem:[#allocation9 + $0x1a0] ss:$16 sps:$4 sm:$0xff]  }
 0x41b   :  { %6025 = vmatprep.subr.bf16.mxu0 %v7687_v58  ;;  %6189 = vmatprep.subr.bf16.mxu1 %v7690_v59  ;;  %v7766_v58 = vld [vmem:[#allocation9 + $0x1a8] ss:$16 sps:$4 sm:$0xff]   ;;  %v7771_v59 = vld [vmem:[#allocation9 + $0x1c4] ss:$16 sps:$4 sm:$0xff]  }
 0x41d   :  { %4350 = vmatmul.mubr.bf16.vlgmr.msra.gmra.mrb[52].mxu0 %v8458_v33  ;;  %4391 = vmatmul.mubr.bf16.vlgmr.msra.gmra.mrb[52].mxu1 %v8458_v33  ;;  %v7706_v33 = vld [vmem:[#allocation9 + $0x68] ss:$16 sps:$4 sm:$0xff]  }
 0x41e   :  { %6026 = vmatpush1.bf16.msra.mxu0 %v7685_v60  ;;  %6190 = vmatpush1.bf16.msra.mxu1 %v7688_v61  ;;  %v7774_v60 = vld [vmem:[#allocation9 + $0x1cc] ss:$16 sps:$4 sm:$0xff]   ;;  %v7769_v61 = vld [vmem:[#allocation9 + $0x1c0] ss:$16 sps:$4 sm:$0xff]  }
 0x41f   :  { %6027 = vmatprep.subr.bf16.mxu0 %v7693_v0  ;;  %6191 = vmatprep.subr.bf16.mxu1 %v7696_v14  ;;  %v7772_v0 = vld [vmem:[#allocation9 + $0x1c8] ss:$16 sps:$4 sm:$0xff]   ;;  %v7777_v14 = vld [vmem:[#allocation9 + $0x1e4] ss:$16 sps:$4 sm:$0xff]  }
 0x422   :  { %6028 = vmatpush1.bf16.msra.mxu0 %v7691_v34  ;;  %6192 = vmatpush1.bf16.msra.mxu1 %v7694_v19  ;;  %v7780_v34 = vld [vmem:[#allocation9 + $0x1ec] ss:$16 sps:$4 sm:$0xff]   ;;  %v7775_v19 = vld [vmem:[#allocation9 + $0x1e0] ss:$16 sps:$4 sm:$0xff]  }
 0x423   :  { %6029 = vmatprep.subr.bf16.mxu0 %v7699_v20  ;;  %6193 = vmatprep.subr.bf16.mxu1 %v7702_v23  ;;  %v7778_v20 = vld [vmem:[#allocation9 + $0x1e8] ss:$16 sps:$4 sm:$0xff]   ;;  %v7783_v23 = vld [vmem:[#allocation9 + $0x204] ss:$16 sps:$4 sm:$0xff]  }
 0x426   :  { %6030 = vmatpush1.bf16.msra.mxu0 %v7697_v1  ;;  %6194 = vmatpush1.bf16.msra.mxu1 %v7700_v2  ;;  %v7786_v1 = vld [vmem:[#allocation9 + $0x20c] ss:$16 sps:$4 sm:$0xff]  }
 0x427   :  { %6031 = vmatprep.subr.bf16.mxu0 %v7705_v3  ;;  %6195 = vmatprep.subr.bf16.mxu1 %v7708_v4 }
 0x42a   :  { %6032 = vmatpush1.bf16.msra.mxu0 %v7703_v10  ;;  %6196 = vmatpush1.bf16.msra.mxu1 %v7706_v33 }
 0x42b   :  { %6033 = vmatprep.subr.bf16.mxu0 %v7711_v11  ;;  %6197 = vmatprep.subr.bf16.mxu1 %v7714_v12 }
 0x42e   :  { %6034 = vmatpush1.bf16.msra.mxu0 %v7709_v40  ;;  %6198 = vmatpush1.bf16.msra.mxu1 %v7712_v13 }
 0x42f   :  { %6035 = vmatprep.subr.bf16.mxu0 %v7717_v15  ;;  %6199 = vmatprep.subr.bf16.mxu1 %v7720_v16 }
 0x432   :  { %6036 = vmatpush1.bf16.msra.mxu0 %v7715_v21  ;;  %6200 = vmatpush1.bf16.msra.mxu1 %v7718_v22 }
 0x433   :  { %6037 = vmatprep.subr.bf16.mxu0 %v7723_v24  ;;  %6201 = vmatprep.subr.bf16.mxu1 %v7726_v25 }
 0x436   :  { %6038 = vmatpush1.bf16.msra.mxu0 %v7721_v26  ;;  %6202 = vmatpush1.bf16.msra.mxu1 %v7724_v27  ;;  %v8488_v27 = vld [vmem:[%s8552_s3 + $0x1] ss:$4 sm:$0xff] }
 0x437   :  { %6039 = vmatprep.subr.bf16.mxu0 %v7729_v17  ;;  %6203 = vmatprep.subr.bf16.mxu1 %v7732_v28  ;;  %v4405_v17 = vrot.slane %v8488_v27, %v8407_v5  ;;  %v4413_v28 = vrot.slane %v8488_v27, %v8410_v6 }
 0x43a   :  { %6040 = vmatpush1.bf16.msra.mxu0 %v7727_v7  ;;  %6204 = vmatpush1.bf16.msra.mxu1 %v7730_v29 }
 0x43b   :  { %6041 = vmatprep.subr.bf16.mxu0 %v7735_v31  ;;  %6205 = vmatprep.subr.bf16.mxu1 %v7738_v32  ;;  %v4409_v31 = vrot.slane %v8488_v27, %v8418_v8  ;;  %v4417_v32 = vrot.slane %v8488_v27, %v8421_v9 }
 0x43e   :  { %6042 = vmatpush1.bf16.msra.mxu0 %v7733_v36  ;;  %6206 = vmatpush1.bf16.msra.mxu1 %v7736_v37 }
 0x43f   :  { %6043 = vmatprep.subr.bf16.mxu0 %v7741_v38  ;;  %6207 = vmatprep.subr.bf16.mxu1 %v7744_v39 }
 0x442   :  { %6044 = vmatpush1.bf16.msra.mxu0 %v7739_v41  ;;  %6208 = vmatpush1.bf16.msra.mxu1 %v7742_v43 }
 0x443   :  { %6045 = vmatprep.subr.bf16.mxu0 %v7747_v44  ;;  %6209 = vmatprep.subr.bf16.mxu1 %v7750_v45 }
 0x446   :  { %6046 = vmatpush1.bf16.msra.mxu0 %v7745_v46  ;;  %6210 = vmatpush1.bf16.msra.mxu1 %v7748_v47 }
 0x447   :  { %6047 = vmatprep.subr.bf16.mxu0 %v7753_v48  ;;  %6211 = vmatprep.subr.bf16.mxu1 %v7756_v49 }
 0x44a   :  { %6048 = vmatpush1.bf16.msra.mxu0 %v7751_v50  ;;  %6212 = vmatpush1.bf16.msra.mxu1 %v7754_v52 }
 0x44b   :  { %6049 = vmatprep.subr.bf16.mxu0 %v7759_v53  ;;  %6213 = vmatprep.subr.bf16.mxu1 %v7762_v54 }
 0x44e   :  { %6050 = vmatpush1.bf16.msra.mxu0 %v7757_v55  ;;  %6214 = vmatpush1.bf16.msra.mxu1 %v7760_v42 }
 0x44f   :  { %6051 = vmatprep.subr.bf16.mxu0 %v7765_v56  ;;  %6215 = vmatprep.subr.bf16.mxu1 %v7768_v51  ;;  %v7781_v56 = vld [vmem:[#allocation9 + $0x200] ss:$16 sps:$4 sm:$0xff]   ;;  %v7784_v51 = vld [vmem:[#allocation9 + $0x208] ss:$16 sps:$4 sm:$0xff]  }
 0x452   :  { %6052 = vmatpush1.bf16.msra.mxu0 %v7763_v57  ;;  %6216 = vmatpush1.bf16.msra.mxu1 %v7766_v58  ;;  %v7789_v58 = vld [vmem:[#allocation9 + $0x224] ss:$16 sps:$4 sm:$0xff]  }
 0x453   :  { %6053 = vmatprep.subr.bf16.mxu0 %v7771_v59  ;;  %6217 = vmatprep.subr.bf16.mxu1 %v7774_v60  ;;  %v7792_v59 = vld [vmem:[#allocation9 + $0x22c] ss:$16 sps:$4 sm:$0xff]  }
 0x456   :  { %6054 = vmatpush1.bf16.msra.mxu0 %v7769_v61  ;;  %6218 = vmatpush1.bf16.msra.mxu1 %v7772_v0  ;;  %v7787_v61 = vld [vmem:[#allocation9 + $0x220] ss:$16 sps:$4 sm:$0xff]   ;;  %v7790_v0 = vld [vmem:[#allocation9 + $0x228] ss:$16 sps:$4 sm:$0xff]  }
 0x457   :  { %6055 = vmatprep.subr.bf16.mxu0 %v7777_v14  ;;  %6219 = vmatprep.subr.bf16.mxu1 %v7780_v34  ;;  %v7795_v14 = vld [vmem:[#allocation9 + $0x244] ss:$16 sps:$4 sm:$0xff]   ;;  %v7798_v34 = vld [vmem:[#allocation9 + $0x24c] ss:$16 sps:$4 sm:$0xff]  }
 0x45a   :  { %6056 = vmatpush1.bf16.msra.mxu0 %v7775_v19  ;;  %6220 = vmatpush1.bf16.msra.mxu1 %v7778_v20  ;;  %v7793_v19 = vld [vmem:[#allocation9 + $0x240] ss:$16 sps:$4 sm:$0xff]   ;;  %v7796_v20 = vld [vmem:[#allocation9 + $0x248] ss:$16 sps:$4 sm:$0xff]  }
 0x45b   :  { %6066 = vmatprep.subr.bf16.mxu0 %v7783_v23  ;;  %6230 = vmatprep.subr.bf16.mxu1 %v7786_v1  ;;  %v7801_v23 = vld [vmem:[#allocation9 + $0x264] ss:$16 sps:$4 sm:$0xff]   ;;  %v7804_v1 = vld [vmem:[#allocation9 + $0x26c] ss:$16 sps:$4 sm:$0xff]  }
 0x490   :  { %v3785_v2 = vpop.f32.mrb[40].mxu0  ;;  %v3826_v3 = vpop.f32.mrb[40].mxu1 }
 0x491   :  { %v3787_v4 = vpop.f32.mrb[41].mxu0  ;;  %v3828_v10 = vpop.f32.mrb[41].mxu1 }
 0x492   :  { %v3789_v33 = vpop.f32.mrb[42].mxu0  ;;  %v3830_v11 = vpop.f32.mrb[42].mxu1 }
 0x493   :  { %v3790_v12 = vpop.f32.mrb[43].mxu0  ;;  %v3831_v40 = vpop.f32.mrb[43].mxu1  ;;  %v7805_v33 = vld [vmem:[#allocation9 + $0x280] ss:$16 sps:$4 sm:$0xff]   ;;  %v7808_v11 = vld [vmem:[#allocation9 + $0x288] ss:$16 sps:$4 sm:$0xff]  }
 0x494   :  { %v7813_v12 = vld [vmem:[#allocation9 + $0x2a4] ss:$16 sps:$4 sm:$0xff]   ;;  %v7816_v40 = vld [vmem:[#allocation9 + $0x2ac] ss:$16 sps:$4 sm:$0xff]  }
 0x4b0   :  { %v8477_v13 = vpop.f32.mrb[44].mxu0  ;;  %v8479_v15 = vpop.f32.mrb[44].mxu1 }
 0x4b1   :  { %v8481_v16 = vpop.f32.mrb[45].mxu0  ;;  %v8483_v21 = vpop.f32.mrb[45].mxu1 }
 0x4b2   :  { %v3871_v22 = vpop.f32.mrb[46].mxu0  ;;  %v3912_v24 = vpop.f32.mrb[46].mxu1 }
 0x4b3   :  { %v3872_v25 = vpop.f32.mrb[47].mxu0  ;;  %v3913_v26 = vpop.f32.mrb[47].mxu1  ;;  %v7811_v22 = vld [vmem:[#allocation9 + $0x2a0] ss:$16 sps:$4 sm:$0xff]   ;;  %v7814_v24 = vld [vmem:[#allocation9 + $0x2a8] ss:$16 sps:$4 sm:$0xff]  }
 0x4b4   :  { %v7819_v25 = vld [vmem:[#allocation9 + $0x2c4] ss:$16 sps:$4 sm:$0xff]   ;;  %v7822_v26 = vld [vmem:[#allocation9 + $0x2cc] ss:$16 sps:$4 sm:$0xff]  }
 0x4d0   :  { %v4269_v7 = vpop.f32.mrb[48].mxu0  ;;  %v4310_v29 = vpop.f32.mrb[48].mxu1 }
 0x4d1   :  { %v4270_v36 = vadd.f32 %v4269_v7, %v3785_v2  ;;  %v4311_v37 = vadd.f32 %v4310_v29, %v3826_v3  ;;  %v4271_v38 = vpop.f32.mrb[49].mxu0  ;;  %v4312_v39 = vpop.f32.mrb[49].mxu1  ;;  %v7799_v2 = vld [vmem:[#allocation9 + $0x260] ss:$16 sps:$4 sm:$0xff]   ;;  %v7802_v3 = vld [vmem:[#allocation9 + $0x268] ss:$16 sps:$4 sm:$0xff]  }
 0x4d2   :  { %v4272_v41 = vadd.f32 %v4271_v38, %v3787_v4  ;;  %v4313_v43 = vadd.f32 %v4312_v39, %v3828_v10  ;;  %v4273_v44 = vpop.f32.mrb[50].mxu0  ;;  %v4314_v45 = vpop.f32.mrb[50].mxu1  ;;  %v7807_v4 = vld [vmem:[#allocation9 + $0x284] ss:$16 sps:$4 sm:$0xff]   ;;  %v7810_v10 = vld [vmem:[#allocation9 + $0x28c] ss:$16 sps:$4 sm:$0xff]  }
 0x4d3   :  { %v4442_v46 = vadd.f32 %v4405_v17, %v4270_v36  ;;  %v8498_v47 = vadd.f32 %v4413_v28, %v4311_v37  ;;  %v4274_v48 = vpop.f32.mrb[51].mxu0  ;;  %v4315_v49 = vpop.f32.mrb[51].mxu1  ;;  %v4421_v17 = vrot.slane %v8488_v27, %v2024_v62  ;;  %v4429_v28 = vrot.slane %v8488_v27, %v2032_v63  ;;  %v7817_v36 = vld [vmem:[#allocation9 + $0x2c0] ss:$16 sps:$4 sm:$0xff]   ;;  %v7820_v37 = vld [vmem:[#allocation9 + $0x2c8] ss:$16 sps:$4 sm:$0xff]  }
 0x4d4   :  { %v4443_v50 = vadd.f32 %v4409_v31, %v4272_v41  ;;  %v4445_v52 = vadd.f32 %v4417_v32, %v4313_v43  ;;  %v4425_v31 = vrot.slane %v8488_v27, %v2028_v35  ;;  %v4433_v32 = vrot.slane %v8488_v27, %v2036_v18  ;;  %v7825_v41 = vld [vmem:[#allocation9 + $0x2e4] ss:$16 sps:$4 sm:$0xff]   ;;  %v7828_v43 = vld [vmem:[#allocation9 + $0x2ec] ss:$16 sps:$4 sm:$0xff]   ;;  %v7823_v49 = vld [vmem:[#allocation9 + $0x2e0] ss:$16 sps:$4 sm:$0xff]  }
 0x4d5   :  { %v4450_v53 = vmax.f32 %v4442_v46, 0.0 }
 0x4d6   :  { %v4451_v54 = vmax.f32 %v4443_v50, 0.0  ;;  %v4453_v55 = vmax.f32 %v4445_v52, 0.0  ;;  %v7826_v50 = vld [vmem:[#allocation9 + $0x2e8] ss:$16 sps:$4 sm:$0xff]   ;;  %v7829_v52 = vld [vmem:[#allocation9 + $0x300] ss:$16 sps:$4 sm:$0xff]  }
 0x4d7   :  { %v4458_v57 = vpack.c.bf16 %v4450_v53, %v4450_v53  ;;  %v7832_v53 = vld [vmem:[#allocation9 + $0x308] ss:$16 sps:$4 sm:$0xff]  }
 0x4d8   :  { %v4459_v42 = vpack.c.bf16 %v4451_v54, %v4451_v54  ;;  %v4461_v60 = vpack.c.bf16 %v4453_v55, %v4453_v55  ;;  %v7837_v54 = vld [vmem:[#allocation9 + $0x324] ss:$16 sps:$4 sm:$0xff]   ;;  %v7840_v55 = vld [vmem:[#allocation9 + $0x32c] ss:$16 sps:$4 sm:$0xff]  }
 0x4da   :  { %6057 = vmatprep.mubr.bf16.mxu0 %v4459_v42  ;;  %6221 = vmatprep.mubr.bf16.mxu1 %v4459_v42  ;;  %v7835_v42 = vld [vmem:[#allocation9 + $0x320] ss:$16 sps:$4 sm:$0xff]  }
 0x4db   :  { %6058 = vmatmul.mubr.bf16.vlgmr.msra.gmra.mrb[56].mxu0 %v4458_v57  ;;  %6222 = vmatmul.mubr.bf16.vlgmr.msra.gmra.mrb[56].mxu1 %v4458_v57  ;;  %v7846_v57 = vld [vmem:[#allocation9 + $0x34c] ss:$16 sps:$4 sm:$0xff]  }
 0x4dc   :  { %6067 = vmatpush1.bf16.msra.mxu0 %v7781_v56  ;;  %6231 = vmatpush1.bf16.msra.mxu1 %v7784_v51  ;;  %v7838_v56 = vld [vmem:[#allocation9 + $0x328] ss:$16 sps:$4 sm:$0xff]   ;;  %v7843_v51 = vld [vmem:[#allocation9 + $0x344] ss:$16 sps:$4 sm:$0xff]  }
 0x4dd   :  { %6098 = vmatprep.mubr.bf16.mxu0 %v4461_v60  ;;  %6262 = vmatprep.mubr.bf16.mxu1 %v4461_v60  ;;  %v7849_v60 = vld [vmem:[#allocation9 + $0x364] ss:$16 sps:$4 sm:$0xff]  }
 0x4de   :  { %6068 = vmatprep.subr.bf16.mxu0 %v7789_v58  ;;  %6232 = vmatprep.subr.bf16.mxu1 %v7792_v59  ;;  %v7841_v58 = vld [vmem:[#allocation9 + $0x340] ss:$16 sps:$4 sm:$0xff]   ;;  %v7844_v59 = vld [vmem:[#allocation9 + $0x348] ss:$16 sps:$4 sm:$0xff]  }
 0x4e0   :  { %6069 = vmatpush1.bf16.msra.mxu0 %v7787_v61  ;;  %6233 = vmatpush1.bf16.msra.mxu1 %v7790_v0  ;;  %v7852_v61 = vld [vmem:[#allocation9 + $0x36c] ss:$16 sps:$4 sm:$0xff]   ;;  %v7847_v0 = vld [vmem:[#allocation9 + $0x360] ss:$16 sps:$4 sm:$0xff]  }
 0x4e1   :  { %6070 = vmatprep.subr.bf16.mxu0 %v7795_v14  ;;  %6234 = vmatprep.subr.bf16.mxu1 %v7798_v34  ;;  %v7850_v14 = vld [vmem:[#allocation9 + $0x368] ss:$16 sps:$4 sm:$0xff]   ;;  %v7855_v34 = vld [vmem:[#allocation9 + $0x384] ss:$16 sps:$4 sm:$0xff]  }
 0x4e4   :  { %6071 = vmatpush1.bf16.msra.mxu0 %v7793_v19  ;;  %6235 = vmatpush1.bf16.msra.mxu1 %v7796_v20  ;;  %v7858_v19 = vld [vmem:[#allocation9 + $0x38c] ss:$16 sps:$4 sm:$0xff]   ;;  %v7853_v20 = vld [vmem:[#allocation9 + $0x380] ss:$16 sps:$4 sm:$0xff]  }
 0x4e5   :  { %6072 = vmatprep.subr.bf16.mxu0 %v7801_v23  ;;  %6236 = vmatprep.subr.bf16.mxu1 %v7804_v1  ;;  %v7856_v23 = vld [vmem:[#allocation9 + $0x388] ss:$16 sps:$4 sm:$0xff]   ;;  %v7861_v1 = vld [vmem:[#allocation9 + $0x3a4] ss:$16 sps:$4 sm:$0xff]  }
 0x4e8   :  { %6073 = vmatpush1.bf16.msra.mxu0 %v7799_v2  ;;  %6237 = vmatpush1.bf16.msra.mxu1 %v7802_v3  ;;  %v7864_v2 = vld [vmem:[#allocation9 + $0x3ac] ss:$16 sps:$4 sm:$0xff]   ;;  %v7859_v3 = vld [vmem:[#allocation9 + $0x3a0] ss:$16 sps:$4 sm:$0xff]  }
 0x4e9   :  { %6074 = vmatprep.subr.bf16.mxu0 %v7807_v4  ;;  %6238 = vmatprep.subr.bf16.mxu1 %v7810_v10  ;;  %v7862_v4 = vld [vmem:[#allocation9 + $0x3a8] ss:$16 sps:$4 sm:$0xff]   ;;  %v7867_v10 = vld [vmem:[#allocation9 + $0x3c4] ss:$16 sps:$4 sm:$0xff]  }
 0x4ec   :  { %6075 = vmatpush1.bf16.msra.mxu0 %v7805_v33  ;;  %6239 = vmatpush1.bf16.msra.mxu1 %v7808_v11  ;;  %v7870_v33 = vld [vmem:[#allocation9 + $0x3cc] ss:$16 sps:$4 sm:$0xff]   ;;  %v7865_v11 = vld [vmem:[#allocation9 + $0x3c0] ss:$16 sps:$4 sm:$0xff]  }
 0x4ed   :  { %6076 = vmatprep.subr.bf16.mxu0 %v7813_v12  ;;  %6240 = vmatprep.subr.bf16.mxu1 %v7816_v40  ;;  %v7868_v12 = vld [vmem:[#allocation9 + $0x3c8] ss:$16 sps:$4 sm:$0xff]   ;;  %v7873_v40 = vld [vmem:[#allocation9 + $0x3e4] ss:$16 sps:$4 sm:$0xff]  }
 0x4f0   :  { %6077 = vmatpush1.bf16.msra.mxu0 %v7811_v22  ;;  %6241 = vmatpush1.bf16.msra.mxu1 %v7814_v24  ;;  %v4351_v7 = vpop.f32.mrb[52].mxu0  ;;  %v4392_v29 = vpop.f32.mrb[52].mxu1  ;;  %v7876_v22 = vld [vmem:[#allocation9 + $0x3ec] ss:$16 sps:$4 sm:$0xff]   ;;  %v7871_v24 = vld [vmem:[#allocation9 + $0x3e0] ss:$16 sps:$4 sm:$0xff]  }
 0x4f1   :  { %v4352_v62 = vadd.f32 %v4351_v7, %v8477_v13  ;;  %v4393_v38 = vadd.f32 %v4392_v29, %v8479_v15  ;;  %v4353_v39 = vpop.f32.mrb[53].mxu0  ;;  %v4394_v63 = vpop.f32.mrb[53].mxu1  ;;  %6078 = vmatprep.subr.bf16.mxu0 %v7819_v25  ;;  %6242 = vmatprep.subr.bf16.mxu1 %v7822_v26  ;;  %v7874_v25 = vld [vmem:[#allocation9 + $0x3e8] ss:$16 sps:$4 sm:$0xff]   ;;  %v4452_v26 = vmax.f32 %v8498_v47, 0.0 }
 0x4f2   :  { %v4354_v44 = vadd.f32 %v4353_v39, %v8481_v16  ;;  %v4395_v35 = vadd.f32 %v4394_v63, %v8483_v21  ;;  %v4355_v45 = vpop.f32.mrb[54].mxu0  ;;  %v4396_v30 = vpop.f32.mrb[54].mxu1  ;;  %v7831_v16 = vld [vmem:[#allocation9 + $0x304] ss:$16 sps:$4 sm:$0xff]   ;;  %v7834_v21 = vld [vmem:[#allocation9 + $0x30c] ss:$16 sps:$4 sm:$0xff]  }
 0x4f3   :  { %v8516_v46 = vadd.f32 %v4421_v17, %v4352_v62  ;;  %v8518_v18 = vadd.f32 %v4429_v28, %v4393_v38  ;;  %v4356_v27 = vpop.f32.mrb[55].mxu0  ;;  %v4397_v13 = vpop.f32.mrb[55].mxu1  ;;  %v7879_v17 = vld [vmem:[#allocation9 + $0x404] ss:$16 sps:$4 sm:$0xff]   ;;  %v7882_v28 = vld [vmem:[#allocation9 + $0x40c] ss:$16 sps:$4 sm:$0xff]  }
 0x4f4   :  { %v8520_v48 = vadd.f32 %v4425_v31, %v4354_v44  ;;  %v8522_v15 = vadd.f32 %v4433_v32, %v4395_v35  ;;  %6079 = vmatpush1.bf16.msra.mxu0 %v7817_v36  ;;  %6243 = vmatpush1.bf16.msra.mxu1 %v7820_v37  ;;  %v7877_v29 = vld [vmem:[#allocation9 + $0x400] ss:$16 sps:$4 sm:$0xff]   ;;  %v4460_v31 = vpack.c.bf16 %v4452_v26, %v4452_v26  ;;  %v7880_v32 = vld [vmem:[#allocation9 + $0x408] ss:$16 sps:$4 sm:$0xff]   ;;  %v7885_v37 = vld [vmem:[#allocation9 + $0x424] ss:$16 sps:$4 sm:$0xff]  }
 0x4f5   :  { %6080 = vmatprep.subr.bf16.mxu0 %v7825_v41  ;;  %6244 = vmatprep.subr.bf16.mxu1 %v7828_v43  ;;  %v7888_v62 = vld [vmem:[#allocation9 + $0x42c] ss:$16 sps:$4 sm:$0xff]   ;;  %v7883_v47 = vld [vmem:[#allocation9 + $0x420] ss:$16 sps:$4 sm:$0xff]   ;;  %v7886_v38 = vld [vmem:[#allocation9 + $0x428] ss:$16 sps:$4 sm:$0xff]  }
 0x4f6   :  { %v4455_v7 = vmax.f32 %v8520_v48, 0.0  ;;  %v7891_v39 = vld [vmem:[#allocation9 + $0x444] ss:$16 sps:$4 sm:$0xff]   ;;  %v7894_v63 = vld [vmem:[#allocation9 + $0x44c] ss:$16 sps:$4 sm:$0xff]  }
 0x4f7   :  { %v7889_v41 = vld [vmem:[#allocation9 + $0x440] ss:$16 sps:$4 sm:$0xff]   ;;  %v7892_v43 = vld [vmem:[#allocation9 + $0x448] ss:$16 sps:$4 sm:$0xff]   ;;  %v7897_v44 = vld [vmem:[#allocation9 + $0x464] ss:$16 sps:$4 sm:$0xff]  }
 0x4f8   :  { %6081 = vmatpush1.bf16.msra.mxu0 %v7823_v49  ;;  %6245 = vmatpush1.bf16.msra.mxu1 %v7826_v50  ;;  %v4463_v36 = vpack.c.bf16 %v4455_v7, %v4455_v7  ;;  %v7900_v35 = vld [vmem:[#allocation9 + $0x46c] ss:$16 sps:$4 sm:$0xff]   ;;  %v7895_v45 = vld [vmem:[#allocation9 + $0x460] ss:$16 sps:$4 sm:$0xff]   ;;  %v7898_v30 = vld [vmem:[#allocation9 + $0x468] ss:$16 sps:$4 sm:$0xff]  }
 0x4f9   :  { %6082 = vmatprep.subr.bf16.mxu0 %v7831_v16  ;;  %6246 = vmatprep.subr.bf16.mxu1 %v7834_v21  ;;  %v7903_v27 = vld [vmem:[#allocation9 + $0x484] ss:$16 sps:$4 sm:$0xff]   ;;  %v7906_v13 = vld [vmem:[#allocation9 + $0x48c] ss:$16 sps:$4 sm:$0xff]   ;;  %v7901_v48 = vld [vmem:[#allocation9 + $0x480] ss:$16 sps:$4 sm:$0xff]  }
 0x4fa   :  { %v7904_v49 = vld [vmem:[#allocation9 + $0x488] ss:$16 sps:$4 sm:$0xff]   ;;  %v7909_v50 = vld [vmem:[#allocation9 + $0x4a4] ss:$16 sps:$4 sm:$0xff]   ;;  %v7912_v16 = vld [vmem:[#allocation9 + $0x4ac] ss:$16 sps:$4 sm:$0xff]  }
 0x4fb   :  { %v7907_v21 = vld [vmem:[#allocation9 + $0x4a0] ss:$16 sps:$4 sm:$0xff]   ;;  %v7960_v26 = vld [vmem:[#allocation9 + $0x5ac] ss:$16 sps:$4 sm:$0xff]   ;;  %v7963_v7 = vld [vmem:[#allocation9 + $0x5c4] ss:$16 sps:$4 sm:$0xff]  }
 0x4fc   :  { %6083 = vmatpush1.bf16.msra.mxu0 %v7829_v52  ;;  %6247 = vmatpush1.bf16.msra.mxu1 %v7832_v53  ;;  %v7910_v52 = vld [vmem:[#allocation9 + $0x4a8] ss:$16 sps:$4 sm:$0xff]   ;;  %v7915_v53 = vld [vmem:[#allocation9 + $0x4c4] ss:$16 sps:$4 sm:$0xff]  }
 0x4fd   :  { %6084 = vmatprep.subr.bf16.mxu0 %v7837_v54  ;;  %6248 = vmatprep.subr.bf16.mxu1 %v7840_v55  ;;  %v7918_v54 = vld [vmem:[#allocation9 + $0x4cc] ss:$16 sps:$4 sm:$0xff]   ;;  %v7913_v55 = vld [vmem:[#allocation9 + $0x4c0] ss:$16 sps:$4 sm:$0xff]  }
 0x500   :  { %6085 = vmatpush1.bf16.msra.mxu0 %v7835_v42  ;;  %6249 = vmatpush1.bf16.msra.mxu1 %v7838_v56  ;;  %v7916_v42 = vld [vmem:[#allocation9 + $0x4c8] ss:$16 sps:$4 sm:$0xff]   ;;  %v7921_v56 = vld [vmem:[#allocation9 + $0x4e4] ss:$16 sps:$4 sm:$0xff]  }
 0x501   :  { %6086 = vmatprep.subr.bf16.mxu0 %v7843_v51  ;;  %6250 = vmatprep.subr.bf16.mxu1 %v7846_v57  ;;  %v7924_v51 = vld [vmem:[#allocation9 + $0x4ec] ss:$16 sps:$4 sm:$0xff]   ;;  %v7919_v57 = vld [vmem:[#allocation9 + $0x4e0] ss:$16 sps:$4 sm:$0xff]  }
 0x504   :  { %6087 = vmatpush1.bf16.msra.mxu0 %v7841_v58  ;;  %6251 = vmatpush1.bf16.msra.mxu1 %v7844_v59  ;;  %v7922_v58 = vld [vmem:[#allocation9 + $0x4e8] ss:$16 sps:$4 sm:$0xff]   ;;  %v7927_v59 = vld [vmem:[#allocation9 + $0x504] ss:$16 sps:$4 sm:$0xff]  }
 0x505   :  { %6088 = vmatprep.subr.bf16.mxu0 %v7849_v60  ;;  %6252 = vmatprep.subr.bf16.mxu1 %v7852_v61  ;;  %v7930_v60 = vld [vmem:[#allocation9 + $0x50c] ss:$16 sps:$4 sm:$0xff]   ;;  %v7925_v61 = vld [vmem:[#allocation9 + $0x500] ss:$16 sps:$4 sm:$0xff]  }
 0x508   :  { %6089 = vmatpush1.bf16.msra.mxu0 %v7847_v0  ;;  %6253 = vmatpush1.bf16.msra.mxu1 %v7850_v14  ;;  %v7928_v0 = vld [vmem:[#allocation9 + $0x508] ss:$16 sps:$4 sm:$0xff]   ;;  %v7933_v14 = vld [vmem:[#allocation9 + $0x524] ss:$16 sps:$4 sm:$0xff]  }
 0x509   :  { %6090 = vmatprep.subr.bf16.mxu0 %v7855_v34  ;;  %6254 = vmatprep.subr.bf16.mxu1 %v7858_v19  ;;  %v7936_v34 = vld [vmem:[#allocation9 + $0x52c] ss:$16 sps:$4 sm:$0xff]   ;;  %v7931_v19 = vld [vmem:[#allocation9 + $0x520] ss:$16 sps:$4 sm:$0xff]  }
 0x50c   :  { %6091 = vmatpush1.bf16.msra.mxu0 %v7853_v20  ;;  %6255 = vmatpush1.bf16.msra.mxu1 %v7856_v23  ;;  %v7934_v20 = vld [vmem:[#allocation9 + $0x528] ss:$16 sps:$4 sm:$0xff]   ;;  %v7939_v23 = vld [vmem:[#allocation9 + $0x544] ss:$16 sps:$4 sm:$0xff]  }
 0x50d   :  { %6092 = vmatprep.subr.bf16.mxu0 %v7861_v1  ;;  %6256 = vmatprep.subr.bf16.mxu1 %v7864_v2  ;;  %v7942_v1 = vld [vmem:[#allocation9 + $0x54c] ss:$16 sps:$4 sm:$0xff]   ;;  %v7937_v2 = vld [vmem:[#allocation9 + $0x540] ss:$16 sps:$4 sm:$0xff]  }
 0x510   :  { %6093 = vmatpush1.bf16.msra.mxu0 %v7859_v3  ;;  %6257 = vmatpush1.bf16.msra.mxu1 %v7862_v4  ;;  %v7940_v3 = vld [vmem:[#allocation9 + $0x548] ss:$16 sps:$4 sm:$0xff]   ;;  %v7945_v4 = vld [vmem:[#allocation9 + $0x564] ss:$16 sps:$4 sm:$0xff]  }
 0x511   :  { %6094 = vmatprep.subr.bf16.mxu0 %v7867_v10  ;;  %6258 = vmatprep.subr.bf16.mxu1 %v7870_v33  ;;  %v7948_v10 = vld [vmem:[#allocation9 + $0x56c] ss:$16 sps:$4 sm:$0xff]   ;;  %v7943_v33 = vld [vmem:[#allocation9 + $0x560] ss:$16 sps:$4 sm:$0xff]  }
 0x514   :  { %6095 = vmatpush1.bf16.msra.mxu0 %v7865_v11  ;;  %6259 = vmatpush1.bf16.msra.mxu1 %v7868_v12  ;;  %v7946_v11 = vld [vmem:[#allocation9 + $0x568] ss:$16 sps:$4 sm:$0xff]   ;;  %v7951_v12 = vld [vmem:[#allocation9 + $0x584] ss:$16 sps:$4 sm:$0xff]  }
 0x515   :  { %6096 = vmatprep.subr.bf16.mxu0 %v7873_v40  ;;  %6260 = vmatprep.subr.bf16.mxu1 %v7876_v22  ;;  %v7954_v40 = vld [vmem:[#allocation9 + $0x58c] ss:$16 sps:$4 sm:$0xff]   ;;  %v7949_v22 = vld [vmem:[#allocation9 + $0x580] ss:$16 sps:$4 sm:$0xff]  }
 0x518   :  { %6097 = vmatpush1.bf16.msra.mxu0 %v7871_v24  ;;  %6261 = vmatpush1.bf16.msra.mxu1 %v7874_v25  ;;  %v7952_v24 = vld [vmem:[#allocation9 + $0x588] ss:$16 sps:$4 sm:$0xff]   ;;  %v7957_v25 = vld [vmem:[#allocation9 + $0x5a4] ss:$16 sps:$4 sm:$0xff]  }
 0x519   :  { %6107 = vmatprep.subr.bf16.mxu0 %v7879_v17  ;;  %6271 = vmatprep.subr.bf16.mxu1 %v7882_v28  ;;  %v7955_v17 = vld [vmem:[#allocation9 + $0x5a0] ss:$16 sps:$4 sm:$0xff]   ;;  %v7958_v28 = vld [vmem:[#allocation9 + $0x5a8] ss:$16 sps:$4 sm:$0xff]  }
 0x51b   :  { %6099 = vmatmul.mubr.bf16.vlgmr.msra.gmra.mrb[56].mxu0 %v4460_v31  ;;  %6263 = vmatmul.mubr.bf16.vlgmr.msra.gmra.mrb[56].mxu1 %v4460_v31  ;;  %v7961_v31 = vld [vmem:[#allocation9 + $0x5c0] ss:$16 sps:$4 sm:$0xff]  }
 0x51c   :  { %6108 = vmatpush1.bf16.msra.mxu0 %v7877_v29  ;;  %6139 = vmatprep.mubr.bf16.mxu0 %v4463_v36  ;;  %v7966_v29 = vld [vmem:[#allocation9 + $0x5cc] ss:$16 sps:$4 sm:$0xff]  }
 0x51d   :  { %6272 = vmatpush1.bf16.msra.mxu1 %v7880_v32  ;;  %6303 = vmatprep.mubr.bf16.mxu1 %v4463_v36  ;;  %v7964_v32 = vld [vmem:[#allocation9 + $0x5c8] ss:$16 sps:$4 sm:$0xff]   ;;  %v7969_v36 = vld [vmem:[#allocation9 + $0x5e4] ss:$16 sps:$4 sm:$0xff]  }
 0x51e   :  { %6109 = vmatprep.subr.bf16.mxu0 %v7885_v37  ;;  %6273 = vmatprep.subr.bf16.mxu1 %v7888_v62  ;;  %v7972_v37 = vld [vmem:[#allocation9 + $0x5ec] ss:$16 sps:$4 sm:$0xff]   ;;  %v7967_v62 = vld [vmem:[#allocation9 + $0x5e0] ss:$16 sps:$4 sm:$0xff]  }
 0x520   :  { %6110 = vmatpush1.bf16.msra.mxu0 %v7883_v47  ;;  %v4454_v47 = vmax.f32 %v8516_v46, 0.0  ;;  %v7979_v46 = vld [vmem:[#allocation9 + $0x620] ss:$16 sps:$4 sm:$0xff]  }
 0x521   :  { %6274 = vmatpush1.bf16.msra.mxu1 %v7886_v38  ;;  %6111 = vmatprep.subr.bf16.mxu0 %v7891_v39  ;;  %v7970_v38 = vld [vmem:[#allocation9 + $0x5e8] ss:$16 sps:$4 sm:$0xff]   ;;  %v7975_v39 = vld [vmem:[#allocation9 + $0x604] ss:$16 sps:$4 sm:$0xff]  }
 0x522   :  { %6275 = vmatprep.subr.bf16.mxu1 %v7894_v63  ;;  %v7978_v63 = vld [vmem:[#allocation9 + $0x60c] ss:$16 sps:$4 sm:$0xff]  }
 0x524   :  { %6112 = vmatpush1.bf16.msra.mxu0 %v7889_v41  ;;  %v4457_v41 = vmax.f32 %v8522_v15, 0.0  ;;  %v7990_v15 = vld [vmem:[#allocation9 + $0x64c] ss:$16 sps:$4 sm:$0xff]  }
 0x525   :  { %6276 = vmatpush1.bf16.msra.mxu1 %v7892_v43  ;;  %6113 = vmatprep.subr.bf16.mxu0 %v7897_v44  ;;  %v7973_v43 = vld [vmem:[#allocation9 + $0x600] ss:$16 sps:$4 sm:$0xff]   ;;  %v4462_v44 = vpack.c.bf16 %v4454_v47, %v4454_v47 }
 0x526   :  { %6277 = vmatprep.subr.bf16.mxu1 %v7900_v35  ;;  %v7976_v35 = vld [vmem:[#allocation9 + $0x608] ss:$16 sps:$4 sm:$0xff]   ;;  %v8051_v47 = vld [vmem:[#allocation9 + $0x7a0] ss:$16 sps:$4 sm:$0xff]  }
 0x528   :  { %6114 = vmatpush1.bf16.msra.mxu0 %v7895_v45  ;;  %v7981_v45 = vld [vmem:[#allocation9 + $0x624] ss:$16 sps:$4 sm:$0xff]  }
 0x529   :  { %6278 = vmatpush1.bf16.msra.mxu1 %v7898_v30  ;;  %6115 = vmatprep.subr.bf16.mxu0 %v7903_v27  ;;  %v4465_v30 = vpack.c.bf16 %v4457_v41, %v4457_v41  ;;  %v7984_v27 = vld [vmem:[#allocation9 + $0x62c] ss:$16 sps:$4 sm:$0xff]   ;;  %v8057_v41 = vld [vmem:[#allocation9 + $0x7c0] ss:$16 sps:$4 sm:$0xff]  }
 0x52a   :  { %6279 = vmatprep.subr.bf16.mxu1 %v7906_v13  ;;  %v7982_v13 = vld [vmem:[#allocation9 + $0x628] ss:$16 sps:$4 sm:$0xff]  }
 0x52c   :  { %6116 = vmatpush1.bf16.msra.mxu0 %v7901_v48  ;;  %v7987_v48 = vld [vmem:[#allocation9 + $0x644] ss:$16 sps:$4 sm:$0xff]  }
 0x52d   :  { %6280 = vmatpush1.bf16.msra.mxu1 %v7904_v49  ;;  %6117 = vmatprep.subr.bf16.mxu0 %v7909_v50  ;;  %v7985_v49 = vld [vmem:[#allocation9 + $0x640] ss:$16 sps:$4 sm:$0xff]   ;;  %v7988_v50 = vld [vmem:[#allocation9 + $0x648] ss:$16 sps:$4 sm:$0xff]  }
 0x52e   :  { %6281 = vmatprep.subr.bf16.mxu1 %v7912_v16  ;;  %v7993_v16 = vld [vmem:[#allocation9 + $0x664] ss:$16 sps:$4 sm:$0xff]  }
 0x530   :  { %6118 = vmatpush1.bf16.msra.mxu0 %v7907_v21  ;;  %v7996_v21 = vld [vmem:[#allocation9 + $0x66c] ss:$16 sps:$4 sm:$0xff]  }
 0x531   :  { %6282 = vmatpush1.bf16.msra.mxu1 %v7910_v52  ;;  %6119 = vmatprep.subr.bf16.mxu0 %v7915_v53  ;;  %v7991_v52 = vld [vmem:[#allocation9 + $0x660] ss:$16 sps:$4 sm:$0xff]   ;;  %v7994_v53 = vld [vmem:[#allocation9 + $0x668] ss:$16 sps:$4 sm:$0xff]  }
 0x532   :  { %6283 = vmatprep.subr.bf16.mxu1 %v7918_v54  ;;  %v7999_v54 = vld [vmem:[#allocation9 + $0x684] ss:$16 sps:$4 sm:$0xff]  }
 0x534   :  { %6120 = vmatpush1.bf16.msra.mxu0 %v7913_v55  ;;  %v8002_v55 = vld [vmem:[#allocation9 + $0x68c] ss:$16 sps:$4 sm:$0xff]  }
 0x535   :  { %6284 = vmatpush1.bf16.msra.mxu1 %v7916_v42  ;;  %6121 = vmatprep.subr.bf16.mxu0 %v7921_v56  ;;  %v7997_v42 = vld [vmem:[#allocation9 + $0x680] ss:$16 sps:$4 sm:$0xff]   ;;  %v8000_v56 = vld [vmem:[#allocation9 + $0x688] ss:$16 sps:$4 sm:$0xff]  }
 0x536   :  { %6285 = vmatprep.subr.bf16.mxu1 %v7924_v51  ;;  %v8005_v51 = vld [vmem:[#allocation9 + $0x6a4] ss:$16 sps:$4 sm:$0xff]  }
 0x538   :  { %6122 = vmatpush1.bf16.msra.mxu0 %v7919_v57  ;;  %v8008_v57 = vld [vmem:[#allocation9 + $0x6ac] ss:$16 sps:$4 sm:$0xff]  }
 0x539   :  { %6286 = vmatpush1.bf16.msra.mxu1 %v7922_v58  ;;  %6123 = vmatprep.subr.bf16.mxu0 %v7927_v59  ;;  %v8003_v58 = vld [vmem:[#allocation9 + $0x6a0] ss:$16 sps:$4 sm:$0xff]   ;;  %v8006_v59 = vld [vmem:[#allocation9 + $0x6a8] ss:$16 sps:$4 sm:$0xff]  }
 0x53a   :  { %6287 = vmatprep.subr.bf16.mxu1 %v7930_v60  ;;  %v8011_v60 = vld [vmem:[#allocation9 + $0x6c4] ss:$16 sps:$4 sm:$0xff]  }
 0x53c   :  { %6124 = vmatpush1.bf16.msra.mxu0 %v7925_v61  ;;  %v8014_v61 = vld [vmem:[#allocation9 + $0x6cc] ss:$16 sps:$4 sm:$0xff]  }
 0x53d   :  { %6288 = vmatpush1.bf16.msra.mxu1 %v7928_v0  ;;  %6125 = vmatprep.subr.bf16.mxu0 %v7933_v14  ;;  %v8009_v0 = vld [vmem:[#allocation9 + $0x6c0] ss:$16 sps:$4 sm:$0xff]   ;;  %v8012_v14 = vld [vmem:[#allocation9 + $0x6c8] ss:$16 sps:$4 sm:$0xff]  }
 0x53e   :  { %6289 = vmatprep.subr.bf16.mxu1 %v7936_v34  ;;  %v8017_v34 = vld [vmem:[#allocation9 + $0x6e4] ss:$16 sps:$4 sm:$0xff]  }
 0x540   :  { %6126 = vmatpush1.bf16.msra.mxu0 %v7931_v19  ;;  %v8020_v19 = vld [vmem:[#allocation9 + $0x6ec] ss:$16 sps:$4 sm:$0xff]  }
 0x541   :  { %6290 = vmatpush1.bf16.msra.mxu1 %v7934_v20  ;;  %6127 = vmatprep.subr.bf16.mxu0 %v7939_v23  ;;  %v8015_v20 = vld [vmem:[#allocation9 + $0x6e0] ss:$16 sps:$4 sm:$0xff]   ;;  %v8018_v23 = vld [vmem:[#allocation9 + $0x6e8] ss:$16 sps:$4 sm:$0xff]  }
 0x542   :  { %6291 = vmatprep.subr.bf16.mxu1 %v7942_v1  ;;  %v8023_v1 = vld [vmem:[#allocation9 + $0x704] ss:$16 sps:$4 sm:$0xff]  }
 0x544   :  { %6128 = vmatpush1.bf16.msra.mxu0 %v7937_v2  ;;  %v8026_v2 = vld [vmem:[#allocation9 + $0x70c] ss:$16 sps:$4 sm:$0xff]  }
 0x545   :  { %6292 = vmatpush1.bf16.msra.mxu1 %v7940_v3  ;;  %6129 = vmatprep.subr.bf16.mxu0 %v7945_v4  ;;  %v8021_v3 = vld [vmem:[#allocation9 + $0x700] ss:$16 sps:$4 sm:$0xff]   ;;  %v8024_v4 = vld [vmem:[#allocation9 + $0x708] ss:$16 sps:$4 sm:$0xff]  }
 0x546   :  { %6293 = vmatprep.subr.bf16.mxu1 %v7948_v10  ;;  %v8029_v10 = vld [vmem:[#allocation9 + $0x724] ss:$16 sps:$4 sm:$0xff]  }
 0x548   :  { %6130 = vmatpush1.bf16.msra.mxu0 %v7943_v33  ;;  %v8032_v33 = vld [vmem:[#allocation9 + $0x72c] ss:$16 sps:$4 sm:$0xff]  }
 0x549   :  { %6294 = vmatpush1.bf16.msra.mxu1 %v7946_v11  ;;  %6131 = vmatprep.subr.bf16.mxu0 %v7951_v12  ;;  %v8027_v11 = vld [vmem:[#allocation9 + $0x720] ss:$16 sps:$4 sm:$0xff]   ;;  %v8030_v12 = vld [vmem:[#allocation9 + $0x728] ss:$16 sps:$4 sm:$0xff]  }
 0x54a   :  { %6295 = vmatprep.subr.bf16.mxu1 %v7954_v40  ;;  %v8035_v40 = vld [vmem:[#allocation9 + $0x744] ss:$16 sps:$4 sm:$0xff]  }
 0x54c   :  { %6132 = vmatpush1.bf16.msra.mxu0 %v7949_v22  ;;  %v8038_v22 = vld [vmem:[#allocation9 + $0x74c] ss:$16 sps:$4 sm:$0xff]  }
 0x54d   :  { %6296 = vmatpush1.bf16.msra.mxu1 %v7952_v24  ;;  %6133 = vmatprep.subr.bf16.mxu0 %v7957_v25  ;;  %v8033_v24 = vld [vmem:[#allocation9 + $0x740] ss:$16 sps:$4 sm:$0xff]   ;;  %v8036_v25 = vld [vmem:[#allocation9 + $0x748] ss:$16 sps:$4 sm:$0xff]  }
 0x54e   :  { %6297 = vmatprep.subr.bf16.mxu1 %v7960_v26  ;;  %v8041_v26 = vld [vmem:[#allocation9 + $0x764] ss:$16 sps:$4 sm:$0xff]  }
 0x550   :  { %6134 = vmatpush1.bf16.msra.mxu0 %v7955_v17  ;;  %v8044_v17 = vld [vmem:[#allocation9 + $0x76c] ss:$16 sps:$4 sm:$0xff]  }
 0x551   :  { %6298 = vmatpush1.bf16.msra.mxu1 %v7958_v28  ;;  %6135 = vmatprep.subr.bf16.mxu0 %v7963_v7  ;;  %v8039_v28 = vld [vmem:[#allocation9 + $0x760] ss:$16 sps:$4 sm:$0xff]   ;;  %v8042_v7 = vld [vmem:[#allocation9 + $0x768] ss:$16 sps:$4 sm:$0xff]  }
 0x552   :  { %6299 = vmatprep.subr.bf16.mxu1 %v7966_v29  ;;  %v8047_v29 = vld [vmem:[#allocation9 + $0x784] ss:$16 sps:$4 sm:$0xff]  }
 0x554   :  { %6136 = vmatpush1.bf16.msra.mxu0 %v7961_v31  ;;  %v8050_v31 = vld [vmem:[#allocation9 + $0x78c] ss:$16 sps:$4 sm:$0xff]  }
 0x555   :  { %6300 = vmatpush1.bf16.msra.mxu1 %v7964_v32  ;;  %6137 = vmatprep.subr.bf16.mxu0 %v7969_v36  ;;  %v8045_v32 = vld [vmem:[#allocation9 + $0x780] ss:$16 sps:$4 sm:$0xff]   ;;  %v8048_v36 = vld [vmem:[#allocation9 + $0x788] ss:$16 sps:$4 sm:$0xff]  }
 0x556   :  { %6301 = vmatprep.subr.bf16.mxu1 %v7972_v37  ;;  %v8053_v37 = vld [vmem:[#allocation9 + $0x7a4] ss:$16 sps:$4 sm:$0xff]  }
 0x558   :  { %6138 = vmatpush1.bf16.msra.mxu0 %v7967_v62  ;;  %v8056_v62 = vld [vmem:[#allocation9 + $0x7ac] ss:$16 sps:$4 sm:$0xff]  }
 0x559   :  { %6302 = vmatpush1.bf16.msra.mxu1 %v7970_v38  ;;  %6148 = vmatprep.subr.bf16.mxu0 %v7975_v39  ;;  %v8054_v38 = vld [vmem:[#allocation9 + $0x7a8] ss:$16 sps:$4 sm:$0xff]   ;;  %v8059_v39 = vld [vmem:[#allocation9 + $0x7c4] ss:$16 sps:$4 sm:$0xff]  }
 0x55a   :  { %6312 = vmatprep.subr.bf16.mxu1 %v7978_v63  ;;  %v8062_v63 = vld [vmem:[#allocation9 + $0x7cc] ss:$16 sps:$4 sm:$0xff]  }
 0x55b   :  { %6140 = vmatmul.mubr.bf16.vlgmr.msra.gmra.mrb[56].mxu0 %v4462_v44 }
 0x55c   :  { %6304 = vmatmul.mubr.bf16.vlgmr.msra.gmra.mrb[56].mxu1 %v4462_v44  ;;  %6149 = vmatpush1.bf16.msra.mxu0 %v7973_v43  ;;  %v8060_v43 = vld [vmem:[#allocation9 + $0x7c8] ss:$16 sps:$4 sm:$0xff]   ;;  %v8065_v44 = vld [vmem:[#allocation9 + $0x7e4] ss:$16 sps:$4 sm:$0xff]  }
 0x55d   :  { %6180 = vmatprep.mubr.bf16.mxu0 %v4465_v30  ;;  %6313 = vmatpush1.bf16.msra.mxu1 %v7976_v35  ;;  %v8068_v35 = vld [vmem:[#allocation9 + $0x7ec] ss:$16 sps:$4 sm:$0xff]  }
 0x55e   :  { %6344 = vmatprep.mubr.bf16.mxu1 %v4465_v30  ;;  %6150 = vmatprep.subr.bf16.mxu0 %v7981_v45  ;;  %v8063_v45 = vld [vmem:[#allocation9 + $0x7e0] ss:$16 sps:$4 sm:$0xff]   ;;  %v4456_v30 = vmax.f32 %v8518_v18, 0.0 }
 0x55f   :  { %6314 = vmatprep.subr.bf16.mxu1 %v7984_v27  ;;  %v8066_v27 = vld [vmem:[#allocation9 + $0x7e8] ss:$16 sps:$4 sm:$0xff]  }
 0x560   :  { %6151 = vmatpush1.bf16.msra.mxu0 %v7979_v46  ;;  %v4464_v46 = vpack.c.bf16 %v4456_v30, %v4456_v30 }
 0x561   :  { %6315 = vmatpush1.bf16.msra.mxu1 %v7982_v13  ;;  %6152 = vmatprep.subr.bf16.mxu0 %v7987_v48  ;;  %v6838_v13 = vld [vmem:[%s8552_s3 + $0x2] ss:$4 sm:$0xf] }
 0x562   :  { %6316 = vmatprep.subr.bf16.mxu1 %v7990_v15  ;;  %v4728_v48 = vrot.slane %v6838_v13, %v8407_v5  ;;  %v7095_v15 = vld [vmem:[%s8552_s3 + $0x12] ss:$4 sm:$0xf]  ;;  %v4736_v18 = vrot.slane %v6838_v13, %v8410_v6 }
 0x564   :  { %6153 = vmatpush1.bf16.msra.mxu0 %v7985_v49  ;;  %v4732_v49 = vrot.slane %v6838_v13, %v8418_v8 }
 0x565   :  { %6317 = vmatpush1.bf16.msra.mxu1 %v7988_v50  ;;  %6154 = vmatprep.subr.bf16.mxu0 %v7993_v16  ;;  %v4740_v50 = vrot.slane %v6838_v13, %v8421_v9 }
 0x566   :  { %6318 = vmatprep.subr.bf16.mxu1 %v7996_v21 }
 0x568   :  { %6155 = vmatpush1.bf16.msra.mxu0 %v7991_v52  ;;  %v6364_v52 = vrot.slane %v7095_v15, %v8407_v5 }
 0x569   :  { %6319 = vmatpush1.bf16.msra.mxu1 %v7994_v53  ;;  %6156 = vmatprep.subr.bf16.mxu0 %v7999_v54 }
 0x56a   :  { %6320 = vmatprep.subr.bf16.mxu1 %v8002_v55 }
 0x56c   :  { %6157 = vmatpush1.bf16.msra.mxu0 %v7997_v42  ;;  %v6372_v42 = vrot.slane %v7095_v15, %v8410_v6 }
 0x56d   :  { %6321 = vmatpush1.bf16.msra.mxu1 %v8000_v56  ;;  %6158 = vmatprep.subr.bf16.mxu0 %v8005_v51  ;;  %v6368_v51 = vrot.slane %v7095_v15, %v8418_v8 }
 0x56e   :  { %6322 = vmatprep.subr.bf16.mxu1 %v8008_v57 }
 0x570   :  { %6159 = vmatpush1.bf16.msra.mxu0 %v8003_v58 }
 0x571   :  { %6323 = vmatpush1.bf16.msra.mxu1 %v8006_v59  ;;  %6160 = vmatprep.subr.bf16.mxu0 %v8011_v60 }
 0x572   :  { %6324 = vmatprep.subr.bf16.mxu1 %v8014_v61 }
 0x574   :  { %6161 = vmatpush1.bf16.msra.mxu0 %v8009_v0 }
 0x575   :  { %6325 = vmatpush1.bf16.msra.mxu1 %v8012_v14  ;;  %6162 = vmatprep.subr.bf16.mxu0 %v8017_v34 }
 0x576   :  { %6326 = vmatprep.subr.bf16.mxu1 %v8020_v19 }
 0x578   :  { %6163 = vmatpush1.bf16.msra.mxu0 %v8015_v20  ;;  %v6376_v20 = vrot.slane %v7095_v15, %v8421_v9 }
 0x579   :  { %6327 = vmatpush1.bf16.msra.mxu1 %v8018_v23  ;;  %6164 = vmatprep.subr.bf16.mxu0 %v8023_v1 }
 0x57a   :  { %6328 = vmatprep.subr.bf16.mxu1 %v8026_v2 }
 0x57c   :  { %6165 = vmatpush1.bf16.msra.mxu0 %v8021_v3 }
 0x57d   :  { %6329 = vmatpush1.bf16.msra.mxu1 %v8024_v4  ;;  %6166 = vmatprep.subr.bf16.mxu0 %v8029_v10 }
 0x57e   :  { %6330 = vmatprep.subr.bf16.mxu1 %v8032_v33 }
 0x580   :  { %6167 = vmatpush1.bf16.msra.mxu0 %v8027_v11 }
 0x581   :  { %6331 = vmatpush1.bf16.msra.mxu1 %v8030_v12  ;;  %6168 = vmatprep.subr.bf16.mxu0 %v8035_v40  ;;  %v7096_v40 = vld [vmem:[%s8552_s3 + $0x3] ss:$0 sm:$0xff] }
 0x582   :  { %6332 = vmatprep.subr.bf16.mxu1 %v8038_v22 }
 0x584   :  { %6169 = vmatpush1.bf16.msra.mxu0 %v8033_v24 }
 0x585   :  { %6333 = vmatpush1.bf16.msra.mxu1 %v8036_v25  ;;  %6170 = vmatprep.subr.bf16.mxu0 %v8041_v26 }
 0x586   :  { %6334 = vmatprep.subr.bf16.mxu1 %v8044_v17 }
 0x588   :  { %6171 = vmatpush1.bf16.msra.mxu0 %v8039_v28 }
 0x589   :  { %6335 = vmatpush1.bf16.msra.mxu1 %v8042_v7  ;;  %6172 = vmatprep.subr.bf16.mxu0 %v8047_v29 }
 0x58a   :  { %6336 = vmatprep.subr.bf16.mxu1 %v8050_v31 }
 0x58c   :  { %6173 = vmatpush1.bf16.msra.mxu0 %v8045_v32 }
 0x58d   :  { %6337 = vmatpush1.bf16.msra.mxu1 %v8048_v36  ;;  %6174 = vmatprep.subr.bf16.mxu0 %v8053_v37 }
 0x58e   :  { %6338 = vmatprep.subr.bf16.mxu1 %v8056_v62 }
 0x590   :  { %6175 = vmatpush1.bf16.msra.mxu0 %v8051_v47 }
 0x591   :  { %6339 = vmatpush1.bf16.msra.mxu1 %v8054_v38  ;;  %6176 = vmatprep.subr.bf16.mxu0 %v8059_v39 }
 0x592   :  { %6340 = vmatprep.subr.bf16.mxu1 %v8062_v63 }
 0x594   :  { %6177 = vmatpush1.bf16.msra.mxu0 %v8057_v41 }
 0x595   :  { %6341 = vmatpush1.bf16.msra.mxu1 %v8060_v43  ;;  %6178 = vmatprep.subr.bf16.mxu0 %v8065_v44 }
 0x596   :  { %6342 = vmatprep.subr.bf16.mxu1 %v8068_v35 }
 0x598   :  { %6179 = vmatpush1.bf16.msra.mxu0 %v8063_v45 }
 0x599   :  { %6343 = vmatpush1.bf16.msra.mxu1 %v8066_v27 }
 0x59b   :  { %6181 = vmatmul.mubr.bf16.vlgmr.msra.gmra.mrb[56].mxu0 %v4464_v46 }
 0x59c   :  { %6345 = vmatmul.mubr.bf16.vlgmr.msra.gmra.mrb[56].mxu1 %v4464_v46 }
 0x66e   :  { %v6182_v16 = vpop.f32.mrb[56].mxu0 }
 0x66f   :  { %v7429_v21 = vadd.f32 %v6182_v16, %v4728_v48  ;;  %v6346_v53 = vpop.f32.mrb[56].mxu1  ;;  %v6184_v54 = vpop.f32.mrb[57].mxu0 }
 0x670   :  { %v7431_v55 = vadd.f32 %v6346_v53, %v4736_v18  ;;  %v7430_v56 = vadd.f32 %v6184_v54, %v4732_v49  ;;  %v6348_v57 = vpop.f32.mrb[57].mxu1  ;;  %v6186_v58 = vpop.f32.mrb[58].mxu0 }
 0x671   :  { %v6353_v59 = vmax.f32 %v7429_v21, 0.0  ;;  %v7432_v60 = vadd.f32 %v6348_v57, %v4740_v50  ;;  %v6350_v61 = vpop.f32.mrb[58].mxu1  ;;  %v6187_v0 = vpop.f32.mrb[59].mxu0 }
 0x672   :  { %v6355_v14 = vmax.f32 %v7431_v55, 0.0  ;;  %v6354_v34 = vmax.f32 %v7430_v56, 0.0  ;;  %v6351_v19 = vpop.f32.mrb[59].mxu1 }
 0x673   :  { %v6381_v5 = vmul.f32 %v6364_v52, %v6353_v59  ;;  %v6356_v23 = vmax.f32 %v7432_v60, 0.0 }
 0x674   :  { %v6383_v1 = vmul.f32 %v6372_v42, %v6355_v14  ;;  %v6382_v2 = vmul.f32 %v6368_v51, %v6354_v34 }
 0x675   :  { %v6386_v6 = vsel %vm6385_vm10, %v6381_v5, 0.0  ;;  %v6384_v3 = vmul.f32 %v6376_v20, %v6356_v23 }
 0x676   :  { %v6387_v4 = vsel %vm6385_vm10, %v6382_v2, 0.0  ;;  %v6389_v10 = vsel %vm6385_vm10, %v6383_v1, 0.0 }
 0x677   :  { %v6388_v8 = vadd.f32 %v6387_v4, %v6386_v6  ;;  %v6391_v11 = vsel %vm6385_vm10, %v6384_v3, 0.0 }
 0x679   :  { %v6390_v33 = vadd.f32 %v6389_v10, %v6388_v8 }
 0x67b   :  { %v6392_v12 = vadd.f32 %v6391_v11, %v6390_v33 }
 0x67d   :  { %6393 = vadd.xlane.f32.xlu0 %v6392_v12 }
 0x70a   :  { %v6394_v22 = vpop.xlane.xlu0 %6393 }
 0x70b   :  { %v6399_v9 = vadd.f32 %v7096_v40, %v6394_v22 }
 0x70d   :  { %6401 = vst.msk [vmem:[%s8557_s8] sm:$0x3] %vm6400_vm11, %v6399_v9 }
 0x70e   :  { %6406 = vsyncpa [#allocation3], 1 }
 0x70f   :  { %6407 = vsyncpa [#allocation5], 1 }
 0x710   :  { %6408 = vsyncpa [#allocation8], 1 }

</bundles_post_ra>
